<compile_context>
chip_gen: v7x
topology: tpu7x:2x2x1
jax: 0.10.0
libtpu: 0.0.40
codegen_flags: <defaults>
</compile_context>

<pallas_src>
import functools

import jax
import jax.numpy as jnp
from jax.experimental import pallas as pl
from jax.experimental.pallas import tpu as pltpu


_LN_EPS = 1e-5   # torch.nn.LayerNorm default
_BN_EPS = 1e-5   # torch.nn.BatchNorm1d default

# Scoped-VMEM budget: v7x has 64 MiB physical VMEM (v5e/v6e: 128 MiB) and a
# 16-32 MiB default scoped limit; 48 MiB fits every generation with headroom.
_VMEM_LIMIT_BYTES = 48 * 1024 * 1024


# ---------------------------------------------------------------------------
# Shared math helpers (valid both inside Pallas kernels and in pure JAX)
# ---------------------------------------------------------------------------

def _qdot(a, b):
    """bf16 x bf16 matmul with f32 accumulation (full MXU rate)."""
    return jnp.dot(a.astype(jnp.bfloat16), b.astype(jnp.bfloat16),
                   preferred_element_type=jnp.float32)


def _layer_norm(x, gamma, beta):
    mean = jnp.mean(x, axis=-1, keepdims=True)
    cen = x - mean
    var = jnp.mean(cen * cen, axis=-1, keepdims=True)
    return cen * jax.lax.rsqrt(var + _LN_EPS) * gamma + beta


# ---------------------------------------------------------------------------
# In-kernel-only helpers (EUP friendly: exp + approx reciprocal, no VPU divide)
# ---------------------------------------------------------------------------

def _sigmoid_k(v):
    return pl.reciprocal(1.0 + jnp.exp(-v), approx=True)


def _swish_k(v):
    return v * _sigmoid_k(v)


def _ffn_k(x, g, b, w1, b1, w2, b2):
    h = _layer_norm(x, g, b)
    h = _swish_k(_qdot(h, w1) + b1)
    return _qdot(h, w2) + b2          # Dropout == identity at inference


# ---------------------------------------------------------------------------
# Fused Pallas kernels (two residual sub-modules per kernel)
# ---------------------------------------------------------------------------

def _ffn_mhsa_kernel(x_ref,
                     f1g_ref, f1b_ref, f1w1_ref, f1b1_ref, f1w2_ref, f1b2_ref,
                     ag_ref, ab_ref, wq_ref, bq_ref, wk_ref, bk_ref,
                     wv_ref, bv_ref, wo_ref, bo_ref,
                     o_ref, *, num_heads, factor):
    x = x_ref[0].astype(jnp.float32)                              # (T, D)

    # --- 1) half-step FFN residual ---------------------------------------
    x = x + factor * _ffn_k(x, f1g_ref[...], f1b_ref[...], f1w1_ref[...],
                            f1b1_ref[...], f1w2_ref[...], f1b2_ref[...])

    # --- 2) MHSA residual --------------------------------------------------
    h = _layer_norm(x, ag_ref[...], ab_ref[...]).astype(jnp.bfloat16)
    # Full-width (T,D)x(D,D) projections -> full MXU N/K utilization.
    # The 1/sqrt(head_dim) scaling is folded into wq/bq at init time.
    q = jnp.dot(h, wq_ref[...], preferred_element_type=jnp.float32) + bq_ref[...]
    k = jnp.dot(h, wk_ref[...], preferred_element_type=jnp.float32) + bk_ref[...]
    v = jnp.dot(h, wv_ref[...], preferred_element_type=jnp.float32) + bv_ref[...]

    d = x.shape[-1]
    hd = d // num_heads
    ctx = []
    for hi in range(num_heads):                                   # static unroll
        sl = slice(hi * hd, (hi + 1) * hd)
        qh = q[:, sl].astype(jnp.bfloat16)
        kh = k[:, sl].astype(jnp.bfloat16)
        vh = v[:, sl].astype(jnp.bfloat16)
        s = jax.lax.dot_general(qh, kh, (((1,), (1,)), ((), ())),
                                preferred_element_type=jnp.float32)     # (T, T)
        s = s - jnp.max(s, axis=-1, keepdims=True)
        p = jnp.exp(s)
        p = p * pl.reciprocal(jnp.sum(p, axis=-1, keepdims=True), approx=True)
        ctx.append(jnp.dot(p.astype(jnp.bfloat16), vh,
                           preferred_element_type=jnp.float32))         # (T, hd)
    ctx = jnp.concatenate(ctx, axis=-1)                                 # (T, D)
    # Single full-width output projection (contraction dim = D, not head_dim).
    out = _qdot(ctx, wo_ref[...]) + bo_ref[...]
    o_ref[0] = (x + factor * out).astype(o_ref.dtype)


def _conv_ffn_ln_kernel(x_ref,
                        cg_ref, cb_ref, wa_ref, ba_ref, wg_ref, bg_ref,
                        dww_ref, dwb_ref, pw2w_ref, pw2b_ref,
                        f2g_ref, f2b_ref, f2w1_ref, f2b1_ref, f2w2_ref, f2b2_ref,
                        lng_ref, lnb_ref,
                        o_ref, *, dilation, factor):
    x = x_ref[0].astype(jnp.float32)                              # (T, D)
    t, d = x.shape

    # --- 3) conv-module residual (module_factor = 1.0) --------------------
    h = _layer_norm(x, cg_ref[...], cb_ref[...])
    a = _qdot(h, wa_ref[...]) + ba_ref[...]      # GLU value half (BN folded)
    g = _qdot(h, wg_ref[...]) + bg_ref[...]      # GLU gate half  (BN folded)
    h = a * _sigmoid_k(g)                        # GLU
    # Depthwise conv (k=3, stride=1, padding=dilation), BN folded, via XLU
    # rolls + masked boundary rows (no slice+concatenate VMEM copies).
    dw = dww_ref[...]                            # (3, D)
    if dilation < t:
        row = jax.lax.broadcasted_iota(jnp.int32, (t, d), 0)
        h_prev = jnp.where(row >= dilation,
                           pltpu.roll(h, dilation, axis=0), 0.0)       # h[t-dil]
        h_next = jnp.where(row < t - dilation,
                           pltpu.roll(h, t - dilation, axis=0), 0.0)   # h[t+dil]
    else:
        h_prev = jnp.zeros_like(h)
        h_next = jnp.zeros_like(h)
    h = dw[0:1, :] * h_prev + dw[1:2, :] * h + dw[2:3, :] * h_next + dwb_ref[...]
    h = _swish_k(h)
    h = _qdot(h, pw2w_ref[...]) + pw2b_ref[...]  # 1x1 projection conv
    x = x + h

    # --- 4) half-step FFN residual fused with the final LayerNorm ---------
    y = x + factor * _ffn_k(x, f2g_ref[...], f2b_ref[...], f2w1_ref[...],
                            f2b1_ref[...], f2w2_ref[...], f2b2_ref[...])
    o_ref[0] = _layer_norm(y, lng_ref[...], lnb_ref[...]).astype(o_ref.dtype)


# ---------------------------------------------------------------------------
# BlockSpec helpers
# ---------------------------------------------------------------------------

def _weight_spec(arr, single_buffer):
    """Full-array block, same block every grid step (grid-invariant weight)."""
    zeros = (0,) * arr.ndim
    index_map = lambda *_: zeros
    if single_buffer:
        # Weights never change across the batch grid -> single-buffer them to
        # halve their VMEM footprint (critical on v7x's 64 MiB VMEM).
        return pl.BlockSpec(arr.shape, index_map, pipeline_mode=pl.Buffered(1))
    return pl.BlockSpec(arr.shape, index_map)


# ---------------------------------------------------------------------------
# Wrapper module
# ---------------------------------------------------------------------------

class ConformerBlockPallas:
    """JAX/Pallas inference-mode equivalent of the PyTorch ConformerBlock."""

    def __init__(self, emb_dim, num_heads, expansion_factor, half_step_residual,
                 dropout_ratio1, dropout_ratio2, dilation, *, key,
                 dtype=jnp.float32):
        assert emb_dim % num_heads == 0, "emb_dim % num_heads should be zero."
        self.emb_dim = emb_dim
        self.num_heads = num_heads
        self.head_dim = emb_dim // num_heads
        self.dilation = int(dilation)
        self.ff_factor = 0.5 if half_step_residual else 1.0
        self.dropout_ratio1 = dropout_ratio1   # identity at inference
        self.dropout_ratio2 = dropout_ratio2   # identity at inference
        self.dtype = dtype

        d = emb_dim
        e = emb_dim * expansion_factor
        c = 2 * emb_dim                        # conv module expansion (growth=2)

        ks = iter(jax.random.split(key, 64))

        def w(shape, scale=0.1):
            return (scale * jax.random.normal(next(ks), shape)).astype(jnp.float32)

        def ln(n):
            g = (1.0 + 0.1 * jax.random.normal(next(ks), (n,))).astype(jnp.float32)
            b = (0.1 * jax.random.normal(next(ks), (n,))).astype(jnp.float32)
            return g, b

        def bn(n):
            g = (1.0 + 0.1 * jax.random.normal(next(ks), (n,))).astype(jnp.float32)
            b = (0.1 * jax.random.normal(next(ks), (n,))).astype(jnp.float32)
            m = (0.1 * jax.random.normal(next(ks), (n,))).astype(jnp.float32)
            v = (1.0 + 0.1 * jnp.abs(jax.random.normal(next(ks), (n,)))).astype(jnp.float32)
            return g, b, m, v

        raw = {}
        raw["ffn1_ln_g"], raw["ffn1_ln_b"] = ln(d)
        raw["ffn1_w1"], raw["ffn1_b1"] = w((d, e)), w((e,), 0.05)
        raw["ffn1_w2"], raw["ffn1_b2"] = w((e, d)), w((d,), 0.05)

        raw["att_ln_g"], raw["att_ln_b"] = ln(d)
        raw["wq"], raw["bq"] = w((d, d)), w((d,), 0.05)
        raw["wk"], raw["bk"] = w((d, d)), w((d,), 0.05)
        raw["wv"], raw["bv"] = w((d, d)), w((d,), 0.05)
        raw["wo"], raw["bo"] = w((d, d)), w((d,), 0.05)

        raw["conv_ln_g"], raw["conv_ln_b"] = ln(d)
        raw["pw1_w"], raw["pw1_b"] = w((d, c)), w((c,), 0.05)
        raw["bn1_g"], raw["bn1_b"], raw["bn1_m"], raw["bn1_v"] = bn(c)
        raw["dw_w"], raw["dw_b"] = w((3, d)), w((d,), 0.05)   # depthwise taps, k=3
        raw["bn2_g"], raw["bn2_b"], raw["bn2_m"], raw["bn2_v"] = bn(d)
        raw["pw2_w"], raw["pw2_b"] = w((d, d)), w((d,), 0.05)

        raw["ffn2_ln_g"], raw["ffn2_ln_b"] = ln(d)
        raw["ffn2_w1"], raw["ffn2_b1"] = w((d, e)), w((e,), 0.05)
        raw["ffn2_w2"], raw["ffn2_b2"] = w((e, d)), w((d,), 0.05)

        raw["final_ln_g"], raw["final_ln_b"] = ln(d)
        self.raw = raw

        # ---- derived, kernel-friendly parameters --------------------------
        # Fold eval-mode BatchNorm into the neighbouring convolutions (exact).
        s1 = raw["bn1_g"] / jnp.sqrt(raw["bn1_v"] + _BN_EPS)
        t1 = raw["bn1_b"] - raw["bn1_m"] * s1
        pw1_w_eff = raw["pw1_w"] * s1[None, :]
        pw1_b_eff = raw["pw1_b"] * s1 + t1
        s2 = raw["bn2_g"] / jnp.sqrt(raw["bn2_v"] + _BN_EPS)
        t2 = raw["bn2_b"] - raw["bn2_m"] * s2
        dw_w_eff = raw["dw_w"] * s2[None, :]
        dw_b_eff = raw["dw_b"] * s2 + t2

        # Fold the 1/sqrt(head_dim) attention scaling into Wq / bq (one-time).
        scaling = float(self.head_dim) ** -0.5
        wq_eff = raw["wq"] * scaling
        bq_eff = raw["bq"] * scaling

        bf16 = lambda v: v.astype(jnp.bfloat16)            # MXU operands
        r2 = lambda v: v.astype(jnp.float32).reshape(1, -1)  # lane-major rows

        self.k = {
            # FFN1 + MHSA
            "block1": [r2(raw["ffn1_ln_g"]), r2(raw["ffn1_ln_b"]),
                       bf16(raw["ffn1_w1"]), r2(raw["ffn1_b1"]),
                       bf16(raw["ffn1_w2"]), r2(raw["ffn1_b2"]),
                       r2(raw["att_ln_g"]), r2(raw["att_ln_b"]),
                       bf16(wq_eff), r2(bq_eff),
                       bf16(raw["wk"]), r2(raw["bk"]),
                       bf16(raw["wv"]), r2(raw["bv"]),
                       bf16(raw["wo"]), r2(raw["bo"])],
            # ConvModule + FFN2 + final LN
            "block2": [r2(raw["conv_ln_g"]), r2(raw["conv_ln_b"]),
                       bf16(pw1_w_eff[:, :d]), r2(pw1_b_eff[:d]),   # GLU value half
                       bf16(pw1_w_eff[:, d:]), r2(pw1_b_eff[d:]),   # GLU gate half
                       dw_w_eff.astype(jnp.float32), r2(dw_b_eff),  # VPU taps, f32
                       bf16(raw["pw2_w"]), r2(raw["pw2_b"]),
                       r2(raw["ffn2_ln_g"]), r2(raw["ffn2_ln_b"]),
                       bf16(raw["ffn2_w1"]), r2(raw["ffn2_b1"]),
                       bf16(raw["ffn2_w2"]), r2(raw["ffn2_b2"]),
                       r2(raw["final_ln_g"]), r2(raw["final_ln_b"])],
        }

    # ------------------------------------------------------------------ #
    def _run(self, kernel, x, weights):
        b, t, d = x.shape
        x_spec = pl.BlockSpec((1, t, d), lambda i: (i, 0, 0))

        def build(single_buffer):
            in_specs = [x_spec] + [_weight_spec(wt, single_buffer)
                                   for wt in weights]
            return pl.pallas_call(
                kernel,
                out_shape=jax.ShapeDtypeStruct(x.shape, x.dtype),
                grid_spec=pltpu.PrefetchScalarGridSpec(
                    num_scalar_prefetch=0,
                    grid=(b,),
                    in_specs=in_specs,
                    out_specs=x_spec,
                ),
                compiler_params=pltpu.CompilerParams(
                    dimension_semantics=("parallel",),
                    vmem_limit_bytes=_VMEM_LIMIT_BYTES,
                ),
            )

        try:
            return build(single_buffer=True)(x, *weights)
        except Exception:
            # Fallback for JAX/Mosaic versions that reject single-buffered
            # (pl.Buffered(1)) weight operands; semantics are unchanged.
            return build(single_buffer=False)(x, *weights)

    def __call__(self, x):
        # Kernel A: FFN1 residual + MHSA residual.
        x = self._run(functools.partial(_ffn_mhsa_kernel,
                                        num_heads=self.num_heads,
                                        factor=self.ff_factor),
                      x, self.k["block1"])
        # Kernel B: conv-module residual + FFN2 residual + final LayerNorm.
        x = self._run(functools.partial(_conv_ffn_ln_kernel,
                                        dilation=self.dilation,
                                        factor=self.ff_factor),
                      x, self.k["block2"])
        return x


# ---------------------------------------------------------------------------
# Pure-JAX reference (mirrors the PyTorch module, inference mode).  Matmul
# operands are bf16 (same quantization points as the kernels) so the
# comparison checks the kernel structure tightly; BatchNorm is applied
# un-folded and softmax/sigmoid are exact.
# ---------------------------------------------------------------------------

def _reference_forward(raw, x, *, num_heads, ff_factor, dilation):
    def batch_norm(v, g, b, m, var):
        return (v - m) * jax.lax.rsqrt(var + _BN_EPS) * g + b

    def sigmoid(v):
        return 1.0 / (1.0 + jnp.exp(-v))

    def ffn(v, pre):
        h = _layer_norm(v, raw[pre + "_ln_g"], raw[pre + "_ln_b"])
        h = _qdot(h, raw[pre + "_w1"]) + raw[pre + "_b1"]
        h = h * sigmoid(h)
        return _qdot(h, raw[pre + "_w2"]) + raw[pre + "_b2"]

    bsz, t, d = x.shape
    hd = d // num_heads

    # 1) FFN residual
    x = x + ff_factor * ffn(x, "ffn1")

    # 2) MHSA residual
    h = _layer_norm(x, raw["att_ln_g"], raw["att_ln_b"])
    q = (_qdot(h, raw["wq"]) + raw["bq"]).reshape(bsz, t, num_heads, hd).transpose(0, 2, 1, 3)
    k = (_qdot(h, raw["wk"]) + raw["bk"]).reshape(bsz, t, num_heads, hd).transpose(0, 2, 1, 3)
    v = (_qdot(h, raw["wv"]) + raw["bv"]).reshape(bsz, t, num_heads, hd).transpose(0, 2, 1, 3)
    s = jnp.einsum("bhqd,bhkd->bhqk",
                   q.astype(jnp.bfloat16), k.astype(jnp.bfloat16),
                   preferred_element_type=jnp.float32) * (float(hd) ** -0.5)
    p = jax.nn.softmax(s, axis=-1)
    ctx = jnp.einsum("bhqk,bhkd->bhqd",
                     p.astype(jnp.bfloat16), v.astype(jnp.bfloat16),
                     preferred_element_type=jnp.float32)
    ctx = ctx.transpose(0, 2, 1, 3).reshape(bsz, t, d)
    x = x + ff_factor * (_qdot(ctx, raw["wo"]) + raw["bo"])

    # 3) Conformer conv module residual (module_factor = 1.0)
    h = _layer_norm(x, raw["conv_ln_g"], raw["conv_ln_b"])
    h = _qdot(h, raw["pw1_w"]) + raw["pw1_b"]
    h = batch_norm(h, raw["bn1_g"], raw["bn1_b"], raw["bn1_m"], raw["bn1_v"])
    h = h[..., :d] * sigmoid(h[..., d:])                        # GLU
    hp = jnp.pad(h, ((0, 0), (dilation, dilation), (0, 0)))     # depthwise conv
    h = (raw["dw_w"][0] * hp[:, 0:t, :]
         + raw["dw_w"][1] * hp[:, dilation:dilation + t, :]
         + raw["dw_w"][2] * hp[:, 2 * dilation:2 * dilation + t, :]
         + raw["dw_b"])
    h = batch_norm(h, raw["bn2_g"], raw["bn2_b"], raw["bn2_m"], raw["bn2_v"])
    h = h * sigmoid(h)
    h = _qdot(h, raw["pw2_w"]) + raw["pw2_b"]
    x = x + h

    # 4) FFN residual + final LayerNorm
    x = x + ff_factor * ffn(x, "ffn2")
    return _layer_norm(x, raw["final_ln_g"], raw["final_ln_b"])


# ---------------------------------------------------------------------------
if __name__ == "__main__":
    key = jax.random.PRNGKey(0)
    k_params, k_x = jax.random.split(key)

    batch, seq, emb_dim, num_heads = 2, 8, 32, 4
    block = ConformerBlockPallas(
        emb_dim=emb_dim,
        num_heads=num_heads,
        expansion_factor=2,
        half_step_residual=True,
        dropout_ratio1=0.2,
        dropout_ratio2=0.2,
        dilation=1,
        key=k_params,
    )

    x = jax.random.normal(k_x, (batch, seq, emb_dim), dtype=jnp.float32)

    y = jax.block_until_ready(block(x))

    ref = _reference_forward(block.raw, x, num_heads=num_heads,
                             ff_factor=block.ff_factor,
                             dilation=block.dilation)

    assert y.shape == (batch, seq, emb_dim), y.shape
    assert y.dtype == x.dtype
    assert bool(jnp.all(jnp.isfinite(y)))
    max_err = float(jnp.max(jnp.abs(y - ref)))
    assert max_err < 5e-2, f"max abs error vs reference: {max_err}"
    print("KERNEL_OK")
</pallas_src>

<mosaic_0001>
module attributes {stable_mosaic.version = 11 : i64} {
  func.func @_ffn_mhsa_kernel(%arg0: i32, %arg1: memref<1x8x32xf32, #tpu.memory_space<vmem>>, %arg2: memref<1x32xf32, #tpu.memory_space<vmem>>, %arg3: memref<1x32xf32, #tpu.memory_space<vmem>>, %arg4: memref<32x64xbf16, #tpu.memory_space<vmem>>, %arg5: memref<1x64xf32, #tpu.memory_space<vmem>>, %arg6: memref<64x32xbf16, #tpu.memory_space<vmem>>, %arg7: memref<1x32xf32, #tpu.memory_space<vmem>>, %arg8: memref<1x32xf32, #tpu.memory_space<vmem>>, %arg9: memref<1x32xf32, #tpu.memory_space<vmem>>, %arg10: memref<32x32xbf16, #tpu.memory_space<vmem>>, %arg11: memref<1x32xf32, #tpu.memory_space<vmem>>, %arg12: memref<32x32xbf16, #tpu.memory_space<vmem>>, %arg13: memref<1x32xf32, #tpu.memory_space<vmem>>, %arg14: memref<32x32xbf16, #tpu.memory_space<vmem>>, %arg15: memref<1x32xf32, #tpu.memory_space<vmem>>, %arg16: memref<32x32xbf16, #tpu.memory_space<vmem>>, %arg17: memref<1x32xf32, #tpu.memory_space<vmem>>, %arg18: memref<1x8x32xf32, #tpu.memory_space<vmem>>) attributes {dimension_semantics = [#tpu.dimension_semantics<parallel>], iteration_bounds = array<i64: 2>, scalar_prefetch = 0 : i64, scratch_operands = 0 : i64, tpu.core_type = #tpu.core_type<tc>, window_params = [{transform_indices = @transform_0, window_bounds = array<i64: 1, 8, 32>}, {pipeline_mode = #tpu.pipeline_mode<synchronous>, transform_indices = @transform_1, window_bounds = array<i64: 1, 32>}, {pipeline_mode = #tpu.pipeline_mode<synchronous>, transform_indices = @transform_2, window_bounds = array<i64: 1, 32>}, {pipeline_mode = #tpu.pipeline_mode<synchronous>, transform_indices = @transform_3, window_bounds = array<i64: 32, 64>}, {pipeline_mode = #tpu.pipeline_mode<synchronous>, transform_indices = @transform_4, window_bounds = array<i64: 1, 64>}, {pipeline_mode = #tpu.pipeline_mode<synchronous>, transform_indices = @transform_5, window_bounds = array<i64: 64, 32>}, {pipeline_mode = #tpu.pipeline_mode<synchronous>, transform_indices = @transform_6, window_bounds = array<i64: 1, 32>}, {pipeline_mode = #tpu.pipeline_mode<synchronous>, transform_indices = @transform_7, window_bounds = array<i64: 1, 32>}, {pipeline_mode = #tpu.pipeline_mode<synchronous>, transform_indices = @transform_8, window_bounds = array<i64: 1, 32>}, {pipeline_mode = #tpu.pipeline_mode<synchronous>, transform_indices = @transform_9, window_bounds = array<i64: 32, 32>}, {pipeline_mode = #tpu.pipeline_mode<synchronous>, transform_indices = @transform_10, window_bounds = array<i64: 1, 32>}, {pipeline_mode = #tpu.pipeline_mode<synchronous>, transform_indices = @transform_11, window_bounds = array<i64: 32, 32>}, {pipeline_mode = #tpu.pipeline_mode<synchronous>, transform_indices = @transform_12, window_bounds = array<i64: 1, 32>}, {pipeline_mode = #tpu.pipeline_mode<synchronous>, transform_indices = @transform_13, window_bounds = array<i64: 32, 32>}, {pipeline_mode = #tpu.pipeline_mode<synchronous>, transform_indices = @transform_14, window_bounds = array<i64: 1, 32>}, {pipeline_mode = #tpu.pipeline_mode<synchronous>, transform_indices = @transform_15, window_bounds = array<i64: 32, 32>}, {pipeline_mode = #tpu.pipeline_mode<synchronous>, transform_indices = @transform_16, window_bounds = array<i64: 1, 32>}, {transform_indices = @transform_17, window_bounds = array<i64: 1, 8, 32>}]} {
    %c0 = arith.constant 0 : index
    %c0_0 = arith.constant 0 : index
    %c0_1 = arith.constant 0 : index
    %0 = vector.load %arg1[%c0, %c0_0, %c0_1] : memref<1x8x32xf32, #tpu.memory_space<vmem>>, vector<1x8x32xf32>
    %1 = vector.shape_cast %0 : vector<1x8x32xf32> to vector<8x32xf32>
    %c0_2 = arith.constant 0 : index
    %c0_3 = arith.constant 0 : index
    %2 = vector.load %arg2[%c0_2, %c0_3] : memref<1x32xf32, #tpu.memory_space<vmem>>, vector<1x32xf32>
    %c0_4 = arith.constant 0 : index
    %c0_5 = arith.constant 0 : index
    %3 = vector.load %arg3[%c0_4, %c0_5] : memref<1x32xf32, #tpu.memory_space<vmem>>, vector<1x32xf32>
    %c0_6 = arith.constant 0 : index
    %c0_7 = arith.constant 0 : index
    %4 = vector.load %arg4[%c0_6, %c0_7] : memref<32x64xbf16, #tpu.memory_space<vmem>>, vector<32x64xbf16>
    %c0_8 = arith.constant 0 : index
    %c0_9 = arith.constant 0 : index
    %5 = vector.load %arg5[%c0_8, %c0_9] : memref<1x64xf32, #tpu.memory_space<vmem>>, vector<1x64xf32>
    %c0_10 = arith.constant 0 : index
    %c0_11 = arith.constant 0 : index
    %6 = vector.load %arg6[%c0_10, %c0_11] : memref<64x32xbf16, #tpu.memory_space<vmem>>, vector<64x32xbf16>
    %c0_12 = arith.constant 0 : index
    %c0_13 = arith.constant 0 : index
    %7 = vector.load %arg7[%c0_12, %c0_13] : memref<1x32xf32, #tpu.memory_space<vmem>>, vector<1x32xf32>
    %cst = arith.constant dense<0.000000e+00> : vector<8xf32>
    %8 = vector.multi_reduction <add>, %1, %cst [1] : vector<8x32xf32> to vector<8xf32>
    %9 = vector.shape_cast %8 : vector<8xf32> to vector<8x1xf32>
    %cst_14 = arith.constant 3.200000e+01 : f32
    %10 = vector.broadcast %cst_14 : f32 to vector<8x1xf32>
    %11 = arith.divf %9, %10 : vector<8x1xf32>
    %12 = vector.broadcast %11 : vector<8x1xf32> to vector<8x32xf32>
    %13 = arith.subf %1, %12 : vector<8x32xf32>
    %14 = arith.mulf %13, %13 : vector<8x32xf32>
    %cst_15 = arith.constant dense<0.000000e+00> : vector<8xf32>
    %15 = vector.multi_reduction <add>, %14, %cst_15 [1] : vector<8x32xf32> to vector<8xf32>
    %16 = vector.shape_cast %15 : vector<8xf32> to vector<8x1xf32>
    %cst_16 = arith.constant 3.200000e+01 : f32
    %17 = vector.broadcast %cst_16 : f32 to vector<8x1xf32>
    %18 = arith.divf %16, %17 : vector<8x1xf32>
    %cst_17 = arith.constant 9.99999974E-6 : f32
    %19 = vector.broadcast %cst_17 : f32 to vector<8x1xf32>
    %20 = arith.addf %18, %19 : vector<8x1xf32>
    %21 = math.rsqrt %20 : vector<8x1xf32>
    %22 = vector.broadcast %21 : vector<8x1xf32> to vector<8x32xf32>
    %23 = arith.mulf %13, %22 : vector<8x32xf32>
    %24 = vector.broadcast %2 : vector<1x32xf32> to vector<8x32xf32>
    %25 = arith.mulf %23, %24 : vector<8x32xf32>
    %26 = vector.broadcast %3 : vector<1x32xf32> to vector<8x32xf32>
    %27 = arith.addf %25, %26 : vector<8x32xf32>
    %28 = arith.truncf %27 : vector<8x32xf32> to vector<8x32xbf16>
    %cst_18 = arith.constant dense<0.000000e+00> : vector<8x64xf32>
    %29 = tpu.matmul %28, %4, %cst_18 {dimension_numbers = #tpu.dot_dimension_numbers<[1], [0], [0], [1], [0, 0, 1, 1], [], []>} : vector<8x32xbf16>, vector<32x64xbf16>, vector<8x64xf32> -> vector<8x64xf32>
    %30 = vector.broadcast %5 : vector<1x64xf32> to vector<8x64xf32>
    %31 = arith.addf %29, %30 : vector<8x64xf32>
    %cst_19 = arith.constant 0.000000e+00 : f32
    %32 = vector.broadcast %cst_19 : f32 to vector<8x64xf32>
    %33 = arith.subf %32, %31 : vector<8x64xf32>
    %34 = math.exp %33 : vector<8x64xf32>
    %cst_20 = arith.constant 1.000000e+00 : f32
    %35 = vector.broadcast %cst_20 : f32 to vector<8x64xf32>
    %36 = arith.addf %35, %34 : vector<8x64xf32>
    %37 = tpu.reciprocal %36 {approx = true} : vector<8x64xf32> -> vector<8x64xf32>
    %38 = arith.mulf %31, %37 : vector<8x64xf32>
    %39 = arith.truncf %38 : vector<8x64xf32> to vector<8x64xbf16>
    %cst_21 = arith.constant dense<0.000000e+00> : vector<8x32xf32>
    %40 = tpu.matmul %39, %6, %cst_21 {dimension_numbers = #tpu.dot_dimension_numbers<[1], [0], [0], [1], [0, 0, 1, 1], [], []>} : vector<8x64xbf16>, vector<64x32xbf16>, vector<8x32xf32> -> vector<8x32xf32>
    %41 = vector.broadcast %7 : vector<1x32xf32> to vector<8x32xf32>
    %42 = arith.addf %40, %41 : vector<8x32xf32>
    %cst_22 = arith.constant 5.000000e-01 : f32
    %43 = vector.broadcast %cst_22 : f32 to vector<8x32xf32>
    %44 = arith.mulf %43, %42 : vector<8x32xf32>
    %45 = arith.addf %1, %44 : vector<8x32xf32>
    %c0_23 = arith.constant 0 : index
    %c0_24 = arith.constant 0 : index
    %46 = vector.load %arg8[%c0_23, %c0_24] : memref<1x32xf32, #tpu.memory_space<vmem>>, vector<1x32xf32>
    %c0_25 = arith.constant 0 : index
    %c0_26 = arith.constant 0 : index
    %47 = vector.load %arg9[%c0_25, %c0_26] : memref<1x32xf32, #tpu.memory_space<vmem>>, vector<1x32xf32>
    %cst_27 = arith.constant dense<0.000000e+00> : vector<8xf32>
    %48 = vector.multi_reduction <add>, %45, %cst_27 [1] : vector<8x32xf32> to vector<8xf32>
    %49 = vector.shape_cast %48 : vector<8xf32> to vector<8x1xf32>
    %cst_28 = arith.constant 3.200000e+01 : f32
    %50 = vector.broadcast %cst_28 : f32 to vector<8x1xf32>
    %51 = arith.divf %49, %50 : vector<8x1xf32>
    %52 = vector.broadcast %51 : vector<8x1xf32> to vector<8x32xf32>
    %53 = arith.subf %45, %52 : vector<8x32xf32>
    %54 = arith.mulf %53, %53 : vector<8x32xf32>
    %cst_29 = arith.constant dense<0.000000e+00> : vector<8xf32>
    %55 = vector.multi_reduction <add>, %54, %cst_29 [1] : vector<8x32xf32> to vector<8xf32>
    %56 = vector.shape_cast %55 : vector<8xf32> to vector<8x1xf32>
    %cst_30 = arith.constant 3.200000e+01 : f32
    %57 = vector.broadcast %cst_30 : f32 to vector<8x1xf32>
    %58 = arith.divf %56, %57 : vector<8x1xf32>
    %cst_31 = arith.constant 9.99999974E-6 : f32
    %59 = vector.broadcast %cst_31 : f32 to vector<8x1xf32>
    %60 = arith.addf %58, %59 : vector<8x1xf32>
    %61 = math.rsqrt %60 : vector<8x1xf32>
    %62 = vector.broadcast %61 : vector<8x1xf32> to vector<8x32xf32>
    %63 = arith.mulf %53, %62 : vector<8x32xf32>
    %64 = vector.broadcast %46 : vector<1x32xf32> to vector<8x32xf32>
    %65 = arith.mulf %63, %64 : vector<8x32xf32>
    %66 = vector.broadcast %47 : vector<1x32xf32> to vector<8x32xf32>
    %67 = arith.addf %65, %66 : vector<8x32xf32>
    %68 = arith.truncf %67 : vector<8x32xf32> to vector<8x32xbf16>
    %c0_32 = arith.constant 0 : index
    %c0_33 = arith.constant 0 : index
    %69 = vector.load %arg10[%c0_32, %c0_33] : memref<32x32xbf16, #tpu.memory_space<vmem>>, vector<32x32xbf16>
    %cst_34 = arith.constant dense<0.000000e+00> : vector<8x32xf32>
    %70 = tpu.matmul %68, %69, %cst_34 {dimension_numbers = #tpu.dot_dimension_numbers<[1], [0], [0], [1], [0, 0, 1, 1], [], []>} : vector<8x32xbf16>, vector<32x32xbf16>, vector<8x32xf32> -> vector<8x32xf32>
    %c0_35 = arith.constant 0 : index
    %c0_36 = arith.constant 0 : index
    %71 = vector.load %arg11[%c0_35, %c0_36] : memref<1x32xf32, #tpu.memory_space<vmem>>, vector<1x32xf32>
    %72 = vector.broadcast %71 : vector<1x32xf32> to vector<8x32xf32>
    %73 = arith.addf %70, %72 : vector<8x32xf32>
    %c0_37 = arith.constant 0 : index
    %c0_38 = arith.constant 0 : index
    %74 = vector.load %arg12[%c0_37, %c0_38] : memref<32x32xbf16, #tpu.memory_space<vmem>>, vector<32x32xbf16>
    %cst_39 = arith.constant dense<0.000000e+00> : vector<8x32xf32>
    %75 = tpu.matmul %68, %74, %cst_39 {dimension_numbers = #tpu.dot_dimension_numbers<[1], [0], [0], [1], [0, 0, 1, 1], [], []>} : vector<8x32xbf16>, vector<32x32xbf16>, vector<8x32xf32> -> vector<8x32xf32>
    %c0_40 = arith.constant 0 : index
    %c0_41 = arith.constant 0 : index
    %76 = vector.load %arg13[%c0_40, %c0_41] : memref<1x32xf32, #tpu.memory_space<vmem>>, vector<1x32xf32>
    %77 = vector.broadcast %76 : vector<1x32xf32> to vector<8x32xf32>
    %78 = arith.addf %75, %77 : vector<8x32xf32>
    %c0_42 = arith.constant 0 : index
    %c0_43 = arith.constant 0 : index
    %79 = vector.load %arg14[%c0_42, %c0_43] : memref<32x32xbf16, #tpu.memory_space<vmem>>, vector<32x32xbf16>
    %cst_44 = arith.constant dense<0.000000e+00> : vector<8x32xf32>
    %80 = tpu.matmul %68, %79, %cst_44 {dimension_numbers = #tpu.dot_dimension_numbers<[1], [0], [0], [1], [0, 0, 1, 1], [], []>} : vector<8x32xbf16>, vector<32x32xbf16>, vector<8x32xf32> -> vector<8x32xf32>
    %c0_45 = arith.constant 0 : index
    %c0_46 = arith.constant 0 : index
    %81 = vector.load %arg15[%c0_45, %c0_46] : memref<1x32xf32, #tpu.memory_space<vmem>>, vector<1x32xf32>
    %82 = vector.broadcast %81 : vector<1x32xf32> to vector<8x32xf32>
    %83 = arith.addf %80, %82 : vector<8x32xf32>
    %84 = vector.extract_strided_slice %73 {offsets = [0, 0], sizes = [8, 8], strides = [1, 1]} : vector<8x32xf32> to vector<8x8xf32>
    %85 = arith.truncf %84 : vector<8x8xf32> to vector<8x8xbf16>
    %86 = vector.extract_strided_slice %78 {offsets = [0, 0], sizes = [8, 8], strides = [1, 1]} : vector<8x32xf32> to vector<8x8xf32>
    %87 = arith.truncf %86 : vector<8x8xf32> to vector<8x8xbf16>
    %88 = vector.extract_strided_slice %83 {offsets = [0, 0], sizes = [8, 8], strides = [1, 1]} : vector<8x32xf32> to vector<8x8xf32>
    %89 = arith.truncf %88 : vector<8x8xf32> to vector<8x8xbf16>
    %cst_47 = arith.constant dense<0.000000e+00> : vector<8x8xf32>
    %90 = tpu.matmul %85, %87, %cst_47 {dimension_numbers = #tpu.dot_dimension_numbers<[1], [1], [0], [0], [0, 0, 1, 0], [], []>} : vector<8x8xbf16>, vector<8x8xbf16>, vector<8x8xf32> -> vector<8x8xf32>
    %cst_48 = arith.constant dense<0xFF800000> : vector<8xf32>
    %91 = vector.multi_reduction <maximumf>, %90, %cst_48 [1] : vector<8x8xf32> to vector<8xf32>
    %92 = vector.shape_cast %91 : vector<8xf32> to vector<8x1xf32>
    %93 = vector.broadcast %92 : vector<8x1xf32> to vector<8x8xf32>
    %94 = arith.subf %90, %93 : vector<8x8xf32>
    %95 = math.exp %94 : vector<8x8xf32>
    %cst_49 = arith.constant dense<0.000000e+00> : vector<8xf32>
    %96 = vector.multi_reduction <add>, %95, %cst_49 [1] : vector<8x8xf32> to vector<8xf32>
    %97 = vector.shape_cast %96 : vector<8xf32> to vector<8x1xf32>
    %98 = tpu.reciprocal %97 {approx = true} : vector<8x1xf32> -> vector<8x1xf32>
    %99 = vector.broadcast %98 : vector<8x1xf32> to vector<8x8xf32>
    %100 = arith.mulf %95, %99 : vector<8x8xf32>
    %101 = arith.truncf %100 : vector<8x8xf32> to vector<8x8xbf16>
    %cst_50 = arith.constant dense<0.000000e+00> : vector<8x8xf32>
    %102 = tpu.matmul %101, %89, %cst_50 {dimension_numbers = #tpu.dot_dimension_numbers<[1], [0], [0], [1], [0, 0, 1, 1], [], []>} : vector<8x8xbf16>, vector<8x8xbf16>, vector<8x8xf32> -> vector<8x8xf32>
    %103 = vector.extract_strided_slice %73 {offsets = [0, 8], sizes = [8, 8], strides = [1, 1]} : vector<8x32xf32> to vector<8x8xf32>
    %104 = arith.truncf %103 : vector<8x8xf32> to vector<8x8xbf16>
    %105 = vector.extract_strided_slice %78 {offsets = [0, 8], sizes = [8, 8], strides = [1, 1]} : vector<8x32xf32> to vector<8x8xf32>
    %106 = arith.truncf %105 : vector<8x8xf32> to vector<8x8xbf16>
    %107 = vector.extract_strided_slice %83 {offsets = [0, 8], sizes = [8, 8], strides = [1, 1]} : vector<8x32xf32> to vector<8x8xf32>
    %108 = arith.truncf %107 : vector<8x8xf32> to vector<8x8xbf16>
    %cst_51 = arith.constant dense<0.000000e+00> : vector<8x8xf32>
    %109 = tpu.matmul %104, %106, %cst_51 {dimension_numbers = #tpu.dot_dimension_numbers<[1], [1], [0], [0], [0, 0, 1, 0], [], []>} : vector<8x8xbf16>, vector<8x8xbf16>, vector<8x8xf32> -> vector<8x8xf32>
    %cst_52 = arith.constant dense<0xFF800000> : vector<8xf32>
    %110 = vector.multi_reduction <maximumf>, %109, %cst_52 [1] : vector<8x8xf32> to vector<8xf32>
    %111 = vector.shape_cast %110 : vector<8xf32> to vector<8x1xf32>
    %112 = vector.broadcast %111 : vector<8x1xf32> to vector<8x8xf32>
    %113 = arith.subf %109, %112 : vector<8x8xf32>
    %114 = math.exp %113 : vector<8x8xf32>
    %cst_53 = arith.constant dense<0.000000e+00> : vector<8xf32>
    %115 = vector.multi_reduction <add>, %114, %cst_53 [1] : vector<8x8xf32> to vector<8xf32>
    %116 = vector.shape_cast %115 : vector<8xf32> to vector<8x1xf32>
    %117 = tpu.reciprocal %116 {approx = true} : vector<8x1xf32> -> vector<8x1xf32>
    %118 = vector.broadcast %117 : vector<8x1xf32> to vector<8x8xf32>
    %119 = arith.mulf %114, %118 : vector<8x8xf32>
    %120 = arith.truncf %119 : vector<8x8xf32> to vector<8x8xbf16>
    %cst_54 = arith.constant dense<0.000000e+00> : vector<8x8xf32>
    %121 = tpu.matmul %120, %108, %cst_54 {dimension_numbers = #tpu.dot_dimension_numbers<[1], [0], [0], [1], [0, 0, 1, 1], [], []>} : vector<8x8xbf16>, vector<8x8xbf16>, vector<8x8xf32> -> vector<8x8xf32>
    %122 = vector.extract_strided_slice %73 {offsets = [0, 16], sizes = [8, 8], strides = [1, 1]} : vector<8x32xf32> to vector<8x8xf32>
    %123 = arith.truncf %122 : vector<8x8xf32> to vector<8x8xbf16>
    %124 = vector.extract_strided_slice %78 {offsets = [0, 16], sizes = [8, 8], strides = [1, 1]} : vector<8x32xf32> to vector<8x8xf32>
    %125 = arith.truncf %124 : vector<8x8xf32> to vector<8x8xbf16>
    %126 = vector.extract_strided_slice %83 {offsets = [0, 16], sizes = [8, 8], strides = [1, 1]} : vector<8x32xf32> to vector<8x8xf32>
    %127 = arith.truncf %126 : vector<8x8xf32> to vector<8x8xbf16>
    %cst_55 = arith.constant dense<0.000000e+00> : vector<8x8xf32>
    %128 = tpu.matmul %123, %125, %cst_55 {dimension_numbers = #tpu.dot_dimension_numbers<[1], [1], [0], [0], [0, 0, 1, 0], [], []>} : vector<8x8xbf16>, vector<8x8xbf16>, vector<8x8xf32> -> vector<8x8xf32>
    %cst_56 = arith.constant dense<0xFF800000> : vector<8xf32>
    %129 = vector.multi_reduction <maximumf>, %128, %cst_56 [1] : vector<8x8xf32> to vector<8xf32>
    %130 = vector.shape_cast %129 : vector<8xf32> to vector<8x1xf32>
    %131 = vector.broadcast %130 : vector<8x1xf32> to vector<8x8xf32>
    %132 = arith.subf %128, %131 : vector<8x8xf32>
    %133 = math.exp %132 : vector<8x8xf32>
    %cst_57 = arith.constant dense<0.000000e+00> : vector<8xf32>
    %134 = vector.multi_reduction <add>, %133, %cst_57 [1] : vector<8x8xf32> to vector<8xf32>
    %135 = vector.shape_cast %134 : vector<8xf32> to vector<8x1xf32>
    %136 = tpu.reciprocal %135 {approx = true} : vector<8x1xf32> -> vector<8x1xf32>
    %137 = vector.broadcast %136 : vector<8x1xf32> to vector<8x8xf32>
    %138 = arith.mulf %133, %137 : vector<8x8xf32>
    %139 = arith.truncf %138 : vector<8x8xf32> to vector<8x8xbf16>
    %cst_58 = arith.constant dense<0.000000e+00> : vector<8x8xf32>
    %140 = tpu.matmul %139, %127, %cst_58 {dimension_numbers = #tpu.dot_dimension_numbers<[1], [0], [0], [1], [0, 0, 1, 1], [], []>} : vector<8x8xbf16>, vector<8x8xbf16>, vector<8x8xf32> -> vector<8x8xf32>
    %141 = vector.extract_strided_slice %73 {offsets = [0, 24], sizes = [8, 8], strides = [1, 1]} : vector<8x32xf32> to vector<8x8xf32>
    %142 = arith.truncf %141 : vector<8x8xf32> to vector<8x8xbf16>
    %143 = vector.extract_strided_slice %78 {offsets = [0, 24], sizes = [8, 8], strides = [1, 1]} : vector<8x32xf32> to vector<8x8xf32>
    %144 = arith.truncf %143 : vector<8x8xf32> to vector<8x8xbf16>
    %145 = vector.extract_strided_slice %83 {offsets = [0, 24], sizes = [8, 8], strides = [1, 1]} : vector<8x32xf32> to vector<8x8xf32>
    %146 = arith.truncf %145 : vector<8x8xf32> to vector<8x8xbf16>
    %cst_59 = arith.constant dense<0.000000e+00> : vector<8x8xf32>
    %147 = tpu.matmul %142, %144, %cst_59 {dimension_numbers = #tpu.dot_dimension_numbers<[1], [1], [0], [0], [0, 0, 1, 0], [], []>} : vector<8x8xbf16>, vector<8x8xbf16>, vector<8x8xf32> -> vector<8x8xf32>
    %cst_60 = arith.constant dense<0xFF800000> : vector<8xf32>
    %148 = vector.multi_reduction <maximumf>, %147, %cst_60 [1] : vector<8x8xf32> to vector<8xf32>
    %149 = vector.shape_cast %148 : vector<8xf32> to vector<8x1xf32>
    %150 = vector.broadcast %149 : vector<8x1xf32> to vector<8x8xf32>
    %151 = arith.subf %147, %150 : vector<8x8xf32>
    %152 = math.exp %151 : vector<8x8xf32>
    %cst_61 = arith.constant dense<0.000000e+00> : vector<8xf32>
    %153 = vector.multi_reduction <add>, %152, %cst_61 [1] : vector<8x8xf32> to vector<8xf32>
    %154 = vector.shape_cast %153 : vector<8xf32> to vector<8x1xf32>
    %155 = tpu.reciprocal %154 {approx = true} : vector<8x1xf32> -> vector<8x1xf32>
    %156 = vector.broadcast %155 : vector<8x1xf32> to vector<8x8xf32>
    %157 = arith.mulf %152, %156 : vector<8x8xf32>
    %158 = arith.truncf %157 : vector<8x8xf32> to vector<8x8xbf16>
    %cst_62 = arith.constant dense<0.000000e+00> : vector<8x8xf32>
    %159 = tpu.matmul %158, %146, %cst_62 {dimension_numbers = #tpu.dot_dimension_numbers<[1], [0], [0], [1], [0, 0, 1, 1], [], []>} : vector<8x8xbf16>, vector<8x8xbf16>, vector<8x8xf32> -> vector<8x8xf32>
    %160 = tpu.concatenate %102, %121, %140, %159 in 1 : vector<8x8xf32>, vector<8x8xf32>, vector<8x8xf32>, vector<8x8xf32> -> vector<8x32xf32>
    %c0_63 = arith.constant 0 : index
    %c0_64 = arith.constant 0 : index
    %161 = vector.load %arg16[%c0_63, %c0_64] : memref<32x32xbf16, #tpu.memory_space<vmem>>, vector<32x32xbf16>
    %162 = arith.truncf %160 : vector<8x32xf32> to vector<8x32xbf16>
    %cst_65 = arith.constant dense<0.000000e+00> : vector<8x32xf32>
    %163 = tpu.matmul %162, %161, %cst_65 {dimension_numbers = #tpu.dot_dimension_numbers<[1], [0], [0], [1], [0, 0, 1, 1], [], []>} : vector<8x32xbf16>, vector<32x32xbf16>, vector<8x32xf32> -> vector<8x32xf32>
    %c0_66 = arith.constant 0 : index
    %c0_67 = arith.constant 0 : index
    %164 = vector.load %arg17[%c0_66, %c0_67] : memref<1x32xf32, #tpu.memory_space<vmem>>, vector<1x32xf32>
    %165 = vector.broadcast %164 : vector<1x32xf32> to vector<8x32xf32>
    %166 = arith.addf %163, %165 : vector<8x32xf32>
    %cst_68 = arith.constant 5.000000e-01 : f32
    %167 = vector.broadcast %cst_68 : f32 to vector<8x32xf32>
    %168 = arith.mulf %167, %166 : vector<8x32xf32>
    %169 = arith.addf %45, %168 : vector<8x32xf32>
    %c0_69 = arith.constant 0 : index
    %c0_70 = arith.constant 0 : index
    %c0_71 = arith.constant 0 : index
    %170 = vector.load %arg18[%c0_69, %c0_70, %c0_71] : memref<1x8x32xf32, #tpu.memory_space<vmem>>, vector<1x8x32xf32>
    %171 = vector.shape_cast %170 : vector<1x8x32xf32> to vector<8x32xf32>
    %172 = vector.shape_cast %169 : vector<8x32xf32> to vector<1x8x32xf32>
    tpu.vector_store %arg18[%c0_69, %c0_70, %c0_71], %172 {strides = array<i32>} : memref<1x8x32xf32, #tpu.memory_space<vmem>>, vector<1x8x32xf32>,
    return
  }
  func.func @transform_0(%arg0: i32) -> (i32, i32, i32) {
    %c0_i32 = arith.constant 0 : i32
    %c0_i32_0 = arith.constant 0 : i32
    %c0_i32_1 = arith.constant 0 : i32
    return %arg0, %c0_i32, %c0_i32_0 : i32, i32, i32
  }
  func.func @transform_1(%arg0: i32) -> (i32, i32) {
    %c0_i32 = arith.constant 0 : i32
    %c0_i32_0 = arith.constant 0 : i32
    %c0_i32_1 = arith.constant 0 : i32
    return %c0_i32, %c0_i32_0 : i32, i32
  }
  func.func @transform_2(%arg0: i32) -> (i32, i32) {
    %c0_i32 = arith.constant 0 : i32
    %c0_i32_0 = arith.constant 0 : i32
    %c0_i32_1 = arith.constant 0 : i32
    return %c0_i32, %c0_i32_0 : i32, i32
  }
  func.func @transform_3(%arg0: i32) -> (i32, i32) {
    %c0_i32 = arith.constant 0 : i32
    %c0_i32_0 = arith.constant 0 : i32
    %c0_i32_1 = arith.constant 0 : i32
    return %c0_i32, %c0_i32_0 : i32, i32
  }
  func.func @transform_4(%arg0: i32) -> (i32, i32) {
    %c0_i32 = arith.constant 0 : i32
    %c0_i32_0 = arith.constant 0 : i32
    %c0_i32_1 = arith.constant 0 : i32
    return %c0_i32, %c0_i32_0 : i32, i32
  }
  func.func @transform_5(%arg0: i32) -> (i32, i32) {
    %c0_i32 = arith.constant 0 : i32
    %c0_i32_0 = arith.constant 0 : i32
    %c0_i32_1 = arith.constant 0 : i32
    return %c0_i32, %c0_i32_0 : i32, i32
  }
  func.func @transform_6(%arg0: i32) -> (i32, i32) {
    %c0_i32 = arith.constant 0 : i32
    %c0_i32_0 = arith.constant 0 : i32
    %c0_i32_1 = arith.constant 0 : i32
    return %c0_i32, %c0_i32_0 : i32, i32
  }
  func.func @transform_7(%arg0: i32) -> (i32, i32) {
    %c0_i32 = arith.constant 0 : i32
    %c0_i32_0 = arith.constant 0 : i32
    %c0_i32_1 = arith.constant 0 : i32
    return %c0_i32, %c0_i32_0 : i32, i32
  }
  func.func @transform_8(%arg0: i32) -> (i32, i32) {
    %c0_i32 = arith.constant 0 : i32
    %c0_i32_0 = arith.constant 0 : i32
    %c0_i32_1 = arith.constant 0 : i32
    return %c0_i32, %c0_i32_0 : i32, i32
  }
  func.func @transform_9(%arg0: i32) -> (i32, i32) {
    %c0_i32 = arith.constant 0 : i32
    %c0_i32_0 = arith.constant 0 : i32
    %c0_i32_1 = arith.constant 0 : i32
    return %c0_i32, %c0_i32_0 : i32, i32
  }
  func.func @transform_10(%arg0: i32) -> (i32, i32) {
    %c0_i32 = arith.constant 0 : i32
    %c0_i32_0 = arith.constant 0 : i32
    %c0_i32_1 = arith.constant 0 : i32
    return %c0_i32, %c0_i32_0 : i32, i32
  }
  func.func @transform_11(%arg0: i32) -> (i32, i32) {
    %c0_i32 = arith.constant 0 : i32
    %c0_i32_0 = arith.constant 0 : i32
    %c0_i32_1 = arith.constant 0 : i32
    return %c0_i32, %c0_i32_0 : i32, i32
  }
  func.func @transform_12(%arg0: i32) -> (i32, i32) {
    %c0_i32 = arith.constant 0 : i32
    %c0_i32_0 = arith.constant 0 : i32
    %c0_i32_1 = arith.constant 0 : i32
    return %c0_i32, %c0_i32_0 : i32, i32
  }
  func.func @transform_13(%arg0: i32) -> (i32, i32) {
    %c0_i32 = arith.constant 0 : i32
    %c0_i32_0 = arith.constant 0 : i32
    %c0_i32_1 = arith.constant 0 : i32
    return %c0_i32, %c0_i32_0 : i32, i32
  }
  func.func @transform_14(%arg0: i32) -> (i32, i32) {
    %c0_i32 = arith.constant 0 : i32
    %c0_i32_0 = arith.constant 0 : i32
    %c0_i32_1 = arith.constant 0 : i32
    return %c0_i32, %c0_i32_0 : i32, i32
  }
  func.func @transform_15(%arg0: i32) -> (i32, i32) {
    %c0_i32 = arith.constant 0 : i32
    %c0_i32_0 = arith.constant 0 : i32
    %c0_i32_1 = arith.constant 0 : i32
    return %c0_i32, %c0_i32_0 : i32, i32
  }
  func.func @transform_16(%arg0: i32) -> (i32, i32) {
    %c0_i32 = arith.constant 0 : i32
    %c0_i32_0 = arith.constant 0 : i32
    %c0_i32_1 = arith.constant 0 : i32
    return %c0_i32, %c0_i32_0 : i32, i32
  }
  func.func @transform_17(%arg0: i32) -> (i32, i32, i32) {
    %c0_i32 = arith.constant 0 : i32
    %c0_i32_0 = arith.constant 0 : i32
    %c0_i32_1 = arith.constant 0 : i32
    return %arg0, %c0_i32, %c0_i32_0 : i32, i32, i32
  }
}

module attributes {stable_mosaic.version = 11 : i64} {
  func.func @_ffn_mhsa_kernel(%arg0: i32, %arg1: memref<1x8x32xf32, #tpu.memory_space<vmem>>, %arg2: memref<1x32xf32, #tpu.memory_space<vmem>>, %arg3: memref<1x32xf32, #tpu.memory_space<vmem>>, %arg4: memref<32x64xbf16, #tpu.memory_space<vmem>>, %arg5: memref<1x64xf32, #tpu.memory_space<vmem>>, %arg6: memref<64x32xbf16, #tpu.memory_space<vmem>>, %arg7: memref<1x32xf32, #tpu.memory_space<vmem>>, %arg8: memref<1x32xf32, #tpu.memory_space<vmem>>, %arg9: memref<1x32xf32, #tpu.memory_space<vmem>>, %arg10: memref<32x32xbf16, #tpu.memory_space<vmem>>, %arg11: memref<1x32xf32, #tpu.memory_space<vmem>>, %arg12: memref<32x32xbf16, #tpu.memory_space<vmem>>, %arg13: memref<1x32xf32, #tpu.memory_space<vmem>>, %arg14: memref<32x32xbf16, #tpu.memory_space<vmem>>, %arg15: memref<1x32xf32, #tpu.memory_space<vmem>>, %arg16: memref<32x32xbf16, #tpu.memory_space<vmem>>, %arg17: memref<1x32xf32, #tpu.memory_space<vmem>>, %arg18: memref<1x8x32xf32, #tpu.memory_space<vmem>>) attributes {dimension_semantics = [#tpu.dimension_semantics<parallel>], iteration_bounds = array<i64: 2>, scalar_prefetch = 0 : i64, scratch_operands = 0 : i64, tpu.core_type = #tpu.core_type<tc>, window_params = [{transform_indices = @transform_0, window_bounds = array<i64: 1, 8, 32>}, {pipeline_mode = #tpu.pipeline_mode<synchronous>, transform_indices = @transform_1, window_bounds = array<i64: 1, 32>}, {pipeline_mode = #tpu.pipeline_mode<synchronous>, transform_indices = @transform_2, window_bounds = array<i64: 1, 32>}, {pipeline_mode = #tpu.pipeline_mode<synchronous>, transform_indices = @transform_3, window_bounds = array<i64: 32, 64>}, {pipeline_mode = #tpu.pipeline_mode<synchronous>, transform_indices = @transform_4, window_bounds = array<i64: 1, 64>}, {pipeline_mode = #tpu.pipeline_mode<synchronous>, transform_indices = @transform_5, window_bounds = array<i64: 64, 32>}, {pipeline_mode = #tpu.pipeline_mode<synchronous>, transform_indices = @transform_6, window_bounds = array<i64: 1, 32>}, {pipeline_mode = #tpu.pipeline_mode<synchronous>, transform_indices = @transform_7, window_bounds = array<i64: 1, 32>}, {pipeline_mode = #tpu.pipeline_mode<synchronous>, transform_indices = @transform_8, window_bounds = array<i64: 1, 32>}, {pipeline_mode = #tpu.pipeline_mode<synchronous>, transform_indices = @transform_9, window_bounds = array<i64: 32, 32>}, {pipeline_mode = #tpu.pipeline_mode<synchronous>, transform_indices = @transform_10, window_bounds = array<i64: 1, 32>}, {pipeline_mode = #tpu.pipeline_mode<synchronous>, transform_indices = @transform_11, window_bounds = array<i64: 32, 32>}, {pipeline_mode = #tpu.pipeline_mode<synchronous>, transform_indices = @transform_12, window_bounds = array<i64: 1, 32>}, {pipeline_mode = #tpu.pipeline_mode<synchronous>, transform_indices = @transform_13, window_bounds = array<i64: 32, 32>}, {pipeline_mode = #tpu.pipeline_mode<synchronous>, transform_indices = @transform_14, window_bounds = array<i64: 1, 32>}, {pipeline_mode = #tpu.pipeline_mode<synchronous>, transform_indices = @transform_15, window_bounds = array<i64: 32, 32>}, {pipeline_mode = #tpu.pipeline_mode<synchronous>, transform_indices = @transform_16, window_bounds = array<i64: 1, 32>}, {transform_indices = @transform_17, window_bounds = array<i64: 1, 8, 32>}]} {
    %c0 = arith.constant 0 : index
    %c0_0 = arith.constant 0 : index
    %c0_1 = arith.constant 0 : index
    %0 = vector.load %arg1[%c0, %c0_0, %c0_1] : memref<1x8x32xf32, #tpu.memory_space<vmem>>, vector<1x8x32xf32>
    %1 = vector.shape_cast %0 : vector<1x8x32xf32> to vector<8x32xf32>
    %c0_2 = arith.constant 0 : index
    %c0_3 = arith.constant 0 : index
    %2 = vector.load %arg2[%c0_2, %c0_3] : memref<1x32xf32, #tpu.memory_space<vmem>>, vector<1x32xf32>
    %c0_4 = arith.constant 0 : index
    %c0_5 = arith.constant 0 : index
    %3 = vector.load %arg3[%c0_4, %c0_5] : memref<1x32xf32, #tpu.memory_space<vmem>>, vector<1x32xf32>
    %c0_6 = arith.constant 0 : index
    %c0_7 = arith.constant 0 : index
    %4 = vector.load %arg4[%c0_6, %c0_7] : memref<32x64xbf16, #tpu.memory_space<vmem>>, vector<32x64xbf16>
    %c0_8 = arith.constant 0 : index
    %c0_9 = arith.constant 0 : index
    %5 = vector.load %arg5[%c0_8, %c0_9] : memref<1x64xf32, #tpu.memory_space<vmem>>, vector<1x64xf32>
    %c0_10 = arith.constant 0 : index
    %c0_11 = arith.constant 0 : index
    %6 = vector.load %arg6[%c0_10, %c0_11] : memref<64x32xbf16, #tpu.memory_space<vmem>>, vector<64x32xbf16>
    %c0_12 = arith.constant 0 : index
    %c0_13 = arith.constant 0 : index
    %7 = vector.load %arg7[%c0_12, %c0_13] : memref<1x32xf32, #tpu.memory_space<vmem>>, vector<1x32xf32>
    %cst = arith.constant dense<0.000000e+00> : vector<8xf32>
    %8 = vector.multi_reduction <add>, %1, %cst [1] : vector<8x32xf32> to vector<8xf32>
    %9 = vector.shape_cast %8 : vector<8xf32> to vector<8x1xf32>
    %cst_14 = arith.constant 3.200000e+01 : f32
    %10 = vector.broadcast %cst_14 : f32 to vector<8x1xf32>
    %11 = arith.divf %9, %10 : vector<8x1xf32>
    %12 = vector.broadcast %11 : vector<8x1xf32> to vector<8x32xf32>
    %13 = arith.subf %1, %12 : vector<8x32xf32>
    %14 = arith.mulf %13, %13 : vector<8x32xf32>
    %cst_15 = arith.constant dense<0.000000e+00> : vector<8xf32>
    %15 = vector.multi_reduction <add>, %14, %cst_15 [1] : vector<8x32xf32> to vector<8xf32>
    %16 = vector.shape_cast %15 : vector<8xf32> to vector<8x1xf32>
    %cst_16 = arith.constant 3.200000e+01 : f32
    %17 = vector.broadcast %cst_16 : f32 to vector<8x1xf32>
    %18 = arith.divf %16, %17 : vector<8x1xf32>
    %cst_17 = arith.constant 9.99999974E-6 : f32
    %19 = vector.broadcast %cst_17 : f32 to vector<8x1xf32>
    %20 = arith.addf %18, %19 : vector<8x1xf32>
    %21 = math.rsqrt %20 : vector<8x1xf32>
    %22 = vector.broadcast %21 : vector<8x1xf32> to vector<8x32xf32>
    %23 = arith.mulf %13, %22 : vector<8x32xf32>
    %24 = vector.broadcast %2 : vector<1x32xf32> to vector<8x32xf32>
    %25 = arith.mulf %23, %24 : vector<8x32xf32>
    %26 = vector.broadcast %3 : vector<1x32xf32> to vector<8x32xf32>
    %27 = arith.addf %25, %26 : vector<8x32xf32>
    %28 = arith.truncf %27 : vector<8x32xf32> to vector<8x32xbf16>
    %cst_18 = arith.constant dense<0.000000e+00> : vector<8x64xf32>
    %29 = tpu.matmul %28, %4, %cst_18 {dimension_numbers = #tpu.dot_dimension_numbers<[1], [0], [0], [1], [0, 0, 1, 1], [], []>} : vector<8x32xbf16>, vector<32x64xbf16>, vector<8x64xf32> -> vector<8x64xf32>
    %30 = vector.broadcast %5 : vector<1x64xf32> to vector<8x64xf32>
    %31 = arith.addf %29, %30 : vector<8x64xf32>
    %cst_19 = arith.constant 0.000000e+00 : f32
    %32 = vector.broadcast %cst_19 : f32 to vector<8x64xf32>
    %33 = arith.subf %32, %31 : vector<8x64xf32>
    %34 = math.exp %33 : vector<8x64xf32>
    %cst_20 = arith.constant 1.000000e+00 : f32
    %35 = vector.broadcast %cst_20 : f32 to vector<8x64xf32>
    %36 = arith.addf %35, %34 : vector<8x64xf32>
    %37 = tpu.reciprocal %36 {approx = true} : vector<8x64xf32> -> vector<8x64xf32>
    %38 = arith.mulf %31, %37 : vector<8x64xf32>
    %39 = arith.truncf %38 : vector<8x64xf32> to vector<8x64xbf16>
    %cst_21 = arith.constant dense<0.000000e+00> : vector<8x32xf32>
    %40 = tpu.matmul %39, %6, %cst_21 {dimension_numbers = #tpu.dot_dimension_numbers<[1], [0], [0], [1], [0, 0, 1, 1], [], []>} : vector<8x64xbf16>, vector<64x32xbf16>, vector<8x32xf32> -> vector<8x32xf32>
    %41 = vector.broadcast %7 : vector<1x32xf32> to vector<8x32xf32>
    %42 = arith.addf %40, %41 : vector<8x32xf32>
    %cst_22 = arith.constant 5.000000e-01 : f32
    %43 = vector.broadcast %cst_22 : f32 to vector<8x32xf32>
    %44 = arith.mulf %43, %42 : vector<8x32xf32>
    %45 = arith.addf %1, %44 : vector<8x32xf32>
    %c0_23 = arith.constant 0 : index
    %c0_24 = arith.constant 0 : index
    %46 = vector.load %arg8[%c0_23, %c0_24] : memref<1x32xf32, #tpu.memory_space<vmem>>, vector<1x32xf32>
    %c0_25 = arith.constant 0 : index
    %c0_26 = arith.constant 0 : index
    %47 = vector.load %arg9[%c0_25, %c0_26] : memref<1x32xf32, #tpu.memory_space<vmem>>, vector<1x32xf32>
    %cst_27 = arith.constant dense<0.000000e+00> : vector<8xf32>
    %48 = vector.multi_reduction <add>, %45, %cst_27 [1] : vector<8x32xf32> to vector<8xf32>
    %49 = vector.shape_cast %48 : vector<8xf32> to vector<8x1xf32>
    %cst_28 = arith.constant 3.200000e+01 : f32
    %50 = vector.broadcast %cst_28 : f32 to vector<8x1xf32>
    %51 = arith.divf %49, %50 : vector<8x1xf32>
    %52 = vector.broadcast %51 : vector<8x1xf32> to vector<8x32xf32>
    %53 = arith.subf %45, %52 : vector<8x32xf32>
    %54 = arith.mulf %53, %53 : vector<8x32xf32>
    %cst_29 = arith.constant dense<0.000000e+00> : vector<8xf32>
    %55 = vector.multi_reduction <add>, %54, %cst_29 [1] : vector<8x32xf32> to vector<8xf32>
    %56 = vector.shape_cast %55 : vector<8xf32> to vector<8x1xf32>
    %cst_30 = arith.constant 3.200000e+01 : f32
    %57 = vector.broadcast %cst_30 : f32 to vector<8x1xf32>
    %58 = arith.divf %56, %57 : vector<8x1xf32>
    %cst_31 = arith.constant 9.99999974E-6 : f32
    %59 = vector.broadcast %cst_31 : f32 to vector<8x1xf32>
    %60 = arith.addf %58, %59 : vector<8x1xf32>
    %61 = math.rsqrt %60 : vector<8x1xf32>
    %62 = vector.broadcast %61 : vector<8x1xf32> to vector<8x32xf32>
    %63 = arith.mulf %53, %62 : vector<8x32xf32>
    %64 = vector.broadcast %46 : vector<1x32xf32> to vector<8x32xf32>
    %65 = arith.mulf %63, %64 : vector<8x32xf32>
    %66 = vector.broadcast %47 : vector<1x32xf32> to vector<8x32xf32>
    %67 = arith.addf %65, %66 : vector<8x32xf32>
    %68 = arith.truncf %67 : vector<8x32xf32> to vector<8x32xbf16>
    %c0_32 = arith.constant 0 : index
    %c0_33 = arith.constant 0 : index
    %69 = vector.load %arg10[%c0_32, %c0_33] : memref<32x32xbf16, #tpu.memory_space<vmem>>, vector<32x32xbf16>
    %cst_34 = arith.constant dense<0.000000e+00> : vector<8x32xf32>
    %70 = tpu.matmul %68, %69, %cst_34 {dimension_numbers = #tpu.dot_dimension_numbers<[1], [0], [0], [1], [0, 0, 1, 1], [], []>} : vector<8x32xbf16>, vector<32x32xbf16>, vector<8x32xf32> -> vector<8x32xf32>
    %c0_35 = arith.constant 0 : index
    %c0_36 = arith.constant 0 : index
    %71 = vector.load %arg11[%c0_35, %c0_36] : memref<1x32xf32, #tpu.memory_space<vmem>>, vector<1x32xf32>
    %72 = vector.broadcast %71 : vector<1x32xf32> to vector<8x32xf32>
    %73 = arith.addf %70, %72 : vector<8x32xf32>
    %c0_37 = arith.constant 0 : index
    %c0_38 = arith.constant 0 : index
    %74 = vector.load %arg12[%c0_37, %c0_38] : memref<32x32xbf16, #tpu.memory_space<vmem>>, vector<32x32xbf16>
    %cst_39 = arith.constant dense<0.000000e+00> : vector<8x32xf32>
    %75 = tpu.matmul %68, %74, %cst_39 {dimension_numbers = #tpu.dot_dimension_numbers<[1], [0], [0], [1], [0, 0, 1, 1], [], []>} : vector<8x32xbf16>, vector<32x32xbf16>, vector<8x32xf32> -> vector<8x32xf32>
    %c0_40 = arith.constant 0 : index
    %c0_41 = arith.constant 0 : index
    %76 = vector.load %arg13[%c0_40, %c0_41] : memref<1x32xf32, #tpu.memory_space<vmem>>, vector<1x32xf32>
    %77 = vector.broadcast %76 : vector<1x32xf32> to vector<8x32xf32>
    %78 = arith.addf %75, %77 : vector<8x32xf32>
    %c0_42 = arith.constant 0 : index
    %c0_43 = arith.constant 0 : index
    %79 = vector.load %arg14[%c0_42, %c0_43] : memref<32x32xbf16, #tpu.memory_space<vmem>>, vector<32x32xbf16>
    %cst_44 = arith.constant dense<0.000000e+00> : vector<8x32xf32>
    %80 = tpu.matmul %68, %79, %cst_44 {dimension_numbers = #tpu.dot_dimension_numbers<[1], [0], [0], [1], [0, 0, 1, 1], [], []>} : vector<8x32xbf16>, vector<32x32xbf16>, vector<8x32xf32> -> vector<8x32xf32>
    %c0_45 = arith.constant 0 : index
    %c0_46 = arith.constant 0 : index
    %81 = vector.load %arg15[%c0_45, %c0_46] : memref<1x32xf32, #tpu.memory_space<vmem>>, vector<1x32xf32>
    %82 = vector.broadcast %81 : vector<1x32xf32> to vector<8x32xf32>
    %83 = arith.addf %80, %82 : vector<8x32xf32>
    %84 = vector.extract_strided_slice %73 {offsets = [0, 0], sizes = [8, 8], strides = [1, 1]} : vector<8x32xf32> to vector<8x8xf32>
    %85 = arith.truncf %84 : vector<8x8xf32> to vector<8x8xbf16>
    %86 = vector.extract_strided_slice %78 {offsets = [0, 0], sizes = [8, 8], strides = [1, 1]} : vector<8x32xf32> to vector<8x8xf32>
    %87 = arith.truncf %86 : vector<8x8xf32> to vector<8x8xbf16>
    %88 = vector.extract_strided_slice %83 {offsets = [0, 0], sizes = [8, 8], strides = [1, 1]} : vector<8x32xf32> to vector<8x8xf32>
    %89 = arith.truncf %88 : vector<8x8xf32> to vector<8x8xbf16>
    %cst_47 = arith.constant dense<0.000000e+00> : vector<8x8xf32>
    %90 = tpu.matmul %85, %87, %cst_47 {dimension_numbers = #tpu.dot_dimension_numbers<[1], [1], [0], [0], [0, 0, 1, 0], [], []>} : vector<8x8xbf16>, vector<8x8xbf16>, vector<8x8xf32> -> vector<8x8xf32>
    %cst_48 = arith.constant dense<0xFF800000> : vector<8xf32>
    %91 = vector.multi_reduction <maximumf>, %90, %cst_48 [1] : vector<8x8xf32> to vector<8xf32>
    %92 = vector.shape_cast %91 : vector<8xf32> to vector<8x1xf32>
    %93 = vector.broadcast %92 : vector<8x1xf32> to vector<8x8xf32>
    %94 = arith.subf %90, %93 : vector<8x8xf32>
    %95 = math.exp %94 : vector<8x8xf32>
    %cst_49 = arith.constant dense<0.000000e+00> : vector<8xf32>
    %96 = vector.multi_reduction <add>, %95, %cst_49 [1] : vector<8x8xf32> to vector<8xf32>
    %97 = vector.shape_cast %96 : vector<8xf32> to vector<8x1xf32>
    %98 = tpu.reciprocal %97 {approx = true} : vector<8x1xf32> -> vector<8x1xf32>
    %99 = vector.broadcast %98 : vector<8x1xf32> to vector<8x8xf32>
    %100 = arith.mulf %95, %99 : vector<8x8xf32>
    %101 = arith.truncf %100 : vector<8x8xf32> to vector<8x8xbf16>
    %cst_50 = arith.constant dense<0.000000e+00> : vector<8x8xf32>
    %102 = tpu.matmul %101, %89, %cst_50 {dimension_numbers = #tpu.dot_dimension_numbers<[1], [0], [0], [1], [0, 0, 1, 1], [], []>} : vector<8x8xbf16>, vector<8x8xbf16>, vector<8x8xf32> -> vector<8x8xf32>
    %103 = vector.extract_strided_slice %73 {offsets = [0, 8], sizes = [8, 8], strides = [1, 1]} : vector<8x32xf32> to vector<8x8xf32>
    %104 = arith.truncf %103 : vector<8x8xf32> to vector<8x8xbf16>
    %105 = vector.extract_strided_slice %78 {offsets = [0, 8], sizes = [8, 8], strides = [1, 1]} : vector<8x32xf32> to vector<8x8xf32>
    %106 = arith.truncf %105 : vector<8x8xf32> to vector<8x8xbf16>
    %107 = vector.extract_strided_slice %83 {offsets = [0, 8], sizes = [8, 8], strides = [1, 1]} : vector<8x32xf32> to vector<8x8xf32>
    %108 = arith.truncf %107 : vector<8x8xf32> to vector<8x8xbf16>
    %cst_51 = arith.constant dense<0.000000e+00> : vector<8x8xf32>
    %109 = tpu.matmul %104, %106, %cst_51 {dimension_numbers = #tpu.dot_dimension_numbers<[1], [1], [0], [0], [0, 0, 1, 0], [], []>} : vector<8x8xbf16>, vector<8x8xbf16>, vector<8x8xf32> -> vector<8x8xf32>
    %cst_52 = arith.constant dense<0xFF800000> : vector<8xf32>
    %110 = vector.multi_reduction <maximumf>, %109, %cst_52 [1] : vector<8x8xf32> to vector<8xf32>
    %111 = vector.shape_cast %110 : vector<8xf32> to vector<8x1xf32>
    %112 = vector.broadcast %111 : vector<8x1xf32> to vector<8x8xf32>
    %113 = arith.subf %109, %112 : vector<8x8xf32>
    %114 = math.exp %113 : vector<8x8xf32>
    %cst_53 = arith.constant dense<0.000000e+00> : vector<8xf32>
    %115 = vector.multi_reduction <add>, %114, %cst_53 [1] : vector<8x8xf32> to vector<8xf32>
    %116 = vector.shape_cast %115 : vector<8xf32> to vector<8x1xf32>
    %117 = tpu.reciprocal %116 {approx = true} : vector<8x1xf32> -> vector<8x1xf32>
    %118 = vector.broadcast %117 : vector<8x1xf32> to vector<8x8xf32>
    %119 = arith.mulf %114, %118 : vector<8x8xf32>
    %120 = arith.truncf %119 : vector<8x8xf32> to vector<8x8xbf16>
    %cst_54 = arith.constant dense<0.000000e+00> : vector<8x8xf32>
    %121 = tpu.matmul %120, %108, %cst_54 {dimension_numbers = #tpu.dot_dimension_numbers<[1], [0], [0], [1], [0, 0, 1, 1], [], []>} : vector<8x8xbf16>, vector<8x8xbf16>, vector<8x8xf32> -> vector<8x8xf32>
    %122 = vector.extract_strided_slice %73 {offsets = [0, 16], sizes = [8, 8], strides = [1, 1]} : vector<8x32xf32> to vector<8x8xf32>
    %123 = arith.truncf %122 : vector<8x8xf32> to vector<8x8xbf16>
    %124 = vector.extract_strided_slice %78 {offsets = [0, 16], sizes = [8, 8], strides = [1, 1]} : vector<8x32xf32> to vector<8x8xf32>
    %125 = arith.truncf %124 : vector<8x8xf32> to vector<8x8xbf16>
    %126 = vector.extract_strided_slice %83 {offsets = [0, 16], sizes = [8, 8], strides = [1, 1]} : vector<8x32xf32> to vector<8x8xf32>
    %127 = arith.truncf %126 : vector<8x8xf32> to vector<8x8xbf16>
    %cst_55 = arith.constant dense<0.000000e+00> : vector<8x8xf32>
    %128 = tpu.matmul %123, %125, %cst_55 {dimension_numbers = #tpu.dot_dimension_numbers<[1], [1], [0], [0], [0, 0, 1, 0], [], []>} : vector<8x8xbf16>, vector<8x8xbf16>, vector<8x8xf32> -> vector<8x8xf32>
    %cst_56 = arith.constant dense<0xFF800000> : vector<8xf32>
    %129 = vector.multi_reduction <maximumf>, %128, %cst_56 [1] : vector<8x8xf32> to vector<8xf32>
    %130 = vector.shape_cast %129 : vector<8xf32> to vector<8x1xf32>
    %131 = vector.broadcast %130 : vector<8x1xf32> to vector<8x8xf32>
    %132 = arith.subf %128, %131 : vector<8x8xf32>
    %133 = math.exp %132 : vector<8x8xf32>
    %cst_57 = arith.constant dense<0.000000e+00> : vector<8xf32>
    %134 = vector.multi_reduction <add>, %133, %cst_57 [1] : vector<8x8xf32> to vector<8xf32>
    %135 = vector.shape_cast %134 : vector<8xf32> to vector<8x1xf32>
    %136 = tpu.reciprocal %135 {approx = true} : vector<8x1xf32> -> vector<8x1xf32>
    %137 = vector.broadcast %136 : vector<8x1xf32> to vector<8x8xf32>
    %138 = arith.mulf %133, %137 : vector<8x8xf32>
    %139 = arith.truncf %138 : vector<8x8xf32> to vector<8x8xbf16>
    %cst_58 = arith.constant dense<0.000000e+00> : vector<8x8xf32>
    %140 = tpu.matmul %139, %127, %cst_58 {dimension_numbers = #tpu.dot_dimension_numbers<[1], [0], [0], [1], [0, 0, 1, 1], [], []>} : vector<8x8xbf16>, vector<8x8xbf16>, vector<8x8xf32> -> vector<8x8xf32>
    %141 = vector.extract_strided_slice %73 {offsets = [0, 24], sizes = [8, 8], strides = [1, 1]} : vector<8x32xf32> to vector<8x8xf32>
    %142 = arith.truncf %141 : vector<8x8xf32> to vector<8x8xbf16>
    %143 = vector.extract_strided_slice %78 {offsets = [0, 24], sizes = [8, 8], strides = [1, 1]} : vector<8x32xf32> to vector<8x8xf32>
    %144 = arith.truncf %143 : vector<8x8xf32> to vector<8x8xbf16>
    %145 = vector.extract_strided_slice %83 {offsets = [0, 24], sizes = [8, 8], strides = [1, 1]} : vector<8x32xf32> to vector<8x8xf32>
    %146 = arith.truncf %145 : vector<8x8xf32> to vector<8x8xbf16>
    %cst_59 = arith.constant dense<0.000000e+00> : vector<8x8xf32>
    %147 = tpu.matmul %142, %144, %cst_59 {dimension_numbers = #tpu.dot_dimension_numbers<[1], [1], [0], [0], [0, 0, 1, 0], [], []>} : vector<8x8xbf16>, vector<8x8xbf16>, vector<8x8xf32> -> vector<8x8xf32>
    %cst_60 = arith.constant dense<0xFF800000> : vector<8xf32>
    %148 = vector.multi_reduction <maximumf>, %147, %cst_60 [1] : vector<8x8xf32> to vector<8xf32>
    %149 = vector.shape_cast %148 : vector<8xf32> to vector<8x1xf32>
    %150 = vector.broadcast %149 : vector<8x1xf32> to vector<8x8xf32>
    %151 = arith.subf %147, %150 : vector<8x8xf32>
    %152 = math.exp %151 : vector<8x8xf32>
    %cst_61 = arith.constant dense<0.000000e+00> : vector<8xf32>
    %153 = vector.multi_reduction <add>, %152, %cst_61 [1] : vector<8x8xf32> to vector<8xf32>
    %154 = vector.shape_cast %153 : vector<8xf32> to vector<8x1xf32>
    %155 = tpu.reciprocal %154 {approx = true} : vector<8x1xf32> -> vector<8x1xf32>
    %156 = vector.broadcast %155 : vector<8x1xf32> to vector<8x8xf32>
    %157 = arith.mulf %152, %156 : vector<8x8xf32>
    %158 = arith.truncf %157 : vector<8x8xf32> to vector<8x8xbf16>
    %cst_62 = arith.constant dense<0.000000e+00> : vector<8x8xf32>
    %159 = tpu.matmul %158, %146, %cst_62 {dimension_numbers = #tpu.dot_dimension_numbers<[1], [0], [0], [1], [0, 0, 1, 1], [], []>} : vector<8x8xbf16>, vector<8x8xbf16>, vector<8x8xf32> -> vector<8x8xf32>
    %160 = tpu.concatenate %102, %121, %140, %159 in 1 : vector<8x8xf32>, vector<8x8xf32>, vector<8x8xf32>, vector<8x8xf32> -> vector<8x32xf32>
    %c0_63 = arith.constant 0 : index
    %c0_64 = arith.constant 0 : index
    %161 = vector.load %arg16[%c0_63, %c0_64] : memref<32x32xbf16, #tpu.memory_space<vmem>>, vector<32x32xbf16>
    %162 = arith.truncf %160 : vector<8x32xf32> to vector<8x32xbf16>
    %cst_65 = arith.constant dense<0.000000e+00> : vector<8x32xf32>
    %163 = tpu.matmul %162, %161, %cst_65 {dimension_numbers = #tpu.dot_dimension_numbers<[1], [0], [0], [1], [0, 0, 1, 1], [], []>} : vector<8x32xbf16>, vector<32x32xbf16>, vector<8x32xf32> -> vector<8x32xf32>
    %c0_66 = arith.constant 0 : index
    %c0_67 = arith.constant 0 : index
    %164 = vector.load %arg17[%c0_66, %c0_67] : memref<1x32xf32, #tpu.memory_space<vmem>>, vector<1x32xf32>
    %165 = vector.broadcast %164 : vector<1x32xf32> to vector<8x32xf32>
    %166 = arith.addf %163, %165 : vector<8x32xf32>
    %cst_68 = arith.constant 5.000000e-01 : f32
    %167 = vector.broadcast %cst_68 : f32 to vector<8x32xf32>
    %168 = arith.mulf %167, %166 : vector<8x32xf32>
    %169 = arith.addf %45, %168 : vector<8x32xf32>
    %c0_69 = arith.constant 0 : index
    %c0_70 = arith.constant 0 : index
    %c0_71 = arith.constant 0 : index
    %170 = vector.load %arg18[%c0_69, %c0_70, %c0_71] : memref<1x8x32xf32, #tpu.memory_space<vmem>>, vector<1x8x32xf32>
    %171 = vector.shape_cast %170 : vector<1x8x32xf32> to vector<8x32xf32>
    %172 = vector.shape_cast %169 : vector<8x32xf32> to vector<1x8x32xf32>
    tpu.vector_store %arg18[%c0_69, %c0_70, %c0_71], %172 {strides = array<i32>} : memref<1x8x32xf32, #tpu.memory_space<vmem>>, vector<1x8x32xf32>,
    return
  }
  func.func @transform_0(%arg0: i32) -> (i32, i32, i32) {
    %c0_i32 = arith.constant 0 : i32
    %c0_i32_0 = arith.constant 0 : i32
    %c0_i32_1 = arith.constant 0 : i32
    return %arg0, %c0_i32, %c0_i32_0 : i32, i32, i32
  }
  func.func @transform_1(%arg0: i32) -> (i32, i32) {
    %c0_i32 = arith.constant 0 : i32
    %c0_i32_0 = arith.constant 0 : i32
    %c0_i32_1 = arith.constant 0 : i32
    return %c0_i32, %c0_i32_0 : i32, i32
  }
  func.func @transform_2(%arg0: i32) -> (i32, i32) {
    %c0_i32 = arith.constant 0 : i32
    %c0_i32_0 = arith.constant 0 : i32
    %c0_i32_1 = arith.constant 0 : i32
    return %c0_i32, %c0_i32_0 : i32, i32
  }
  func.func @transform_3(%arg0: i32) -> (i32, i32) {
    %c0_i32 = arith.constant 0 : i32
    %c0_i32_0 = arith.constant 0 : i32
    %c0_i32_1 = arith.constant 0 : i32
    return %c0_i32, %c0_i32_0 : i32, i32
  }
  func.func @transform_4(%arg0: i32) -> (i32, i32) {
    %c0_i32 = arith.constant 0 : i32
    %c0_i32_0 = arith.constant 0 : i32
    %c0_i32_1 = arith.constant 0 : i32
    return %c0_i32, %c0_i32_0 : i32, i32
  }
  func.func @transform_5(%arg0: i32) -> (i32, i32) {
    %c0_i32 = arith.constant 0 : i32
    %c0_i32_0 = arith.constant 0 : i32
    %c0_i32_1 = arith.constant 0 : i32
    return %c0_i32, %c0_i32_0 : i32, i32
  }
  func.func @transform_6(%arg0: i32) -> (i32, i32) {
    %c0_i32 = arith.constant 0 : i32
    %c0_i32_0 = arith.constant 0 : i32
    %c0_i32_1 = arith.constant 0 : i32
    return %c0_i32, %c0_i32_0 : i32, i32
  }
  func.func @transform_7(%arg0: i32) -> (i32, i32) {
    %c0_i32 = arith.constant 0 : i32
    %c0_i32_0 = arith.constant 0 : i32
    %c0_i32_1 = arith.constant 0 : i32
    return %c0_i32, %c0_i32_0 : i32, i32
  }
  func.func @transform_8(%arg0: i32) -> (i32, i32) {
    %c0_i32 = arith.constant 0 : i32
    %c0_i32_0 = arith.constant 0 : i32
    %c0_i32_1 = arith.constant 0 : i32
    return %c0_i32, %c0_i32_0 : i32, i32
  }
  func.func @transform_9(%arg0: i32) -> (i32, i32) {
    %c0_i32 = arith.constant 0 : i32
    %c0_i32_0 = arith.constant 0 : i32
    %c0_i32_1 = arith.constant 0 : i32
    return %c0_i32, %c0_i32_0 : i32, i32
  }
  func.func @transform_10(%arg0: i32) -> (i32, i32) {
    %c0_i32 = arith.constant 0 : i32
    %c0_i32_0 = arith.constant 0 : i32
    %c0_i32_1 = arith.constant 0 : i32
    return %c0_i32, %c0_i32_0 : i32, i32
  }
  func.func @transform_11(%arg0: i32) -> (i32, i32) {
    %c0_i32 = arith.constant 0 : i32
    %c0_i32_0 = arith.constant 0 : i32
    %c0_i32_1 = arith.constant 0 : i32
    return %c0_i32, %c0_i32_0 : i32, i32
  }
  func.func @transform_12(%arg0: i32) -> (i32, i32) {
    %c0_i32 = arith.constant 0 : i32
    %c0_i32_0 = arith.constant 0 : i32
    %c0_i32_1 = arith.constant 0 : i32
    return %c0_i32, %c0_i32_0 : i32, i32
  }
  func.func @transform_13(%arg0: i32) -> (i32, i32) {
    %c0_i32 = arith.constant 0 : i32
    %c0_i32_0 = arith.constant 0 : i32
    %c0_i32_1 = arith.constant 0 : i32
    return %c0_i32, %c0_i32_0 : i32, i32
  }
  func.func @transform_14(%arg0: i32) -> (i32, i32) {
    %c0_i32 = arith.constant 0 : i32
    %c0_i32_0 = arith.constant 0 : i32
    %c0_i32_1 = arith.constant 0 : i32
    return %c0_i32, %c0_i32_0 : i32, i32
  }
  func.func @transform_15(%arg0: i32) -> (i32, i32) {
    %c0_i32 = arith.constant 0 : i32
    %c0_i32_0 = arith.constant 0 : i32
    %c0_i32_1 = arith.constant 0 : i32
    return %c0_i32, %c0_i32_0 : i32, i32
  }
  func.func @transform_16(%arg0: i32) -> (i32, i32) {
    %c0_i32 = arith.constant 0 : i32
    %c0_i32_0 = arith.constant 0 : i32
    %c0_i32_1 = arith.constant 0 : i32
    return %c0_i32, %c0_i32_0 : i32, i32
  }
  func.func @transform_17(%arg0: i32) -> (i32, i32, i32) {
    %c0_i32 = arith.constant 0 : i32
    %c0_i32_0 = arith.constant 0 : i32
    %c0_i32_1 = arith.constant 0 : i32
    return %arg0, %c0_i32, %c0_i32_0 : i32, i32, i32
  }
}

</mosaic_0001>

<bundles_post_ra>
// kernel: tpu_custom_call.1
= control target key start
LH: loop header
LB: loop body
LE: loop exit
PB: predicated region body
PF: predicated region fallthrough
CT: control target
= control target key end

     0   :  { %s2983_s0 = inlined_call_operand.vmem [shape: f32[2,8,32], index: 0, kind: input, shape index: {}]   ;;  %s2984_s1 = inlined_call_operand.vmem [shape: f32[1,32], index: 1, kind: input, shape index: {}]   ;;  %s2985_s2 = inlined_call_operand.hbm [shape: f32[1,32], index: 2, kind: input, shape index: {}]   ;;  %s2986_s3 = inlined_call_operand.vmem [shape: bf16[32,64], index: 3, kind: input, shape index: {}]   ;;  %s2987_s4 = inlined_call_operand.hbm [shape: f32[1,64], index: 4, kind: input, shape index: {}]   ;;  %s2988_s5 = inlined_call_operand.vmem [shape: bf16[64,32], index: 5, kind: input, shape index: {}]   ;;  %s2989_s6 = inlined_call_operand.hbm [shape: f32[1,32], index: 6, kind: input, shape index: {}]   ;;  %s2990_s7 = inlined_call_operand.hbm [shape: f32[1,32], index: 7, kind: input, shape index: {}]   ;;  %s2991_s8 = inlined_call_operand.hbm [shape: f32[1,32], index: 8, kind: input, shape index: {}]   ;;  %s2992_s9 = inlined_call_operand.vmem [shape: bf16[32,32], index: 9, kind: input, shape index: {}]   ;;  %s2993_s10 = inlined_call_operand.hbm [shape: f32[1,32], index: 10, kind: input, shape index: {}]   ;;  %s2994_s11 = inlined_call_operand.vmem [shape: bf16[32,32], index: 11, kind: input, shape index: {}]   ;;  %s2995_s12 = inlined_call_operand.hbm [shape: f32[1,32], index: 12, kind: input, shape index: {}]   ;;  %s2996_s13 = inlined_call_operand.vmem [shape: bf16[32,32], index: 13, kind: input, shape index: {}]   ;;  %s2997_s14 = inlined_call_operand.vmem [shape: f32[1,32], index: 14, kind: input, shape index: {}]   ;;  %s2998_s15 = inlined_call_operand.hbm [shape: bf16[32,32], index: 15, kind: input, shape index: {}]   ;;  %s2999_s16 = inlined_call_operand.vmem [shape: f32[1,32], index: 16, kind: input, shape index: {}]   ;;  %s3000_s17 = inlined_call_operand.hbm [shape: f32[2,8,32], index: 17, kind: output, shape index: {}]  }
   0x1   :  { %3013 = sst [smem:[#allocation30_spill]] %s2983_s0 }
   0x2   :  { %3014 = sst [smem:[#allocation31_spill]] %s2984_s1 }
   0x3   :  { %3015 = sst [smem:[#allocation32_spill]] %s2987_s4 }
   0x4   :  { %3016 = sst [smem:[#allocation33_spill]] %s2999_s16 }
   0x5   :  { %3017 = sst [smem:[#allocation34_spill]] %s3000_s17 }
   0x6   :  { %22 = vsyncpa [#allocation3], 0 }
   0x7   :  { %23 = vsyncpa [#allocation6], 0 }
   0x8   :  { %24 = vsyncpa [#allocation9], 0 }
   0x9   :  { %25 = vsyncpa [#allocation12], 0 }
   0xa   :  { %26 = vsyncpa [#allocation15], 0 }
   0xb   :  { %27 = vsyncpa [#allocation4], 0 }
   0xc   :  { %29 = vsyncpa [#allocation4 + $0x1], 0  ;;  %s2527_s24 = smov 0   ;;  %s2529_s25 = smov 0  }
   0xd   :  { %s2531_s26 = smov 0   ;;  %s2533_s27 = smov 0  }
   0xe LB: > { %3018 = sst [smem:[#allocation23_spill]] %s2404_s24  ;;  %s2548_s28 = sadd.s32 4294967295, %s2416_s27   ;;  %s2416_s27 = sphi %s2533_s27, %s3052_s27   ;;  %s2412_s26 = sphi %s2531_s26, %s3054_s26   ;;  %s2408_s25 = sphi %s2529_s25, %s3056_s25   ;;  %s2404_s24 = sphi %s2527_s24, %s3055_s24  }
   0xf   : > { %3019 = sst [smem:[#allocation24_spill]] %s2412_s26  ;;  %s1742_s29 = sadd.s32 4294967294, %s2416_s27  }
  0x10   : > { %3020 = sst [smem:[#allocation25_spill]] %s2416_s27  ;;  %s2552_s0 = sadd.s32 1, %s2416_s27  }
  0x11   : > { %3021 = sst [smem:[#allocation26_spill]] %s2552_s0  ;;  %s404_s30 = sadd.s32 1, %s2412_s26 }
  0x12   : > { %s401_s18 = ssub.s32 %s2416_s27, %s2552_s0  ;;  %p414_p0 = scmp.ne.s32.totalorder %s2412_s26, %s2408_s25 }
  0x13   : > { %p402_p1 = scmp.eq.s32.totalorder %s401_s18, 0  ;;  %p415_p2 = scmp.eq.s32.totalorder %s2548_s28, 1 }
  0x14   : > { %p420_p3 = scmp.ne.s32.totalorder %s2408_s25, %s2404_s24  ;;  %p421_p4 = scmp.eq.s32.totalorder %s1742_s29, 1 }
  0x15   : > { %s2563_s19 = scalar_select %p402_p1, %s2412_s26, %s404_s30  }
  0x16   : > { %p2565_p5 = por %p415_p2, %p414_p0  ;;  %p2569_p6 = por %p421_p4, %p420_p3 }
  0x17   : > { %3022 = sst [smem:[#allocation27_spill]] %s2563_s19  ;;  %p1743_p7 = scmp.ge.s32.totalorder %s2416_s27, 1 }
  0x18   : > { %s3023_s1 = scalar_select %p2565_p5, 1, 0 }
  0x19   : > { %s3025_s20 = scalar_select %p2569_p6, 1, 0 }
  0x1a   : > { %3024 = sst [smem:[#allocation28_spill]] %s3023_s1  ;;  %p428_p8 = scmp.lt.s32.totalorder %s2416_s27, 3 }
  0x1b   : > { %3026 = sst [smem:[#allocation29_spill]] %s3025_s20  ;;  %p3008_p9 = scmp.eq.s32.totalorder %s2548_s28, 0 }
  0x1c   : > { %p2576_p10 = pnand %p1743_p7, %p428_p8  ;;  %s2418_s22 = smov [#allocation5]  }
  0x1d   : > { %s458_s23 = sshll.u32 %s2418_s22, 4  ;;  %s2419_s29 = smov [#allocation8]   ;;  %s459_s23 = int_to_ptr.vmem [resolvable:$true] %s458_s23 }
  0x1e   : > { %s3027_s21 = scalar_select %p2576_p10, 1, 0 }
  0x1f   : > { %p1976_p11 = pneg %p2576_p10  ;;  %s483_s30 = sshll.u32 %s2419_s29, 4  ;;  %s2588_s30 = int_to_ptr.vmem [resolvable:$true] %s483_s30 }
  0x20   : > { %s2420_s19 = smov [#allocation11]   ;;  %s3029_s4 = sld [smem:[#allocation32_spill]] }
  0x21   : > { %p2584_p12 = pnand %p3008_p9, %p1976_p11  ;;  %s508_s26 = sshll.u32 %s2420_s19, 4  ;;  %s2590_s26 = int_to_ptr.vmem [resolvable:$true] %s508_s26 }
  0x23   : > { %p2600_p0 = pneg %p2584_p12 }
  0x26   : > { %s2110_s22 = scalar_lea.hbm %s3029_s4, 16 }
  0x27   : > { %p2111_p13 = scmp.ne.s32.totalorder %s3029_s4, %s2110_s22  ;;  %p2117_p3 = scmp.lt.u32.totalorder %s2110_s22, %s3029_s4 }
  0x29   : > { %p2113_p1 = pnand %p2600_p0, %p2111_p13 }
  0x2b   : > { %p2114_p2 = pneg %p2113_p1 }
  0x2d   : > { %p2119_p4 = pnand %p2117_p3, %p2114_p2 }
  0x2f   : > { %2122 = shalt.err (!%p2119_p4)
}
  0x30   : > { %s2123_s0 = scalar_lea.vmem %s459_s23, 16  ;;  %s2130_s24 = scalar_lea.vmem %s459_s23, 32 }
  0x31   : > { %p2124_p7 = scmp.ne.s32.totalorder %s459_s23, %s2123_s0  ;;  %p2131_p9 = scmp.lt.s32.totalorder %s459_s23, %s459_s23 }
  0x32   : > { %p2132_p6 = scmp.lt.s32.totalorder %s2130_s24, %s2123_s0 }
  0x33   : > { %p2126_p8 = pnand %p2124_p7, %p2600_p0 }
  0x34   : > { %p2133_p5 = por %p2132_p6, %p2131_p9 }
  0x35   : > { %p2127_p11 = pneg %p2126_p8 }
  0x37   : > { %p2134_p10 = pnand %p2133_p5, %p2127_p11 }
  0x39   : > { %2137 = shalt.err (!%p2134_p10)
}
  0x3a   : > { %1982 = dma.hbm_to_vmem [thread:$0]  (!%p2584_p12), %s3029_s4, 16, %s459_s23, [#allocation6]  }
  0x3b   : > { %s2138_s19 = scalar_lea.hbm %s2990_s7, 16 }
  0x3c   : > { %p2139_p13 = scmp.ne.s32.totalorder %s2990_s7, %s2138_s19  ;;  %p2145_p5 = scmp.lt.u32.totalorder %s2138_s19, %s2990_s7 }
  0x3e   : > { %p2141_p1 = pnand %p2139_p13, %p2600_p0 }
  0x40   : > { %p2142_p6 = pneg %p2141_p1 }
  0x42   : > { %p2147_p9 = pnand %p2145_p5, %p2142_p6 }
  0x44   : > { %2150 = shalt.err (!%p2147_p9)
}
  0x45   : > { %s2151_s23 = scalar_lea.vmem %s2588_s30, 16  ;;  %s2158_s16 = scalar_lea.vmem %s2588_s30, 32 }
  0x46   : > { %p2152_p10 = scmp.ne.s32.totalorder %s2588_s30, %s2151_s23  ;;  %p2159_p4 = scmp.lt.s32.totalorder %s2588_s30, %s2588_s30 }
  0x47   : > { %p2160_p7 = scmp.lt.s32.totalorder %s2158_s16, %s2151_s23 }
  0x48   : > { %p2154_p2 = pnand %p2152_p10, %p2600_p0 }
  0x49   : > { %p2161_p8 = por %p2160_p7, %p2159_p4 }
  0x4a   : > { %p2155_p3 = pneg %p2154_p2 }
  0x4c   : > { %p2162_p11 = pnand %p2161_p8, %p2155_p3 }
  0x4e   : > { %2165 = shalt.err (!%p2162_p11)
}
  0x4f   : > { %1988 = dma.hbm_to_vmem [thread:$0]  (!%p2584_p12), %s2990_s7, 16, %s2588_s30, [#allocation9]  }
  0x50   : > { %s2166_s22 = scalar_lea.hbm %s2993_s10, 16 }
  0x51   : > { %p2167_p13 = scmp.ne.s32.totalorder %s2993_s10, %s2166_s22  ;;  %p2173_p5 = scmp.lt.u32.totalorder %s2166_s22, %s2993_s10 }
  0x53   : > { %p2169_p1 = pnand %p2167_p13, %p2600_p0 }
  0x55   : > { %p2170_p6 = pneg %p2169_p1 }
  0x57   : > { %p2175_p9 = pnand %p2173_p5, %p2170_p6 }
  0x59   : > { %2178 = shalt.err (!%p2175_p9)
}
  0x5a   : > { %s2179_s30 = scalar_lea.vmem %s2590_s26, 16  ;;  %s2186_s16 = scalar_lea.vmem %s2590_s26, 32 }
  0x5b   : > { %p2180_p10 = scmp.ne.s32.totalorder %s2590_s26, %s2179_s30  ;;  %p2187_p4 = scmp.lt.s32.totalorder %s2590_s26, %s2590_s26 }
  0x5c   : > { %p2188_p7 = scmp.lt.s32.totalorder %s2186_s16, %s2179_s30 }
  0x5d   : > { %p2182_p2 = pnand %p2180_p10, %p2600_p0 }
  0x5e   : > { %p2189_p8 = por %p2188_p7, %p2187_p4 }
  0x5f   : > { %p2183_p3 = pneg %p2182_p2 }
  0x61   : > { %p2190_p11 = pnand %p2189_p8, %p2183_p3 }
  0x63   : > { %2193 = shalt.err (!%p2190_p11)
}
  0x64   : > { %1994 = dma.hbm_to_vmem [thread:$0]  (!%p2584_p12), %s2993_s10, 16, %s2590_s26, [#allocation12]  }
  0x65   : > { %s2421_s20 = smov [#allocation2]   ;;  %s2422_s22 = smov [#allocation7]  }
  0x66   : > { %s444_s17 = sshll.u32 %s2421_s20, 4  ;;  %s472_s19 = sshll.u32 %s2422_s22, 4  ;;  %s445_s17 = int_to_ptr.vmem [resolvable:$true] %s444_s17  ;;  %s473_s19 = int_to_ptr.vmem [resolvable:$true] %s472_s19 }
  0x67   : > { %s2194_s23 = scalar_lea.hbm %s2985_s2, 16 }
  0x68   : > { %p2195_p13 = scmp.ne.s32.totalorder %s2985_s2, %s2194_s23  ;;  %p2201_p5 = scmp.lt.u32.totalorder %s2194_s23, %s2985_s2 }
  0x6a   : > { %p2197_p1 = pnand %p2195_p13, %p2600_p0 }
  0x6c   : > { %p2198_p6 = pneg %p2197_p1 }
  0x6e   : > { %p2203_p9 = pnand %p2201_p5, %p2198_p6 }
  0x70   : > { %2206 = shalt.err (!%p2203_p9)
}
  0x71   : > { %s2207_s26 = scalar_lea.vmem %s445_s17, 16  ;;  %s2214_s27 = scalar_lea.vmem %s445_s17, 32 }
  0x72   : > { %p2208_p10 = scmp.ne.s32.totalorder %s445_s17, %s2207_s26  ;;  %p2215_p4 = scmp.lt.s32.totalorder %s445_s17, %s445_s17 }
  0x73   : > { %p2216_p7 = scmp.lt.s32.totalorder %s2214_s27, %s2207_s26 }
  0x74   : > { %p2210_p2 = pnand %p2208_p10, %p2600_p0 }
  0x75   : > { %p2217_p8 = por %p2216_p7, %p2215_p4 }
  0x76   : > { %p2211_p3 = pneg %p2210_p2 }
  0x78   : > { %p2218_p11 = pnand %p2217_p8, %p2211_p3 }
  0x7a   : > { %2221 = shalt.err (!%p2218_p11)
}
  0x7b   : > { %1979 = dma.hbm_to_vmem [thread:$0]  (!%p2584_p12), %s2985_s2, 16, %s445_s17, [#allocation3]  }
  0x7c   : > { %s2222_s24 = scalar_lea.hbm %s2989_s6, 16 }
  0x7d   : > { %p2223_p13 = scmp.ne.s32.totalorder %s2989_s6, %s2222_s24  ;;  %p2229_p5 = scmp.lt.u32.totalorder %s2222_s24, %s2989_s6 }
  0x7f   : > { %p2225_p1 = pnand %p2223_p13, %p2600_p0 }
  0x81   : > { %p2226_p6 = pneg %p2225_p1 }
  0x83   : > { %p2231_p9 = pnand %p2229_p5, %p2226_p6 }
  0x85   : > { %2234 = shalt.err (!%p2231_p9)
}
  0x86   : > { %s2235_s26 = scalar_lea.vmem %s473_s19, 16  ;;  %s2242_s17 = scalar_lea.vmem %s473_s19, 32 }
  0x87   : > { %p2236_p10 = scmp.ne.s32.totalorder %s473_s19, %s2235_s26  ;;  %p2243_p4 = scmp.lt.s32.totalorder %s473_s19, %s473_s19 }
  0x88   : > { %p2244_p7 = scmp.lt.s32.totalorder %s2242_s17, %s2235_s26 }
  0x89   : > { %p2238_p2 = pnand %p2236_p10, %p2600_p0 }
  0x8a   : > { %p2245_p8 = por %p2244_p7, %p2243_p4 }
  0x8b   : > { %p2239_p3 = pneg %p2238_p2 }
  0x8d   : > { %p2246_p11 = pnand %p2245_p8, %p2239_p3 }
  0x8f   : > { %2249 = shalt.err (!%p2246_p11)
}
  0x90   : > { %1985 = dma.hbm_to_vmem [thread:$0]  (!%p2584_p12), %s2989_s6, 16, %s473_s19, [#allocation6]  }
  0x91   : > { %s2423_s22 = smov [#allocation10]   ;;  %s2424_s0 = smov [#allocation13]  }
  0x92   : > { %s494_s4 = sshll.u32 %s2423_s22, 4  ;;  %s522_s24 = sshll.u32 %s2424_s0, 4  ;;  %s495_s4 = int_to_ptr.vmem [resolvable:$true] %s494_s4  ;;  %s523_s24 = int_to_ptr.vmem [resolvable:$true] %s522_s24 }
  0x93   : > { %s2250_s16 = scalar_lea.hbm %s2991_s8, 16 }
  0x94   : > { %p2251_p13 = scmp.ne.s32.totalorder %s2991_s8, %s2250_s16  ;;  %p2257_p5 = scmp.lt.u32.totalorder %s2250_s16, %s2991_s8 }
  0x96   : > { %p2253_p1 = pnand %p2251_p13, %p2600_p0 }
  0x98   : > { %p2254_p6 = pneg %p2253_p1 }
  0x9a   : > { %p2259_p9 = pnand %p2257_p5, %p2254_p6 }
  0x9c   : > { %2262 = shalt.err (!%p2259_p9)
}
  0x9d   : > { %s2263_s19 = scalar_lea.vmem %s495_s4, 16  ;;  %s2270_s20 = scalar_lea.vmem %s495_s4, 32 }
  0x9e   : > { %p2264_p10 = scmp.ne.s32.totalorder %s495_s4, %s2263_s19  ;;  %p2271_p4 = scmp.lt.s32.totalorder %s495_s4, %s495_s4 }
  0x9f   : > { %p2272_p7 = scmp.lt.s32.totalorder %s2270_s20, %s2263_s19 }
  0xa0   : > { %p2266_p2 = pnand %p2264_p10, %p2600_p0 }
  0xa1   : > { %p2273_p8 = por %p2272_p7, %p2271_p4 }
  0xa2   : > { %p2267_p3 = pneg %p2266_p2 }
  0xa4   : > { %p2274_p11 = pnand %p2273_p8, %p2267_p3 }
  0xa6   : > { %2277 = shalt.err (!%p2274_p11)
}
  0xa7   : > { %1991 = dma.hbm_to_vmem [thread:$0]  (!%p2584_p12), %s2991_s8, 16, %s495_s4, [#allocation9]  }
  0xa8   : > { %s2278_s16 = scalar_lea.hbm %s2995_s12, 16 }
  0xa9   : > { %p2279_p13 = scmp.ne.s32.totalorder %s2995_s12, %s2278_s16  ;;  %p2285_p5 = scmp.lt.u32.totalorder %s2278_s16, %s2995_s12 }
  0xab   : > { %p2281_p1 = pnand %p2279_p13, %p2600_p0 }
  0xad   : > { %p2282_p6 = pneg %p2281_p1 }
  0xaf   : > { %p2287_p9 = pnand %p2285_p5, %p2282_p6 }
  0xb1   : > { %2290 = shalt.err (!%p2287_p9)
}
  0xb2   : > { %s2291_s19 = scalar_lea.vmem %s523_s24, 16  ;;  %s2298_s4 = scalar_lea.vmem %s523_s24, 32 }
  0xb3   : > { %p2292_p10 = scmp.ne.s32.totalorder %s523_s24, %s2291_s19  ;;  %p2299_p4 = scmp.lt.s32.totalorder %s523_s24, %s523_s24 }
  0xb4   : > { %p2300_p7 = scmp.lt.s32.totalorder %s2298_s4, %s2291_s19 }
  0xb5   : > { %p2294_p2 = pnand %p2292_p10, %p2600_p0 }
  0xb6   : > { %p2301_p8 = por %p2300_p7, %p2299_p4 }
  0xb7   : > { %p2295_p3 = pneg %p2294_p2 }
  0xb9   : > { %p2302_p11 = pnand %p2301_p8, %p2295_p3 }
  0xbb   : > { %2305 = shalt.err (!%p2302_p11)
}
  0xbc   : > { %1997 = dma.hbm_to_vmem [thread:$0]  (!%p2584_p12), %s2995_s12, 16, %s523_s24, [#allocation12]  }
  0xbd   : > { %s2425_s0 = smov [#allocation14]   ;;  %s2306_s1 = scalar_lea.hbm %s2998_s15, 256 }
  0xbe   : > { %s538_s23 = sshll.u32 %s2425_s0, 4  ;;  %p2307_p13 = scmp.ne.s32.totalorder %s2998_s15, %s2306_s1  ;;  %s539_s23 = int_to_ptr.vmem [resolvable:$true] %s538_s23 }
  0xbf   : > { %p2313_p5 = scmp.lt.u32.totalorder %s2306_s1, %s2998_s15 }
  0xc0   : > { %p2309_p1 = pnand %p2307_p13, %p2600_p0 }
  0xc2   : > { %p2310_p6 = pneg %p2309_p1 }
  0xc4   : > { %p2315_p9 = pnand %p2313_p5, %p2310_p6 }
  0xc6   : > { %2318 = shalt.err (!%p2315_p9)
}
  0xc7   : > { %s2319_s24 = scalar_lea.vmem %s539_s23, 256  ;;  %p2327_p4 = scmp.lt.s32.totalorder %s539_s23, %s539_s23 }
  0xc8   : > { %p2320_p10 = scmp.ne.s32.totalorder %s539_s23, %s2319_s24  ;;  %p2328_p7 = scmp.lt.s32.totalorder %s2319_s24, %s2319_s24 }
  0xca   : > { %p2322_p2 = pnand %p2320_p10, %p2600_p0  ;;  %p2329_p8 = por %p2328_p7, %p2327_p4 }
  0xcc   : > { %p2323_p3 = pneg %p2322_p2 }
  0xce   : > { %p2330_p11 = pnand %p2329_p8, %p2323_p3 }
  0xd0   : > { %2333 = shalt.err (!%p2330_p11)
}
  0xd1   : > { %s2426_s4 = smov 64   ;;  %s2427_s20 = smov 4  }
  0xd2   : > { %2000 = dma.hbm_to_vmem [thread:$0]  (!%p2584_p12), %s2998_s15, 256, %s539_s23, [#allocation15], %s2426_s4, %s2426_s4, %s2427_s20  }
  0xd3   : > { %p3031_p13 = scmp.ne.s32.totalorder %s3027_s21, 0 }
  0xd4   : > { %p3032_p1 = scmp.eq.s32.totalorder (!%p3031_p13), %s2548_s28, 0 }
  0xd5   : > { %564 = sbr.rel (%p3031_p13) target bundleno = 2826 (0xb0a), region = 88 }
  0xdc   : > { %2379 = dma.done.wait (%p3032_p1), [#allocation3], 16   ;;  %p3033_p0 = pmov %p3032_p1 }
  0xde   : > { %2381 = vsyncadd (%p3033_p0), [#allocation3], 4294967280  ;;  %p3034_p6 = pmov %p3033_p0 }
  0xdf   : > { %p3035_p5 = pmov %p3033_p0 }
  0xe0   : > { %2383 = dma.done.wait (%p3034_p6), [#allocation6], 32  }
  0xe1   : > { %2385 = vsyncadd (%p3035_p5), [#allocation6], 4294967264  ;;  %p3036_p9 = pmov %p3033_p0 }
  0xe2   : > { %p3037_p12 = pmov %p3033_p0 }
  0xe3   : > { %2387 = dma.done.wait (%p3036_p9), [#allocation9], 32  }
  0xe4   : > { %2389 = vsyncadd (%p3037_p12), [#allocation9], 4294967264  ;;  %p3038_p10 = pmov %p3033_p0 }
  0xe5   : > { %p3039_p2 = pmov %p3033_p0 }
  0xe6   : > { %2391 = dma.done.wait (%p3038_p10), [#allocation12], 32  }
  0xe7   : > { %2393 = vsyncadd (%p3039_p2), [#allocation12], 4294967264  ;;  %p3040_p3 = pmov %p3033_p0 }
  0xe8   : > { %p3041_p4 = pmov %p3033_p0 }
  0xe9   : > { %2395 = dma.done.wait (%p3040_p3), [#allocation15], 256  }
  0xea   : > { %2397 = vsyncadd (%p3041_p4), [#allocation15], 4294967040  ;;  %p643_p7 = scmp.lt.s32.totalorder %s2548_s28, 1  ;;  %s3042_s30 = sld [smem:[#allocation30_spill]]  ;;  %vm665_vm0 = vcmask 261120   ;;  %v2072_v7 = vld [vmem:[%s2986_s3] sm:$0xff]  }
  0xeb   : > { %v2428_v8 = vmov 0.0   ;;  %vm2429_vm1 = vmmov 0   ;;  %v2073_v9 = vld [vmem:[%s2986_s3 + $0x8] sm:$0xff]   ;;  %s3043_s4 = sld [smem:[#allocation31_spill]]  ;;  %v1765_v16 = vld [vmem:[#allocation2] ss:$0 sm:$0xff] }
  0xec   : > { %s644_s21 = scalar_select %p643_p7, %s2548_s28, 1  ;;  %1842 = vmatprep.subr.bf16.mxu0 %v2428_v8  ;;  %1846 = vmatprep.mubr.msk.bf16.mxu0 %vm2429_vm1, %v2428_v8  ;;  %v2074_v20 = vld [vmem:[%s2988_s5] sm:$0xff]   ;;  %v2075_v21 = vld [vmem:[%s2988_s5 + $0x8] sm:$0xff]   ;;  %v2076_v22 = vld [vmem:[%s2988_s5 + $0x10] sm:$0xff]   ;;  %vm793_vm2 = vcmask 523264   ;;  %vm1126_vm3 = vcmask 1043456  }
  0xed   : > { %1843 = vmatpush3.bf16.msra.mxu0 %v2072_v7  ;;  %1850 = vmatprep.subr.bf16.mxu1 %v2428_v8  ;;  %v2077_v23 = vld [vmem:[%s2988_s5 + $0x18] sm:$0xff]   ;;  %v1766_v24 = vld [vmem:[#allocation5] ss:$0 sm:$0xff]  ;;  %v1770_v37 = vld [vmem:[#allocation7] ss:$0 sm:$0xff]  ;;  %s2430_s23 = smov 120  }
  0xee   : > { %s1763_s18 = sshll.u32 %s644_s21, 3  ;;  %1844 = vmatprep.subr.bf16.mxu0 %v2428_v8  ;;  %1858 = vmatprep.mubr.msk.bf16.mxu1 %vm2429_vm1, %v2428_v8  ;;  %v2078_v51 = vld [vmem:[%s2992_s9] sm:$0xff]   ;;  %v2080_v53 = vld [vmem:[%s2992_s9 + $0x8] sm:$0xff]   ;;  %vm1064_vm4 = vcmask 64512   ;;  %s2433_s1 = smov 8   ;;  %vm1516_vm5 = vcmask 130048  }
  0xef   : > { %1851 = vmatpush3.bf16.msra.mxu1 %v2074_v20  ;;  %v2079_v52 = vld [vmem:[%s2996_s13] sm:$0xff]   ;;  %v2081_v54 = vld [vmem:[%s2996_s13 + $0x8] sm:$0xff]   ;;  %s2434_s26 = smov 16   ;;  %s2435_s17 = smov 24   ;;  %vm1518_vm6 = vcmask 195584  }
  0xf0   : > { %s646_s16 = scalar_lea.vmem %s3042_s30, %s1763_s18  ;;  %1852 = vmatprep.subr.bf16.mxu1 %v2428_v8  ;;  %v1776_v59 = vld [vmem:[#allocation8] ss:$0 sm:$0xff]  ;;  %v1777_v61 = vld [vmem:[#allocation10] ss:$0 sm:$0xff]  ;;  %s2431_s30 = smov 112  }
  0xf1   : > { %v2781_v0 = vld [vmem:[%s646_s16] sm:$0xff]  ;;  %1845 = vmatpush3.bf16.msra.mxu0 %v2073_v9  ;;  %s2432_s16 = smov 104   ;;  %s640_s27 = sand.u32 1, %s2408_s25  }
  0xf2   : > { %v666_v1 = vsel %vm665_vm0, %v2781_v0, 0.0  ;;  %1862 = vmatprep.subr.bf16.mxu0 %v2428_v8  ;;  %v1764_v14 = vld [vmem:[%s3043_s4] ss:$0 sm:$0xff]  ;;  %s1762_s19 = sshll.u32 %s640_s27, 3  ;;  %s3044_s20 = sld [smem:[#allocation33_spill]] }
  0xf3   : > { %667 = vadd.xlane.f32.xlu0 %v666_v1  ;;  %1853 = vmatpush3.bf16.msra.mxu1 %v2075_v21  ;;  %s3045_s22 = sld [smem:[#allocation28_spill]]  ;;  %s1803_s0 = sshll.u32 %s2548_s28, 7 }
  0xf4   : > { %1854 = vmatprep.subr.bf16.mxu1 %v2428_v8  ;;  %s642_s21 = scalar_lea.vmem [#allocation16], %s1762_s19 }
  0xf5   : > { %s1604_s18 = sshll.u32 %s642_s21, 4  ;;  %s2942_s18 = int_to_ptr.vmem [resolvable:$true] %s1604_s18 }
  0xf6   : > { %s2334_s28 = scalar_lea.vmem %s2942_s18, 128 }
  0xf7   : > { %1855 = vmatpush3.bf16.msra.mxu1 %v2076_v22  ;;  %p2335_p8 = scmp.ne.s32.totalorder %s2942_s18, %s2334_s28 }
  0xf8   : > { %1856 = vmatprep.subr.bf16.mxu1 %v2428_v8 }
  0xf9   : > { %p3047_p11 = scmp.ne.s32.totalorder %s3045_s22, 0 }
  0xfb   : > { %1857 = vmatpush3.bf16.msra.mxu1 %v2077_v23  ;;  %p2336_p13 = pnand %p2335_p8, %p3047_p11 }
  0xfc   : > { %1878 = vmatprep.subr.bf16.mxu1 %v2428_v8 }
  0xfd   : > { %p2337_p1 = pneg %p2336_p13 }
 0x180   : > { %v668_v2 = vpop.xlane.xlu0 %667 }
 0x181   : > { %v670_v3 = vmul.f32 0.03125, %v668_v2  ;;  %v2083_v2 = vld [vmem:[%s2994_s11 + $0x8] sm:$0xff]  }
 0x183   : > { %v671_v4 = vsub.f32 %v2781_v0, %v670_v3  ;;  %v1778_v3 = vld [vmem:[#allocation11] ss:$0 sm:$0xff] }
 0x185   : > { %v672_v5 = vmul.f32 %v671_v4, %v671_v4 }
 0x187   : > { %v673_v6 = vsel %vm665_vm0, %v672_v5, 0.0 }
 0x188   : > { %674 = vadd.xlane.f32.xlu0 %v673_v6 }
 0x215   : > { %v675_v10 = vpop.xlane.xlu0 %674 }
 0x216   : > { %v676_v11 = vmul.f32 0.03125, %v675_v10 }
 0x218   : > { %v677_v12 = vadd.f32 1e-05, %v676_v11 }
 0x21a   : > { %2086 = vrsqrt.f32 %v677_v12 }
 0x224   : > { %v2087_v13 = vpop.eup %2086 }
 0x225   : > { %v679_v15 = vmul.f32 %v2087_v13, %v671_v4  ;;  %v1786_v4 = vld [vmem:[%s2997_s14] ss:$0 sm:$0xff] }
 0x227   : > { %v686_v17 = vmul.f32 %v1764_v14, %v679_v15 }
 0x229   : > { %v693_v18 = vadd.f32 %v1765_v16, %v686_v17 }
 0x22b   : > { %v694_v19 = vpack.c.bf16 %v693_v18, %v693_v18 }
 0x22d   : > { %1847 = vmatmul.mubr.msk.bf16.vlgmr.msra.gmra.mrb[0].mxu0 %vm665_vm0, %v694_v19  ;;  %v1782_v19 = vld [vmem:[#allocation13] ss:$0 sm:$0xff] }
 0x22e   : > { %1866 = vmatprep.mubr.msk.bf16.mxu0 %vm2429_vm1, %v2428_v8  ;;  %1863 = vmatpush3.bf16.msra.mxu0 %v2078_v51 }
 0x22f   : > { %1864 = vmatprep.subr.bf16.mxu0 %v2428_v8 }
 0x232   : > { %1865 = vmatpush3.bf16.msra.mxu0 %v2080_v53 }
 0x233   : > { %1870 = vmatprep.subr.bf16.mxu0 %v2428_v8 }
 0x300   : > { %v750_v25 = vpop.f32.mrb[0].mxu0 }
 0x301   : > { %v751_v26 = vadd.f32 %v1766_v24, %v750_v25  ;;  %v1848_v27 = vpop.f32.mrb[1].mxu0 }
 0x302   : > { %v753_v28 = vpop.f32.mrb[2].mxu0 }
 0x303   : > { %v756_v29 = vsub.f32 0.0, %v751_v26  ;;  %v1849_v30 = vpop.f32.mrb[3].mxu0 }
 0x305   : > { %v757_v31 = vmul.f32 1.442695, %v756_v29 }
 0x307   : > { %2088 = vpow2.f32 %v757_v31 }
 0x311   : > { %v2089_v32 = vpop.eup %2088 }
 0x312   : > { %v759_v33 = vadd.f32 1.0, %v2089_v32 }
 0x314   : > { %2090 = vrcp.f32 %v759_v33 }
 0x31e   : > { %v2091_v34 = vpop.eup %2090 }
 0x31f   : > { %v761_v35 = vmul.f32 %v2091_v34, %v751_v26 }
 0x321   : > { %v762_v36 = vpack.c.bf16 %v761_v35, %v761_v35 }
 0x323   : > { %1859 = vmatmul.mubr.msk.bf16.vlgmr.msra.gmra.mrb[0].mxu1 %vm793_vm2, %v762_v36 }
 0x324   : > { %1882 = vmatprep.mubr.msk.bf16.mxu1 %vm2429_vm1, %v2428_v8  ;;  %1879 = vmatpush3.bf16.msra.mxu1 %v2079_v52 }
 0x325   : > { %1880 = vmatprep.subr.bf16.mxu1 %v2428_v8 }
 0x328   : > { %1881 = vmatpush3.bf16.msra.mxu1 %v2081_v54 }
 0x329   : > { %1892 = vmatprep.subr.bf16.mxu1 %v2428_v8 }
 0x3f6   : > { %v831_v38 = vpop.f32.mrb[0].mxu1 }
 0x3f7   : > { %v832_v39 = vadd.f32 %v1770_v37, %v831_v38  ;;  %v1860_v40 = vpop.f32.mrb[1].mxu1 }
 0x3f8   : > { %v834_v41 = vpop.f32.mrb[2].mxu1 }
 0x3f9   : > { %v837_v42 = vmul.f32 0.5, %v832_v39  ;;  %v1861_v43 = vpop.f32.mrb[3].mxu1 }
 0x3fb   : > { %v2826_v44 = vadd.f32 %v837_v42, %v2781_v0  ;;  %v2082_v0 = vld [vmem:[%s2994_s11] sm:$0xff]  }
 0x3fd   : > { %v841_v45 = vsel %vm665_vm0, %v2826_v44, 0.0 }
 0x3fe   : > { %842 = vadd.xlane.f32.xlu1 %v841_v45 }
 0x48b   : > { %v843_v46 = vpop.xlane.xlu1 %842 }
 0x48c   : > { %v844_v47 = vmul.f32 0.03125, %v843_v46 }
 0x48e   : > { %v845_v48 = vsub.f32 %v2826_v44, %v844_v47 }
 0x490   : > { %v846_v49 = vmul.f32 %v845_v48, %v845_v48 }
 0x492   : > { %v847_v50 = vsel %vm665_vm0, %v846_v49, 0.0 }
 0x493   : > { %848 = vadd.xlane.f32.xlu1 %v847_v50 }
 0x520   : > { %v849_v55 = vpop.xlane.xlu1 %848 }
 0x521   : > { %v850_v56 = vmul.f32 0.03125, %v849_v55 }
 0x523   : > { %v851_v57 = vadd.f32 1e-05, %v850_v56 }
 0x525   : > { %2092 = vrsqrt.f32 %v851_v57 }
 0x52f   : > { %v2093_v58 = vpop.eup %2092 }
 0x530   : > { %v853_v60 = vmul.f32 %v2093_v58, %v845_v48 }
 0x532   : > { %v860_v62 = vmul.f32 %v1776_v59, %v853_v60 }
 0x534   : > { %v867_v63 = vadd.f32 %v1777_v61, %v860_v62 }
 0x536   : > { %v868_v1 = vpack.c.bf16 %v867_v63, %v867_v63 }
 0x538   : > { %1867 = vmatmul.mubr.msk.bf16.vlgmr.msra.gmra.mrb[4].mxu0 %vm665_vm0, %v868_v1  ;;  %1883 = vmatmul.mubr.msk.bf16.vlgmr.msra.gmra.mrb[4].mxu1 %vm665_vm0, %v868_v1 }
 0x539   : > { %1871 = vmatpush3.bf16.msra.mxu0 %v2082_v0  ;;  %1874 = vmatprep.mubr.msk.bf16.mxu0 %vm2429_vm1, %v2428_v8 }
 0x53a   : > { %1872 = vmatprep.subr.bf16.mxu0 %v2428_v8  ;;  %1894 = vmatprep.mubr.msk.bf16.mxu1 %vm2429_vm1, %v2428_v8 }
 0x53d   : > { %1873 = vmatpush3.bf16.msra.mxu0 %v2083_v2 }
 0x53e   : > { %1886 = vmatprep.subr.bf16.mxu0 %v2428_v8 }
 0x540   : > { %1875 = vmatmul.mubr.msk.bf16.vlgmr.msra.gmra.mrb[8].mxu0 %vm665_vm0, %v868_v1 }
 0x541   : > { %1888 = vmatprep.mubr.msk.bf16.mxu0 %vm2429_vm1, %v2428_v8 }
 0x60b   : > { %v929_v5 = vpop.f32.mrb[4].mxu0  ;;  %v1055_v6 = vpop.f32.mrb[4].mxu1 }
 0x60c   : > { %v930_v7 = vadd.f32 %v1778_v3, %v929_v5  ;;  %v1056_v9 = vadd.f32 %v1786_v4, %v1055_v6  ;;  %v1868_v10 = vpop.f32.mrb[5].mxu0  ;;  %v1884_v11 = vpop.f32.mrb[5].mxu1 }
 0x60d   : > { %v932_v12 = vpop.f32.mrb[6].mxu0  ;;  %v1058_v13 = vpop.f32.mrb[6].mxu1 }
 0x60e   : > { %v1061_v14 = vpack.c.bf16 %v930_v7, %v930_v7  ;;  %v2868_v15 = vpack.c.bf16 %v1056_v9, %v1056_v9  ;;  %v1869_v16 = vpop.f32.mrb[7].mxu0  ;;  %v1885_v17 = vpop.f32.mrb[7].mxu1 }
 0x610   : > { %1171 = vrot.lane.b32.xlu1 %v1061_v14, %s2430_s23  ;;  %v1128_v18 = vsel %vm1126_vm3, %v2868_v15, 0 }
 0x611   : > { %1893 = vmatpush3.bf16.msra.mxu1 %v1128_v18 }
 0x612   : > { %1904 = vmatprep.subr.bf16.mxu1 %v2428_v8 }
 0x613   : > { %v992_v20 = vpop.f32.mrb[8].mxu0 }
 0x614   : > { %v993_v21 = vadd.f32 %v1782_v19, %v992_v20  ;;  %v1876_v22 = vpop.f32.mrb[9].mxu0 }
 0x615   : > { %v995_v23 = vpop.f32.mrb[10].mxu0 }
 0x616   : > { %v1062_v24 = vpack.c.bf16 %v993_v21, %v993_v21  ;;  %v1877_v25 = vpop.f32.mrb[11].mxu0 }
 0x618   : > { %1285 = vrot.lane.b32.xlu1 %v1062_v24, %s2431_s30  ;;  %1174 = vrot.lane.b32.xlu0 %v1062_v24, %s2430_s23  ;;  %v1069_v26 = vsel %vm1064_vm4, %v1062_v24, 0 }
 0x619   : > { %1887 = vmatpush3.bf16.xpose.msra.mxu0 %v1069_v26 }
 0x61a   : > { %1898 = vmatprep.subr.bf16.mxu0 %v2428_v8 }
 0x61c   : > { %1283 = vrot.lane.b32.xlu1 %v1061_v14, %s2431_s30  ;;  %1395 = vrot.lane.b32.xlu0 %v1062_v24, %s2432_s16 }
 0x620   : > { %1393 = vrot.lane.b32.xlu1 %v1061_v14, %s2432_s16  ;;  %1889 = vmatmul.mubr.msk.bf16.vlgmr.msra.gmra.mrb[12].mxu0 %vm1064_vm4, %v1061_v14 }
 0x621   : > { %1900 = vmatprep.mubr.msk.bf16.mxu0 %vm2429_vm1, %v2428_v8 }
 0x682   : > { %v1172_v29 = vpop.permute.xlu1 %1171 }
 0x68a   : > { %v1175_v27 = vpop.permute.xlu0 %1174  ;;  %v1286_v30 = vpop.permute.xlu1 %1285 }
 0x68b   : > { %v1180_v28 = vsel %vm1064_vm4, %v1175_v27, 0  ;;  %v1291_v31 = vsel %vm1064_vm4, %v1286_v30, 0 }
 0x68c   : > { %1899 = vmatpush3.bf16.xpose.msra.mxu0 %v1180_v28 }
 0x68d   : > { %1910 = vmatprep.subr.bf16.mxu0 %v2428_v8 }
 0x68e   : > { %v1396_v32 = vpop.permute.xlu0 %1395  ;;  %v1284_v33 = vpop.permute.xlu1 %1283 }
 0x68f   : > { %v1401_v34 = vsel %vm1064_vm4, %v1396_v32, 0 }
 0x692   : > { %v1394_v35 = vpop.permute.xlu1 %1393 }
 0x693   : > { %1901 = vmatmul.mubr.msk.bf16.vlgmr.msra.gmra.mrb[16].mxu0 %vm1064_vm4, %v1172_v29 }
 0x694   : > { %1911 = vmatpush3.bf16.xpose.msra.mxu0 %v1291_v31  ;;  %1912 = vmatprep.mubr.msk.bf16.mxu0 %vm2429_vm1, %v2428_v8 }
 0x695   : > { %1922 = vmatprep.subr.bf16.mxu0 %v2428_v8 }
 0x69b   : > { %1913 = vmatmul.mubr.msk.bf16.vlgmr.msra.gmra.mrb[20].mxu0 %vm1064_vm4, %v1284_v33 }
 0x69c   : > { %1923 = vmatpush3.bf16.xpose.msra.mxu0 %v1401_v34  ;;  %1924 = vmatprep.mubr.msk.bf16.mxu0 %vm2429_vm1, %v2428_v8 }
 0x69d   : > { %1934 = vmatprep.subr.bf16.mxu0 %v2428_v8 }
 0x6a3   : > { %1925 = vmatmul.mubr.msk.bf16.vlgmr.msra.gmra.mrb[24].mxu0 %vm1064_vm4, %v1394_v35 }
 0x6a4   : > { %1938 = vmatprep.mubr.msk.bf16.mxu0 %vm2429_vm1, %v2428_v8 }
 0x6f3   : > { %v1105_v36 = vpop.f32.mrb[12].mxu0 }
 0x6f4   : > { %v1890_v37 = vpop.f32.mrb[13].mxu0  ;;  %v1111_v38 = vsel %vm1064_vm4, %v1105_v36, -inf }
 0x6f5   : > { %1112 = vmax.xlane.f32.xlu0 %v1111_v38  ;;  %v1108_v39 = vpop.f32.mrb[14].mxu0 }
 0x6f6   : > { %v1891_v40 = vpop.f32.mrb[15].mxu0 }
 0x6f7   : > { %v2084_v40 = vld [vmem:[#allocation14] sm:$0xff]  }
 0x6f8   : > { %1935 = vmatpush3.bf16.msra.mxu0 %v2084_v40 }
 0x6f9   : > { %1936 = vmatprep.subr.bf16.mxu0 %v2428_v8 }
 0x766   : > { %v1216_v41 = vpop.f32.mrb[16].mxu0 }
 0x767   : > { %v1902_v42 = vpop.f32.mrb[17].mxu0  ;;  %v1222_v43 = vsel %vm1064_vm4, %v1216_v41, -inf }
 0x768   : > { %1223 = vmax.xlane.f32.xlu1 %v1222_v43  ;;  %v1219_v45 = vpop.f32.mrb[18].mxu0 }
 0x769   : > { %v1903_v46 = vpop.f32.mrb[19].mxu0 }
 0x76e   : > { %v1327_v47 = vpop.f32.mrb[20].mxu0 }
 0x76f   : > { %v1914_v48 = vpop.f32.mrb[21].mxu0  ;;  %v1333_v49 = vsel %vm1064_vm4, %v1327_v47, -inf }
 0x770   : > { %1334 = vmax.xlane.f32.xlu0 %v1333_v49  ;;  %v1330_v50 = vpop.f32.mrb[22].mxu0 }
 0x771   : > { %v1915_v51 = vpop.f32.mrb[23].mxu0  ;;  %v2085_v50 = vld [vmem:[#allocation14 + $0x8] sm:$0xff]  }
 0x772   : > { %1937 = vmatpush3.bf16.msra.mxu0 %v2085_v50 }
 0x776   : > { %v1437_v52 = vpop.f32.mrb[24].mxu0 }
 0x777   : > { %v1926_v53 = vpop.f32.mrb[25].mxu0  ;;  %v1443_v54 = vsel %vm1064_vm4, %v1437_v52, -inf }
 0x778   : > { %1444 = vmax.xlane.f32.xlu0 %v1443_v54  ;;  %v1440_v55 = vpop.f32.mrb[26].mxu0 }
 0x779   : > { %v1927_v56 = vpop.f32.mrb[27].mxu0 }
 0x782   : > { %v1113_v57 = vpop.xlane.xlu0 %1112 }
 0x783   : > { %v1114_v58 = vsub.f32 %v1105_v36, %v1113_v57 }
 0x785   : > { %v1115_v59 = vmul.f32 1.442695, %v1114_v58 }
 0x787   : > { %2094 = vpow2.f32 %v1115_v59 }
 0x791   : > { %v2095_v60 = vpop.eup %2094 }
 0x792   : > { %v1117_v61 = vsel %vm1064_vm4, %v2095_v60, 0.0 }
 0x793   : > { %1118 = vadd.xlane.f32.xlu0 %v1117_v61  ;;  %v1798_v61 = vld [vmem:[%s3044_s20] ss:$0 sm:$0xff] }
 0x7f5   : > { %v1224_v62 = vpop.xlane.xlu1 %1223 }
 0x7f6   : > { %v1225_v63 = vsub.f32 %v1216_v41, %v1224_v62 }
 0x7f8   : > { %v1226_v0 = vmul.f32 1.442695, %v1225_v63 }
 0x7fa   : > { %2096 = vpow2.f32 %v1226_v0 }
 0x7fd   : > { %v1335_v1 = vpop.xlane.xlu0 %1334 }
 0x7fe   : > { %v1336_v2 = vsub.f32 %v1327_v47, %v1335_v1 }
 0x800   : > { %v1337_v3 = vmul.f32 1.442695, %v1336_v2 }
 0x802   : > { %2098 = vpow2.f32 %v1337_v3 }
 0x804   : > { %v2097_v4 = vpop.eup %2096 }
 0x805   : > { %v1228_v5 = vsel %vm1064_vm4, %v2097_v4, 0.0  ;;  %v1445_v9 = vpop.xlane.xlu0 %1444 }
 0x806   : > { %1229 = vadd.xlane.f32.xlu1 %v1228_v5  ;;  %v1446_v11 = vsub.f32 %v1437_v52, %v1445_v9 }
 0x808   : > { %v1447_v12 = vmul.f32 1.442695, %v1446_v11 }
 0x80c   : > { %v2099_v6 = vpop.eup %2098 }
 0x80d   : > { %v1339_v7 = vsel %vm1064_vm4, %v2099_v6, 0.0 }
 0x80e   : > { %1340 = vadd.xlane.f32.xlu0 %v1339_v7 }
 0x817   : > { %1345 = vrot.lane.b32.xlu1 %v2868_v15, %s2431_s30  ;;  %s3046_s30 = sld [smem:[#allocation34_spill]] }
 0x820   : > { %v1119_v10 = vpop.xlane.xlu0 %1118 }
 0x821   : > { %2100 = vrcp.f32 %v1119_v10 }
 0x822   : > { %2102 = vpow2.f32 %v1447_v12 }
 0x824   : > { %1235 = vrot.lane.b32.xlu0 %v2868_v15, %s2430_s23 }
 0x82b   : > { %v2101_v13 = vpop.eup %2100 }
 0x82c   : > { %v1121_v14 = vmul.f32 %v2101_v13, %v2095_v60  ;;  %v2103_v17 = vpop.eup %2102 }
 0x82d   : > { %v1449_v18 = vsel %vm1064_vm4, %v2103_v17, 0.0 }
 0x82e   : > { %v1122_v16 = vpack.c.bf16 %v1121_v14, %v1121_v14 }
 0x830   : > { %1895 = vmatmul.mubr.msk.bf16.vlgmr.msra.gmra.mrb[8].mxu1 %vm1064_vm4, %v1122_v16 }
 0x831   : > { %1906 = vmatprep.mubr.msk.bf16.mxu1 %vm2429_vm1, %v2428_v8 }
 0x83b   : > { %1450 = vadd.xlane.f32.xlu1 %v1449_v18 }
 0x84c   : > { %1455 = vrot.lane.b32.xlu1 %v2868_v15, %s2432_s16  ;;  %s2940_s16 = scalar_lea.hbm %s3046_s30, %s1803_s0 }
 0x893   : > { %v1230_v19 = vpop.xlane.xlu1 %1229 }
 0x894   : > { %2104 = vrcp.f32 %v1230_v19 }
 0x897   : > { %v1346_v25 = vpop.permute.xlu1 %1345 }
 0x898   : > { %v1351_v27 = vsel %vm1126_vm3, %v1346_v25, 0 }
 0x89b   : > { %v1341_v20 = vpop.xlane.xlu0 %1340 }
 0x89c   : > { %2106 = vrcp.f32 %v1341_v20 }
 0x89e   : > { %v2105_v21 = vpop.eup %2104 }
 0x89f   : > { %v1232_v22 = vmul.f32 %v2105_v21, %v2097_v4  ;;  %v1236_v23 = vpop.permute.xlu0 %1235 }
 0x8a0   : > { %v1241_v24 = vsel %vm1126_vm3, %v1236_v23, 0 }
 0x8a1   : > { %1905 = vmatpush3.bf16.msra.mxu1 %v1241_v24  ;;  %v1233_v26 = vpack.c.bf16 %v1232_v22, %v1232_v22 }
 0x8a2   : > { %1916 = vmatprep.subr.bf16.mxu1 %v2428_v8 }
 0x8a4   : > { %1907 = vmatmul.mubr.msk.bf16.vlgmr.msra.gmra.mrb[12].mxu1 %vm1064_vm4, %v1233_v26 }
 0x8a5   : > { %1917 = vmatpush3.bf16.msra.mxu1 %v1351_v27  ;;  %1918 = vmatprep.mubr.msk.bf16.mxu1 %vm2429_vm1, %v2428_v8 }
 0x8a6   : > { %v2107_v15 = vpop.eup %2106  ;;  %1928 = vmatprep.subr.bf16.mxu1 %v2428_v8 }
 0x8a7   : > { %v1343_v28 = vmul.f32 %v2107_v15, %v2099_v6 }
 0x8a9   : > { %v1344_v29 = vpack.c.bf16 %v1343_v28, %v1343_v28 }
 0x8ac   : > { %1919 = vmatmul.mubr.msk.bf16.vlgmr.msra.gmra.mrb[16].mxu1 %vm1064_vm4, %v1344_v29 }
 0x8ad   : > { %1930 = vmatprep.mubr.msk.bf16.mxu1 %vm2429_vm1, %v2428_v8 }
 0x8c8   : > { %v1451_v30 = vpop.xlane.xlu1 %1450 }
 0x8c9   : > { %2108 = vrcp.f32 %v1451_v30 }
 0x8cc   : > { %v1456_v31 = vpop.permute.xlu1 %1455 }
 0x8cd   : > { %v1461_v32 = vsel %vm1126_vm3, %v1456_v31, 0 }
 0x8ce   : > { %1929 = vmatpush3.bf16.msra.mxu1 %v1461_v32 }
 0x8d3   : > { %v2109_v33 = vpop.eup %2108 }
 0x8d4   : > { %v1453_v34 = vmul.f32 %v2109_v33, %v2103_v17 }
 0x8d6   : > { %v1454_v35 = vpack.c.bf16 %v1453_v34, %v1453_v34 }
 0x8d8   : > { %1931 = vmatmul.mubr.msk.bf16.vlgmr.msra.gmra.mrb[20].mxu1 %vm1064_vm4, %v1454_v35 }
 0x903   : > { %v1164_v36 = vpop.f32.mrb[8].mxu1 }
 0x904   : > { %v1896_v37 = vpop.f32.mrb[9].mxu1 }
 0x905   : > { %v1167_v38 = vpop.f32.mrb[10].mxu1 }
 0x906   : > { %v1897_v39 = vpop.f32.mrb[11].mxu1 }
 0x977   : > { %v1277_v41 = vpop.f32.mrb[12].mxu1 }
 0x978   : > { %1504 = vrot.lane.b32.xlu1 %v1277_v41, %s2433_s1  ;;  %v1908_v42 = vpop.f32.mrb[13].mxu1  ;;  %s1591_s1 = scalar_lea.sflag [#allocation4], %s640_s27 }
 0x979   : > { %v1280_v43 = vpop.f32.mrb[14].mxu1 }
 0x97a   : > { %v1909_v45 = vpop.f32.mrb[15].mxu1 }
 0x97f   : > { %v1387_v46 = vpop.f32.mrb[16].mxu1 }
 0x980   : > { %1508 = vrot.lane.b32.xlu0 %v1387_v46, %s2434_s26  ;;  %v1920_v47 = vpop.f32.mrb[17].mxu1  ;;  %s2436_s26 = smov [#allocation16]  }
 0x981   : > { %v1390_v48 = vpop.f32.mrb[18].mxu1 }
 0x982   : > { %v1921_v49 = vpop.f32.mrb[19].mxu1 }
 0x9ab   : > { %v1497_v51 = vpop.f32.mrb[20].mxu1 }
 0x9ac   : > { %1512 = vrot.lane.b32.xlu1 %v1497_v51, %s2435_s17  ;;  %v1932_v52 = vpop.f32.mrb[21].mxu1  ;;  %s2338_s17 = sshll.u32 %s2436_s26, 4  ;;  %s2339_s17 = int_to_ptr.vmem [resolvable:$false] %s2338_s17 }
 0x9ad   : > { %v1500_v8 = vpop.f32.mrb[22].mxu1  ;;  %s2340_s19 = scalar_lea.vmem %s2339_s17, 256  ;;  %p2341_p0 = scmp.lt.s32.totalorder %s2942_s18, %s2339_s17 }
 0x9ae   : > { %v1933_v53 = vpop.f32.mrb[23].mxu1  ;;  %p2342_p6 = scmp.lt.s32.totalorder %s2340_s19, %s2334_s28 }
 0x9b0   : > { %p2343_p5 = por %p2342_p6, %p2341_p0 }
 0x9b2   : > { %p2344_p9 = pnand %p2343_p5, %p2337_p1 }
 0x9ea   : > { %v1505_v54 = vpop.permute.xlu1 %1504 }
 0x9eb   : > { %v1515_v56 = vsel %vm1064_vm4, %v1164_v36, %v1505_v54 }
 0x9f2   : > { %v1509_v55 = vpop.permute.xlu0 %1508 }
 0x9f3   : > { %v1517_v57 = vsel %vm1516_vm5, %v1515_v56, %v1509_v55 }
 0xa1e   : > { %v1513_v58 = vpop.permute.xlu1 %1512 }
 0xa1f   : > { %v1519_v59 = vsel %vm1518_vm6, %v1517_v57, %v1513_v58 }
 0xa20   : > { %v1524_v60 = vpack.c.bf16 %v1519_v59, %v1519_v59 }
 0xa22   : > { %1939 = vmatmul.mubr.msk.bf16.vlgmr.msra.gmra.mrb[28].mxu0 %vm665_vm0, %v1524_v60 }
 0xaf5   : > { %v1581_v62 = vpop.f32.mrb[28].mxu0 }
 0xaf6   : > { %v1582_v63 = vadd.f32 %v1798_v61, %v1581_v62  ;;  %v1940_v0 = vpop.f32.mrb[29].mxu0 }
 0xaf7   : > { %v1584_v1 = vpop.f32.mrb[30].mxu0 }
 0xaf8   : > { %v1587_v2 = vmul.f32 0.5, %v1582_v63  ;;  %v1941_v3 = vpop.f32.mrb[31].mxu0 }
 0xafa   : > { %v1588_v4 = vadd.f32 %v1587_v2, %v2826_v44 }
 0xafc   : > { %1589 = vst.msk [vmem:[%s642_s21] sm:$0xff] %vm665_vm0, %v1588_v4 }
 0xafd   : > { %2347 = shalt.err (!%p2344_p9)
}
 0xafe   : > { %s2348_s27 = scalar_lea.hbm %s2940_s16, 128  ;;  %s2352_s20 = scalar_lea.hbm %s3046_s30, 256 }
 0xaff   : > { %p2349_p12 = scmp.ne.s32.totalorder %s2940_s16, %s2348_s27  ;;  %p2353_p3 = scmp.lt.u32.totalorder %s2940_s16, %s3046_s30 }
 0xb00   : > { %p2354_p4 = scmp.lt.u32.totalorder %s2352_s20, %s2348_s27  ;;  %p2356_p8 = scmp.lt.u32.totalorder %s2348_s27, %s2940_s16 }
 0xb01   : > { %p2350_p10 = pnand %p2349_p12, %p3047_p11 }
 0xb02   : > { %p2355_p7 = por %p2354_p4, %p2353_p3 }
 0xb03   : > { %p2351_p2 = pneg %p2350_p10 }
 0xb04   : > { %p2357_p13 = por %p2356_p8, %p2355_p7 }
 0xb06   : > { %p2358_p1 = pnand %p2357_p13, %p2351_p2 }
 0xb08   : > { %2361 = shalt.err (!%p2358_p1)
}
 0xb09   : > { %1974 = dma.vmem_to_hbm [thread:$0]  (%p3047_p11), %s2942_s18, 128, %s2940_s16, %s1591_s1  }
 0xb0a PF: > { %s3048_s29 = sld [smem:[#allocation25_spill]]  ;;  %s3049_s23 = sld [smem:[#allocation23_spill]] }
 0xb0b   : > { %s3050_s28 = sld [smem:[#allocation29_spill]] }
 0xb10   : > { %p2021_p0 = scmp.ge.s32.totalorder %s3048_s29, 2  ;;  %s1616_s26 = sand.u32 1, %s3049_s23  }
 0xb11   : > { %p3051_p6 = scmp.ne.s32.totalorder %s3050_s28, 0  ;;  %s1617_s17 = scalar_lea.sflag [#allocation4], %s1616_s26 }
 0xb13   : > { %p2002_p5 = pnand %p2021_p0, %p3051_p6 }
 0xb15   : > { %2399 = dma.done.wait (!%p2002_p5), %s1617_s17, 128  }
 0xb16   : > { %2401 = vsyncadd (!%p2002_p5), %s1617_s17, 4294967168  ;;  %s3052_s27 = sld [smem:[#allocation26_spill]]  ;;  %s3053_s19 = sld [smem:[#allocation24_spill]] }
 0xb17   : > { %s3054_s26 = sld [smem:[#allocation27_spill]]  ;;  %s3055_s24 = smov %s2408_s25 }
 0xb1c   : > { %p32_p9 = scmp.ge.s32.totalorder %s3052_s27, 4   ;;  %s3056_s25 = smov %s3053_s19 }
 0xb1e   :  { %34 = sbr.rel (!%p32_p9) target bundleno = 14 (0xe), region = 156 }
 0xb25   :  { %1622 = vsyncpa [#allocation3], 1 }
 0xb26   :  { %1624 = vsyncpa [#allocation3 + $0x1], 1 }
 0xb27   :  { %1625 = vsyncpa [#allocation6], 1 }
 0xb28   :  { %1626 = vsyncpa [#allocation9], 1 }
 0xb29   :  { %1627 = vsyncpa [#allocation12], 1 }
 0xb2a   :  { %1628 = vsyncpa [#allocation15], 1 }
 0xb2b   :  { %1629 = vsyncpa [#allocation4], 1 }
 0xb2c   :  { %1631 = vsyncpa [#allocation4 + $0x1], 1 }

// kernel: tpu_custom_call.1
= control target key start
LH: loop header
LB: loop body
LE: loop exit
PB: predicated region body
PF: predicated region fallthrough
CT: control target
= control target key end

     0   :  { %s2983_s0 = inlined_call_operand.vmem [shape: f32[2,8,32], index: 0, kind: input, shape index: {}]   ;;  %s2984_s1 = inlined_call_operand.vmem [shape: f32[1,32], index: 1, kind: input, shape index: {}]   ;;  %s2985_s2 = inlined_call_operand.hbm [shape: f32[1,32], index: 2, kind: input, shape index: {}]   ;;  %s2986_s3 = inlined_call_operand.vmem [shape: bf16[32,64], index: 3, kind: input, shape index: {}]   ;;  %s2987_s4 = inlined_call_operand.hbm [shape: f32[1,64], index: 4, kind: input, shape index: {}]   ;;  %s2988_s5 = inlined_call_operand.vmem [shape: bf16[64,32], index: 5, kind: input, shape index: {}]   ;;  %s2989_s6 = inlined_call_operand.hbm [shape: f32[1,32], index: 6, kind: input, shape index: {}]   ;;  %s2990_s7 = inlined_call_operand.hbm [shape: f32[1,32], index: 7, kind: input, shape index: {}]   ;;  %s2991_s8 = inlined_call_operand.hbm [shape: f32[1,32], index: 8, kind: input, shape index: {}]   ;;  %s2992_s9 = inlined_call_operand.vmem [shape: bf16[32,32], index: 9, kind: input, shape index: {}]   ;;  %s2993_s10 = inlined_call_operand.hbm [shape: f32[1,32], index: 10, kind: input, shape index: {}]   ;;  %s2994_s11 = inlined_call_operand.vmem [shape: bf16[32,32], index: 11, kind: input, shape index: {}]   ;;  %s2995_s12 = inlined_call_operand.hbm [shape: f32[1,32], index: 12, kind: input, shape index: {}]   ;;  %s2996_s13 = inlined_call_operand.vmem [shape: bf16[32,32], index: 13, kind: input, shape index: {}]   ;;  %s2997_s14 = inlined_call_operand.vmem [shape: f32[1,32], index: 14, kind: input, shape index: {}]   ;;  %s2998_s15 = inlined_call_operand.hbm [shape: bf16[32,32], index: 15, kind: input, shape index: {}]   ;;  %s2999_s16 = inlined_call_operand.vmem [shape: f32[1,32], index: 16, kind: input, shape index: {}]   ;;  %s3000_s17 = inlined_call_operand.hbm [shape: f32[2,8,32], index: 17, kind: output, shape index: {}]  }
   0x1   :  { %3013 = sst [smem:[#allocation30_spill]] %s2983_s0 }
   0x2   :  { %3014 = sst [smem:[#allocation31_spill]] %s2984_s1 }
   0x3   :  { %3015 = sst [smem:[#allocation32_spill]] %s2987_s4 }
   0x4   :  { %3016 = sst [smem:[#allocation33_spill]] %s2999_s16 }
   0x5   :  { %3017 = sst [smem:[#allocation34_spill]] %s3000_s17 }
   0x6   :  { %22 = vsyncpa [#allocation3], 0 }
   0x7   :  { %23 = vsyncpa [#allocation6], 0 }
   0x8   :  { %24 = vsyncpa [#allocation9], 0 }
   0x9   :  { %25 = vsyncpa [#allocation12], 0 }
   0xa   :  { %26 = vsyncpa [#allocation15], 0 }
   0xb   :  { %27 = vsyncpa [#allocation4], 0 }
   0xc   :  { %29 = vsyncpa [#allocation4 + $0x1], 0  ;;  %s2527_s24 = smov 0   ;;  %s2529_s25 = smov 0  }
   0xd   :  { %s2531_s26 = smov 0   ;;  %s2533_s27 = smov 0  }
   0xe LB: > { %3018 = sst [smem:[#allocation23_spill]] %s2404_s24  ;;  %s2548_s28 = sadd.s32 4294967295, %s2416_s27   ;;  %s2416_s27 = sphi %s2533_s27, %s3052_s27   ;;  %s2412_s26 = sphi %s2531_s26, %s3054_s26   ;;  %s2408_s25 = sphi %s2529_s25, %s3056_s25   ;;  %s2404_s24 = sphi %s2527_s24, %s3055_s24  }
   0xf   : > { %3019 = sst [smem:[#allocation24_spill]] %s2412_s26  ;;  %s1742_s29 = sadd.s32 4294967294, %s2416_s27  }
  0x10   : > { %3020 = sst [smem:[#allocation25_spill]] %s2416_s27  ;;  %s2552_s0 = sadd.s32 1, %s2416_s27  }
  0x11   : > { %3021 = sst [smem:[#allocation26_spill]] %s2552_s0  ;;  %s404_s30 = sadd.s32 1, %s2412_s26 }
  0x12   : > { %s401_s18 = ssub.s32 %s2416_s27, %s2552_s0  ;;  %p414_p0 = scmp.ne.s32.totalorder %s2412_s26, %s2408_s25 }
  0x13   : > { %p402_p1 = scmp.eq.s32.totalorder %s401_s18, 0  ;;  %p415_p2 = scmp.eq.s32.totalorder %s2548_s28, 1 }
  0x14   : > { %p420_p3 = scmp.ne.s32.totalorder %s2408_s25, %s2404_s24  ;;  %p421_p4 = scmp.eq.s32.totalorder %s1742_s29, 1 }
  0x15   : > { %s2563_s19 = scalar_select %p402_p1, %s2412_s26, %s404_s30  }
  0x16   : > { %p2565_p5 = por %p415_p2, %p414_p0  ;;  %p2569_p6 = por %p421_p4, %p420_p3 }
  0x17   : > { %3022 = sst [smem:[#allocation27_spill]] %s2563_s19  ;;  %p1743_p7 = scmp.ge.s32.totalorder %s2416_s27, 1 }
  0x18   : > { %s3023_s1 = scalar_select %p2565_p5, 1, 0 }
  0x19   : > { %s3025_s20 = scalar_select %p2569_p6, 1, 0 }
  0x1a   : > { %3024 = sst [smem:[#allocation28_spill]] %s3023_s1  ;;  %p428_p8 = scmp.lt.s32.totalorder %s2416_s27, 3 }
  0x1b   : > { %3026 = sst [smem:[#allocation29_spill]] %s3025_s20  ;;  %p3008_p9 = scmp.eq.s32.totalorder %s2548_s28, 0 }
  0x1c   : > { %p2576_p10 = pnand %p1743_p7, %p428_p8  ;;  %s2418_s22 = smov [#allocation5]  }
  0x1d   : > { %s458_s23 = sshll.u32 %s2418_s22, 4  ;;  %s2419_s29 = smov [#allocation8]   ;;  %s459_s23 = int_to_ptr.vmem [resolvable:$true] %s458_s23 }
  0x1e   : > { %s3027_s21 = scalar_select %p2576_p10, 1, 0 }
  0x1f   : > { %p1976_p11 = pneg %p2576_p10  ;;  %s483_s30 = sshll.u32 %s2419_s29, 4  ;;  %s2588_s30 = int_to_ptr.vmem [resolvable:$true] %s483_s30 }
  0x20   : > { %s2420_s19 = smov [#allocation11]   ;;  %s3029_s4 = sld [smem:[#allocation32_spill]] }
  0x21   : > { %p2584_p12 = pnand %p3008_p9, %p1976_p11  ;;  %s508_s26 = sshll.u32 %s2420_s19, 4  ;;  %s2590_s26 = int_to_ptr.vmem [resolvable:$true] %s508_s26 }
  0x23   : > { %p2600_p0 = pneg %p2584_p12 }
  0x26   : > { %s2110_s22 = scalar_lea.hbm %s3029_s4, 16 }
  0x27   : > { %p2111_p13 = scmp.ne.s32.totalorder %s3029_s4, %s2110_s22  ;;  %p2117_p3 = scmp.lt.u32.totalorder %s2110_s22, %s3029_s4 }
  0x29   : > { %p2113_p1 = pnand %p2600_p0, %p2111_p13 }
  0x2b   : > { %p2114_p2 = pneg %p2113_p1 }
  0x2d   : > { %p2119_p4 = pnand %p2117_p3, %p2114_p2 }
  0x2f   : > { %2122 = shalt.err (!%p2119_p4)
}
  0x30   : > { %s2123_s0 = scalar_lea.vmem %s459_s23, 16  ;;  %s2130_s24 = scalar_lea.vmem %s459_s23, 32 }
  0x31   : > { %p2124_p7 = scmp.ne.s32.totalorder %s459_s23, %s2123_s0  ;;  %p2131_p9 = scmp.lt.s32.totalorder %s459_s23, %s459_s23 }
  0x32   : > { %p2132_p6 = scmp.lt.s32.totalorder %s2130_s24, %s2123_s0 }
  0x33   : > { %p2126_p8 = pnand %p2124_p7, %p2600_p0 }
  0x34   : > { %p2133_p5 = por %p2132_p6, %p2131_p9 }
  0x35   : > { %p2127_p11 = pneg %p2126_p8 }
  0x37   : > { %p2134_p10 = pnand %p2133_p5, %p2127_p11 }
  0x39   : > { %2137 = shalt.err (!%p2134_p10)
}
  0x3a   : > { %1982 = dma.hbm_to_vmem [thread:$0]  (!%p2584_p12), %s3029_s4, 16, %s459_s23, [#allocation6]  }
  0x3b   : > { %s2138_s19 = scalar_lea.hbm %s2990_s7, 16 }
  0x3c   : > { %p2139_p13 = scmp.ne.s32.totalorder %s2990_s7, %s2138_s19  ;;  %p2145_p5 = scmp.lt.u32.totalorder %s2138_s19, %s2990_s7 }
  0x3e   : > { %p2141_p1 = pnand %p2139_p13, %p2600_p0 }
  0x40   : > { %p2142_p6 = pneg %p2141_p1 }
  0x42   : > { %p2147_p9 = pnand %p2145_p5, %p2142_p6 }
  0x44   : > { %2150 = shalt.err (!%p2147_p9)
}
  0x45   : > { %s2151_s23 = scalar_lea.vmem %s2588_s30, 16  ;;  %s2158_s16 = scalar_lea.vmem %s2588_s30, 32 }
  0x46   : > { %p2152_p10 = scmp.ne.s32.totalorder %s2588_s30, %s2151_s23  ;;  %p2159_p4 = scmp.lt.s32.totalorder %s2588_s30, %s2588_s30 }
  0x47   : > { %p2160_p7 = scmp.lt.s32.totalorder %s2158_s16, %s2151_s23 }
  0x48   : > { %p2154_p2 = pnand %p2152_p10, %p2600_p0 }
  0x49   : > { %p2161_p8 = por %p2160_p7, %p2159_p4 }
  0x4a   : > { %p2155_p3 = pneg %p2154_p2 }
  0x4c   : > { %p2162_p11 = pnand %p2161_p8, %p2155_p3 }
  0x4e   : > { %2165 = shalt.err (!%p2162_p11)
}
  0x4f   : > { %1988 = dma.hbm_to_vmem [thread:$0]  (!%p2584_p12), %s2990_s7, 16, %s2588_s30, [#allocation9]  }
  0x50   : > { %s2166_s22 = scalar_lea.hbm %s2993_s10, 16 }
  0x51   : > { %p2167_p13 = scmp.ne.s32.totalorder %s2993_s10, %s2166_s22  ;;  %p2173_p5 = scmp.lt.u32.totalorder %s2166_s22, %s2993_s10 }
  0x53   : > { %p2169_p1 = pnand %p2167_p13, %p2600_p0 }
  0x55   : > { %p2170_p6 = pneg %p2169_p1 }
  0x57   : > { %p2175_p9 = pnand %p2173_p5, %p2170_p6 }
  0x59   : > { %2178 = shalt.err (!%p2175_p9)
}
  0x5a   : > { %s2179_s30 = scalar_lea.vmem %s2590_s26, 16  ;;  %s2186_s16 = scalar_lea.vmem %s2590_s26, 32 }
  0x5b   : > { %p2180_p10 = scmp.ne.s32.totalorder %s2590_s26, %s2179_s30  ;;  %p2187_p4 = scmp.lt.s32.totalorder %s2590_s26, %s2590_s26 }
  0x5c   : > { %p2188_p7 = scmp.lt.s32.totalorder %s2186_s16, %s2179_s30 }
  0x5d   : > { %p2182_p2 = pnand %p2180_p10, %p2600_p0 }
  0x5e   : > { %p2189_p8 = por %p2188_p7, %p2187_p4 }
  0x5f   : > { %p2183_p3 = pneg %p2182_p2 }
  0x61   : > { %p2190_p11 = pnand %p2189_p8, %p2183_p3 }
  0x63   : > { %2193 = shalt.err (!%p2190_p11)
}
  0x64   : > { %1994 = dma.hbm_to_vmem [thread:$0]  (!%p2584_p12), %s2993_s10, 16, %s2590_s26, [#allocation12]  }
  0x65   : > { %s2421_s20 = smov [#allocation2]   ;;  %s2422_s22 = smov [#allocation7]  }
  0x66   : > { %s444_s17 = sshll.u32 %s2421_s20, 4  ;;  %s472_s19 = sshll.u32 %s2422_s22, 4  ;;  %s445_s17 = int_to_ptr.vmem [resolvable:$true] %s444_s17  ;;  %s473_s19 = int_to_ptr.vmem [resolvable:$true] %s472_s19 }
  0x67   : > { %s2194_s23 = scalar_lea.hbm %s2985_s2, 16 }
  0x68   : > { %p2195_p13 = scmp.ne.s32.totalorder %s2985_s2, %s2194_s23  ;;  %p2201_p5 = scmp.lt.u32.totalorder %s2194_s23, %s2985_s2 }
  0x6a   : > { %p2197_p1 = pnand %p2195_p13, %p2600_p0 }
  0x6c   : > { %p2198_p6 = pneg %p2197_p1 }
  0x6e   : > { %p2203_p9 = pnand %p2201_p5, %p2198_p6 }
  0x70   : > { %2206 = shalt.err (!%p2203_p9)
}
  0x71   : > { %s2207_s26 = scalar_lea.vmem %s445_s17, 16  ;;  %s2214_s27 = scalar_lea.vmem %s445_s17, 32 }
  0x72   : > { %p2208_p10 = scmp.ne.s32.totalorder %s445_s17, %s2207_s26  ;;  %p2215_p4 = scmp.lt.s32.totalorder %s445_s17, %s445_s17 }
  0x73   : > { %p2216_p7 = scmp.lt.s32.totalorder %s2214_s27, %s2207_s26 }
  0x74   : > { %p2210_p2 = pnand %p2208_p10, %p2600_p0 }
  0x75   : > { %p2217_p8 = por %p2216_p7, %p2215_p4 }
  0x76   : > { %p2211_p3 = pneg %p2210_p2 }
  0x78   : > { %p2218_p11 = pnand %p2217_p8, %p2211_p3 }
  0x7a   : > { %2221 = shalt.err (!%p2218_p11)
}
  0x7b   : > { %1979 = dma.hbm_to_vmem [thread:$0]  (!%p2584_p12), %s2985_s2, 16, %s445_s17, [#allocation3]  }
  0x7c   : > { %s2222_s24 = scalar_lea.hbm %s2989_s6, 16 }
  0x7d   : > { %p2223_p13 = scmp.ne.s32.totalorder %s2989_s6, %s2222_s24  ;;  %p2229_p5 = scmp.lt.u32.totalorder %s2222_s24, %s2989_s6 }
  0x7f   : > { %p2225_p1 = pnand %p2223_p13, %p2600_p0 }
  0x81   : > { %p2226_p6 = pneg %p2225_p1 }
  0x83   : > { %p2231_p9 = pnand %p2229_p5, %p2226_p6 }
  0x85   : > { %2234 = shalt.err (!%p2231_p9)
}
  0x86   : > { %s2235_s26 = scalar_lea.vmem %s473_s19, 16  ;;  %s2242_s17 = scalar_lea.vmem %s473_s19, 32 }
  0x87   : > { %p2236_p10 = scmp.ne.s32.totalorder %s473_s19, %s2235_s26  ;;  %p2243_p4 = scmp.lt.s32.totalorder %s473_s19, %s473_s19 }
  0x88   : > { %p2244_p7 = scmp.lt.s32.totalorder %s2242_s17, %s2235_s26 }
  0x89   : > { %p2238_p2 = pnand %p2236_p10, %p2600_p0 }
  0x8a   : > { %p2245_p8 = por %p2244_p7, %p2243_p4 }
  0x8b   : > { %p2239_p3 = pneg %p2238_p2 }
  0x8d   : > { %p2246_p11 = pnand %p2245_p8, %p2239_p3 }
  0x8f   : > { %2249 = shalt.err (!%p2246_p11)
}
  0x90   : > { %1985 = dma.hbm_to_vmem [thread:$0]  (!%p2584_p12), %s2989_s6, 16, %s473_s19, [#allocation6]  }
  0x91   : > { %s2423_s22 = smov [#allocation10]   ;;  %s2424_s0 = smov [#allocation13]  }
  0x92   : > { %s494_s4 = sshll.u32 %s2423_s22, 4  ;;  %s522_s24 = sshll.u32 %s2424_s0, 4  ;;  %s495_s4 = int_to_ptr.vmem [resolvable:$true] %s494_s4  ;;  %s523_s24 = int_to_ptr.vmem [resolvable:$true] %s522_s24 }
  0x93   : > { %s2250_s16 = scalar_lea.hbm %s2991_s8, 16 }
  0x94   : > { %p2251_p13 = scmp.ne.s32.totalorder %s2991_s8, %s2250_s16  ;;  %p2257_p5 = scmp.lt.u32.totalorder %s2250_s16, %s2991_s8 }
  0x96   : > { %p2253_p1 = pnand %p2251_p13, %p2600_p0 }
  0x98   : > { %p2254_p6 = pneg %p2253_p1 }
  0x9a   : > { %p2259_p9 = pnand %p2257_p5, %p2254_p6 }
  0x9c   : > { %2262 = shalt.err (!%p2259_p9)
}
  0x9d   : > { %s2263_s19 = scalar_lea.vmem %s495_s4, 16  ;;  %s2270_s20 = scalar_lea.vmem %s495_s4, 32 }
  0x9e   : > { %p2264_p10 = scmp.ne.s32.totalorder %s495_s4, %s2263_s19  ;;  %p2271_p4 = scmp.lt.s32.totalorder %s495_s4, %s495_s4 }
  0x9f   : > { %p2272_p7 = scmp.lt.s32.totalorder %s2270_s20, %s2263_s19 }
  0xa0   : > { %p2266_p2 = pnand %p2264_p10, %p2600_p0 }
  0xa1   : > { %p2273_p8 = por %p2272_p7, %p2271_p4 }
  0xa2   : > { %p2267_p3 = pneg %p2266_p2 }
  0xa4   : > { %p2274_p11 = pnand %p2273_p8, %p2267_p3 }
  0xa6   : > { %2277 = shalt.err (!%p2274_p11)
}
  0xa7   : > { %1991 = dma.hbm_to_vmem [thread:$0]  (!%p2584_p12), %s2991_s8, 16, %s495_s4, [#allocation9]  }
  0xa8   : > { %s2278_s16 = scalar_lea.hbm %s2995_s12, 16 }
  0xa9   : > { %p2279_p13 = scmp.ne.s32.totalorder %s2995_s12, %s2278_s16  ;;  %p2285_p5 = scmp.lt.u32.totalorder %s2278_s16, %s2995_s12 }
  0xab   : > { %p2281_p1 = pnand %p2279_p13, %p2600_p0 }
  0xad   : > { %p2282_p6 = pneg %p2281_p1 }
  0xaf   : > { %p2287_p9 = pnand %p2285_p5, %p2282_p6 }
  0xb1   : > { %2290 = shalt.err (!%p2287_p9)
}
  0xb2   : > { %s2291_s19 = scalar_lea.vmem %s523_s24, 16  ;;  %s2298_s4 = scalar_lea.vmem %s523_s24, 32 }
  0xb3   : > { %p2292_p10 = scmp.ne.s32.totalorder %s523_s24, %s2291_s19  ;;  %p2299_p4 = scmp.lt.s32.totalorder %s523_s24, %s523_s24 }
  0xb4   : > { %p2300_p7 = scmp.lt.s32.totalorder %s2298_s4, %s2291_s19 }
  0xb5   : > { %p2294_p2 = pnand %p2292_p10, %p2600_p0 }
  0xb6   : > { %p2301_p8 = por %p2300_p7, %p2299_p4 }
  0xb7   : > { %p2295_p3 = pneg %p2294_p2 }
  0xb9   : > { %p2302_p11 = pnand %p2301_p8, %p2295_p3 }
  0xbb   : > { %2305 = shalt.err (!%p2302_p11)
}
  0xbc   : > { %1997 = dma.hbm_to_vmem [thread:$0]  (!%p2584_p12), %s2995_s12, 16, %s523_s24, [#allocation12]  }
  0xbd   : > { %s2425_s0 = smov [#allocation14]   ;;  %s2306_s1 = scalar_lea.hbm %s2998_s15, 256 }
  0xbe   : > { %s538_s23 = sshll.u32 %s2425_s0, 4  ;;  %p2307_p13 = scmp.ne.s32.totalorder %s2998_s15, %s2306_s1  ;;  %s539_s23 = int_to_ptr.vmem [resolvable:$true] %s538_s23 }
  0xbf   : > { %p2313_p5 = scmp.lt.u32.totalorder %s2306_s1, %s2998_s15 }
  0xc0   : > { %p2309_p1 = pnand %p2307_p13, %p2600_p0 }
  0xc2   : > { %p2310_p6 = pneg %p2309_p1 }
  0xc4   : > { %p2315_p9 = pnand %p2313_p5, %p2310_p6 }
  0xc6   : > { %2318 = shalt.err (!%p2315_p9)
}
  0xc7   : > { %s2319_s24 = scalar_lea.vmem %s539_s23, 256  ;;  %p2327_p4 = scmp.lt.s32.totalorder %s539_s23, %s539_s23 }
  0xc8   : > { %p2320_p10 = scmp.ne.s32.totalorder %s539_s23, %s2319_s24  ;;  %p2328_p7 = scmp.lt.s32.totalorder %s2319_s24, %s2319_s24 }
  0xca   : > { %p2322_p2 = pnand %p2320_p10, %p2600_p0  ;;  %p2329_p8 = por %p2328_p7, %p2327_p4 }
  0xcc   : > { %p2323_p3 = pneg %p2322_p2 }
  0xce   : > { %p2330_p11 = pnand %p2329_p8, %p2323_p3 }
  0xd0   : > { %2333 = shalt.err (!%p2330_p11)
}
  0xd1   : > { %s2426_s4 = smov 64   ;;  %s2427_s20 = smov 4  }
  0xd2   : > { %2000 = dma.hbm_to_vmem [thread:$0]  (!%p2584_p12), %s2998_s15, 256, %s539_s23, [#allocation15], %s2426_s4, %s2426_s4, %s2427_s20  }
  0xd3   : > { %p3031_p13 = scmp.ne.s32.totalorder %s3027_s21, 0 }
  0xd4   : > { %p3032_p1 = scmp.eq.s32.totalorder (!%p3031_p13), %s2548_s28, 0 }
  0xd5   : > { %564 = sbr.rel (%p3031_p13) target bundleno = 2826 (0xb0a), region = 88 }
  0xdc   : > { %2379 = dma.done.wait (%p3032_p1), [#allocation3], 16   ;;  %p3033_p0 = pmov %p3032_p1 }
  0xde   : > { %2381 = vsyncadd (%p3033_p0), [#allocation3], 4294967280  ;;  %p3034_p6 = pmov %p3033_p0 }
  0xdf   : > { %p3035_p5 = pmov %p3033_p0 }
  0xe0   : > { %2383 = dma.done.wait (%p3034_p6), [#allocation6], 32  }
  0xe1   : > { %2385 = vsyncadd (%p3035_p5), [#allocation6], 4294967264  ;;  %p3036_p9 = pmov %p3033_p0 }
  0xe2   : > { %p3037_p12 = pmov %p3033_p0 }
  0xe3   : > { %2387 = dma.done.wait (%p3036_p9), [#allocation9], 32  }
  0xe4   : > { %2389 = vsyncadd (%p3037_p12), [#allocation9], 4294967264  ;;  %p3038_p10 = pmov %p3033_p0 }
  0xe5   : > { %p3039_p2 = pmov %p3033_p0 }
  0xe6   : > { %2391 = dma.done.wait (%p3038_p10), [#allocation12], 32  }
  0xe7   : > { %2393 = vsyncadd (%p3039_p2), [#allocation12], 4294967264  ;;  %p3040_p3 = pmov %p3033_p0 }
  0xe8   : > { %p3041_p4 = pmov %p3033_p0 }
  0xe9   : > { %2395 = dma.done.wait (%p3040_p3), [#allocation15], 256  }
  0xea   : > { %2397 = vsyncadd (%p3041_p4), [#allocation15], 4294967040  ;;  %p643_p7 = scmp.lt.s32.totalorder %s2548_s28, 1  ;;  %s3042_s30 = sld [smem:[#allocation30_spill]]  ;;  %vm665_vm0 = vcmask 261120   ;;  %v2072_v7 = vld [vmem:[%s2986_s3] sm:$0xff]  }
  0xeb   : > { %v2428_v8 = vmov 0.0   ;;  %vm2429_vm1 = vmmov 0   ;;  %v2073_v9 = vld [vmem:[%s2986_s3 + $0x8] sm:$0xff]   ;;  %s3043_s4 = sld [smem:[#allocation31_spill]]  ;;  %v1765_v16 = vld [vmem:[#allocation2] ss:$0 sm:$0xff] }
  0xec   : > { %s644_s21 = scalar_select %p643_p7, %s2548_s28, 1  ;;  %1842 = vmatprep.subr.bf16.mxu0 %v2428_v8  ;;  %1846 = vmatprep.mubr.msk.bf16.mxu0 %vm2429_vm1, %v2428_v8  ;;  %v2074_v20 = vld [vmem:[%s2988_s5] sm:$0xff]   ;;  %v2075_v21 = vld [vmem:[%s2988_s5 + $0x8] sm:$0xff]   ;;  %v2076_v22 = vld [vmem:[%s2988_s5 + $0x10] sm:$0xff]   ;;  %vm793_vm2 = vcmask 523264   ;;  %vm1126_vm3 = vcmask 1043456  }
  0xed   : > { %1843 = vmatpush3.bf16.msra.mxu0 %v2072_v7  ;;  %1850 = vmatprep.subr.bf16.mxu1 %v2428_v8  ;;  %v2077_v23 = vld [vmem:[%s2988_s5 + $0x18] sm:$0xff]   ;;  %v1766_v24 = vld [vmem:[#allocation5] ss:$0 sm:$0xff]  ;;  %v1770_v37 = vld [vmem:[#allocation7] ss:$0 sm:$0xff]  ;;  %s2430_s23 = smov 120  }
  0xee   : > { %s1763_s18 = sshll.u32 %s644_s21, 3  ;;  %1844 = vmatprep.subr.bf16.mxu0 %v2428_v8  ;;  %1858 = vmatprep.mubr.msk.bf16.mxu1 %vm2429_vm1, %v2428_v8  ;;  %v2078_v51 = vld [vmem:[%s2992_s9] sm:$0xff]   ;;  %v2080_v53 = vld [vmem:[%s2992_s9 + $0x8] sm:$0xff]   ;;  %vm1064_vm4 = vcmask 64512   ;;  %s2433_s1 = smov 8   ;;  %vm1516_vm5 = vcmask 130048  }
  0xef   : > { %1851 = vmatpush3.bf16.msra.mxu1 %v2074_v20  ;;  %v2079_v52 = vld [vmem:[%s2996_s13] sm:$0xff]   ;;  %v2081_v54 = vld [vmem:[%s2996_s13 + $0x8] sm:$0xff]   ;;  %s2434_s26 = smov 16   ;;  %s2435_s17 = smov 24   ;;  %vm1518_vm6 = vcmask 195584  }
  0xf0   : > { %s646_s16 = scalar_lea.vmem %s3042_s30, %s1763_s18  ;;  %1852 = vmatprep.subr.bf16.mxu1 %v2428_v8  ;;  %v1776_v59 = vld [vmem:[#allocation8] ss:$0 sm:$0xff]  ;;  %v1777_v61 = vld [vmem:[#allocation10] ss:$0 sm:$0xff]  ;;  %s2431_s30 = smov 112  }
  0xf1   : > { %v2781_v0 = vld [vmem:[%s646_s16] sm:$0xff]  ;;  %1845 = vmatpush3.bf16.msra.mxu0 %v2073_v9  ;;  %s2432_s16 = smov 104   ;;  %s640_s27 = sand.u32 1, %s2408_s25  }
  0xf2   : > { %v666_v1 = vsel %vm665_vm0, %v2781_v0, 0.0  ;;  %1862 = vmatprep.subr.bf16.mxu0 %v2428_v8  ;;  %v1764_v14 = vld [vmem:[%s3043_s4] ss:$0 sm:$0xff]  ;;  %s1762_s19 = sshll.u32 %s640_s27, 3  ;;  %s3044_s20 = sld [smem:[#allocation33_spill]] }
  0xf3   : > { %667 = vadd.xlane.f32.xlu0 %v666_v1  ;;  %1853 = vmatpush3.bf16.msra.mxu1 %v2075_v21  ;;  %s3045_s22 = sld [smem:[#allocation28_spill]]  ;;  %s1803_s0 = sshll.u32 %s2548_s28, 7 }
  0xf4   : > { %1854 = vmatprep.subr.bf16.mxu1 %v2428_v8  ;;  %s642_s21 = scalar_lea.vmem [#allocation16], %s1762_s19 }
  0xf5   : > { %s1604_s18 = sshll.u32 %s642_s21, 4  ;;  %s2942_s18 = int_to_ptr.vmem [resolvable:$true] %s1604_s18 }
  0xf6   : > { %s2334_s28 = scalar_lea.vmem %s2942_s18, 128 }
  0xf7   : > { %1855 = vmatpush3.bf16.msra.mxu1 %v2076_v22  ;;  %p2335_p8 = scmp.ne.s32.totalorder %s2942_s18, %s2334_s28 }
  0xf8   : > { %1856 = vmatprep.subr.bf16.mxu1 %v2428_v8 }
  0xf9   : > { %p3047_p11 = scmp.ne.s32.totalorder %s3045_s22, 0 }
  0xfb   : > { %1857 = vmatpush3.bf16.msra.mxu1 %v2077_v23  ;;  %p2336_p13 = pnand %p2335_p8, %p3047_p11 }
  0xfc   : > { %1878 = vmatprep.subr.bf16.mxu1 %v2428_v8 }
  0xfd   : > { %p2337_p1 = pneg %p2336_p13 }
 0x180   : > { %v668_v2 = vpop.xlane.xlu0 %667 }
 0x181   : > { %v670_v3 = vmul.f32 0.03125, %v668_v2  ;;  %v2083_v2 = vld [vmem:[%s2994_s11 + $0x8] sm:$0xff]  }
 0x183   : > { %v671_v4 = vsub.f32 %v2781_v0, %v670_v3  ;;  %v1778_v3 = vld [vmem:[#allocation11] ss:$0 sm:$0xff] }
 0x185   : > { %v672_v5 = vmul.f32 %v671_v4, %v671_v4 }
 0x187   : > { %v673_v6 = vsel %vm665_vm0, %v672_v5, 0.0 }
 0x188   : > { %674 = vadd.xlane.f32.xlu0 %v673_v6 }
 0x215   : > { %v675_v10 = vpop.xlane.xlu0 %674 }
 0x216   : > { %v676_v11 = vmul.f32 0.03125, %v675_v10 }
 0x218   : > { %v677_v12 = vadd.f32 1e-05, %v676_v11 }
 0x21a   : > { %2086 = vrsqrt.f32 %v677_v12 }
 0x224   : > { %v2087_v13 = vpop.eup %2086 }
 0x225   : > { %v679_v15 = vmul.f32 %v2087_v13, %v671_v4  ;;  %v1786_v4 = vld [vmem:[%s2997_s14] ss:$0 sm:$0xff] }
 0x227   : > { %v686_v17 = vmul.f32 %v1764_v14, %v679_v15 }
 0x229   : > { %v693_v18 = vadd.f32 %v1765_v16, %v686_v17 }
 0x22b   : > { %v694_v19 = vpack.c.bf16 %v693_v18, %v693_v18 }
 0x22d   : > { %1847 = vmatmul.mubr.msk.bf16.vlgmr.msra.gmra.mrb[0].mxu0 %vm665_vm0, %v694_v19  ;;  %v1782_v19 = vld [vmem:[#allocation13] ss:$0 sm:$0xff] }
 0x22e   : > { %1866 = vmatprep.mubr.msk.bf16.mxu0 %vm2429_vm1, %v2428_v8  ;;  %1863 = vmatpush3.bf16.msra.mxu0 %v2078_v51 }
 0x22f   : > { %1864 = vmatprep.subr.bf16.mxu0 %v2428_v8 }
 0x232   : > { %1865 = vmatpush3.bf16.msra.mxu0 %v2080_v53 }
 0x233   : > { %1870 = vmatprep.subr.bf16.mxu0 %v2428_v8 }
 0x300   : > { %v750_v25 = vpop.f32.mrb[0].mxu0 }
 0x301   : > { %v751_v26 = vadd.f32 %v1766_v24, %v750_v25  ;;  %v1848_v27 = vpop.f32.mrb[1].mxu0 }
 0x302   : > { %v753_v28 = vpop.f32.mrb[2].mxu0 }
 0x303   : > { %v756_v29 = vsub.f32 0.0, %v751_v26  ;;  %v1849_v30 = vpop.f32.mrb[3].mxu0 }
 0x305   : > { %v757_v31 = vmul.f32 1.442695, %v756_v29 }
 0x307   : > { %2088 = vpow2.f32 %v757_v31 }
 0x311   : > { %v2089_v32 = vpop.eup %2088 }
 0x312   : > { %v759_v33 = vadd.f32 1.0, %v2089_v32 }
 0x314   : > { %2090 = vrcp.f32 %v759_v33 }
 0x31e   : > { %v2091_v34 = vpop.eup %2090 }
 0x31f   : > { %v761_v35 = vmul.f32 %v2091_v34, %v751_v26 }
 0x321   : > { %v762_v36 = vpack.c.bf16 %v761_v35, %v761_v35 }
 0x323   : > { %1859 = vmatmul.mubr.msk.bf16.vlgmr.msra.gmra.mrb[0].mxu1 %vm793_vm2, %v762_v36 }
 0x324   : > { %1882 = vmatprep.mubr.msk.bf16.mxu1 %vm2429_vm1, %v2428_v8  ;;  %1879 = vmatpush3.bf16.msra.mxu1 %v2079_v52 }
 0x325   : > { %1880 = vmatprep.subr.bf16.mxu1 %v2428_v8 }
 0x328   : > { %1881 = vmatpush3.bf16.msra.mxu1 %v2081_v54 }
 0x329   : > { %1892 = vmatprep.subr.bf16.mxu1 %v2428_v8 }
 0x3f6   : > { %v831_v38 = vpop.f32.mrb[0].mxu1 }
 0x3f7   : > { %v832_v39 = vadd.f32 %v1770_v37, %v831_v38  ;;  %v1860_v40 = vpop.f32.mrb[1].mxu1 }
 0x3f8   : > { %v834_v41 = vpop.f32.mrb[2].mxu1 }
 0x3f9   : > { %v837_v42 = vmul.f32 0.5, %v832_v39  ;;  %v1861_v43 = vpop.f32.mrb[3].mxu1 }
 0x3fb   : > { %v2826_v44 = vadd.f32 %v837_v42, %v2781_v0  ;;  %v2082_v0 = vld [vmem:[%s2994_s11] sm:$0xff]  }
 0x3fd   : > { %v841_v45 = vsel %vm665_vm0, %v2826_v44, 0.0 }
 0x3fe   : > { %842 = vadd.xlane.f32.xlu1 %v841_v45 }
 0x48b   : > { %v843_v46 = vpop.xlane.xlu1 %842 }
 0x48c   : > { %v844_v47 = vmul.f32 0.03125, %v843_v46 }
 0x48e   : > { %v845_v48 = vsub.f32 %v2826_v44, %v844_v47 }
 0x490   : > { %v846_v49 = vmul.f32 %v845_v48, %v845_v48 }
 0x492   : > { %v847_v50 = vsel %vm665_vm0, %v846_v49, 0.0 }
 0x493   : > { %848 = vadd.xlane.f32.xlu1 %v847_v50 }
 0x520   : > { %v849_v55 = vpop.xlane.xlu1 %848 }
 0x521   : > { %v850_v56 = vmul.f32 0.03125, %v849_v55 }
 0x523   : > { %v851_v57 = vadd.f32 1e-05, %v850_v56 }
 0x525   : > { %2092 = vrsqrt.f32 %v851_v57 }
 0x52f   : > { %v2093_v58 = vpop.eup %2092 }
 0x530   : > { %v853_v60 = vmul.f32 %v2093_v58, %v845_v48 }
 0x532   : > { %v860_v62 = vmul.f32 %v1776_v59, %v853_v60 }
 0x534   : > { %v867_v63 = vadd.f32 %v1777_v61, %v860_v62 }
 0x536   : > { %v868_v1 = vpack.c.bf16 %v867_v63, %v867_v63 }
 0x538   : > { %1867 = vmatmul.mubr.msk.bf16.vlgmr.msra.gmra.mrb[4].mxu0 %vm665_vm0, %v868_v1  ;;  %1883 = vmatmul.mubr.msk.bf16.vlgmr.msra.gmra.mrb[4].mxu1 %vm665_vm0, %v868_v1 }
 0x539   : > { %1871 = vmatpush3.bf16.msra.mxu0 %v2082_v0  ;;  %1874 = vmatprep.mubr.msk.bf16.mxu0 %vm2429_vm1, %v2428_v8 }
 0x53a   : > { %1872 = vmatprep.subr.bf16.mxu0 %v2428_v8  ;;  %1894 = vmatprep.mubr.msk.bf16.mxu1 %vm2429_vm1, %v2428_v8 }
 0x53d   : > { %1873 = vmatpush3.bf16.msra.mxu0 %v2083_v2 }
 0x53e   : > { %1886 = vmatprep.subr.bf16.mxu0 %v2428_v8 }
 0x540   : > { %1875 = vmatmul.mubr.msk.bf16.vlgmr.msra.gmra.mrb[8].mxu0 %vm665_vm0, %v868_v1 }
 0x541   : > { %1888 = vmatprep.mubr.msk.bf16.mxu0 %vm2429_vm1, %v2428_v8 }
 0x60b   : > { %v929_v5 = vpop.f32.mrb[4].mxu0  ;;  %v1055_v6 = vpop.f32.mrb[4].mxu1 }
 0x60c   : > { %v930_v7 = vadd.f32 %v1778_v3, %v929_v5  ;;  %v1056_v9 = vadd.f32 %v1786_v4, %v1055_v6  ;;  %v1868_v10 = vpop.f32.mrb[5].mxu0  ;;  %v1884_v11 = vpop.f32.mrb[5].mxu1 }
 0x60d   : > { %v932_v12 = vpop.f32.mrb[6].mxu0  ;;  %v1058_v13 = vpop.f32.mrb[6].mxu1 }
 0x60e   : > { %v1061_v14 = vpack.c.bf16 %v930_v7, %v930_v7  ;;  %v2868_v15 = vpack.c.bf16 %v1056_v9, %v1056_v9  ;;  %v1869_v16 = vpop.f32.mrb[7].mxu0  ;;  %v1885_v17 = vpop.f32.mrb[7].mxu1 }
 0x610   : > { %1171 = vrot.lane.b32.xlu1 %v1061_v14, %s2430_s23  ;;  %v1128_v18 = vsel %vm1126_vm3, %v2868_v15, 0 }
 0x611   : > { %1893 = vmatpush3.bf16.msra.mxu1 %v1128_v18 }
 0x612   : > { %1904 = vmatprep.subr.bf16.mxu1 %v2428_v8 }
 0x613   : > { %v992_v20 = vpop.f32.mrb[8].mxu0 }
 0x614   : > { %v993_v21 = vadd.f32 %v1782_v19, %v992_v20  ;;  %v1876_v22 = vpop.f32.mrb[9].mxu0 }
 0x615   : > { %v995_v23 = vpop.f32.mrb[10].mxu0 }
 0x616   : > { %v1062_v24 = vpack.c.bf16 %v993_v21, %v993_v21  ;;  %v1877_v25 = vpop.f32.mrb[11].mxu0 }
 0x618   : > { %1285 = vrot.lane.b32.xlu1 %v1062_v24, %s2431_s30  ;;  %1174 = vrot.lane.b32.xlu0 %v1062_v24, %s2430_s23  ;;  %v1069_v26 = vsel %vm1064_vm4, %v1062_v24, 0 }
 0x619   : > { %1887 = vmatpush3.bf16.xpose.msra.mxu0 %v1069_v26 }
 0x61a   : > { %1898 = vmatprep.subr.bf16.mxu0 %v2428_v8 }
 0x61c   : > { %1283 = vrot.lane.b32.xlu1 %v1061_v14, %s2431_s30  ;;  %1395 = vrot.lane.b32.xlu0 %v1062_v24, %s2432_s16 }
 0x620   : > { %1393 = vrot.lane.b32.xlu1 %v1061_v14, %s2432_s16  ;;  %1889 = vmatmul.mubr.msk.bf16.vlgmr.msra.gmra.mrb[12].mxu0 %vm1064_vm4, %v1061_v14 }
 0x621   : > { %1900 = vmatprep.mubr.msk.bf16.mxu0 %vm2429_vm1, %v2428_v8 }
 0x682   : > { %v1172_v29 = vpop.permute.xlu1 %1171 }
 0x68a   : > { %v1175_v27 = vpop.permute.xlu0 %1174  ;;  %v1286_v30 = vpop.permute.xlu1 %1285 }
 0x68b   : > { %v1180_v28 = vsel %vm1064_vm4, %v1175_v27, 0  ;;  %v1291_v31 = vsel %vm1064_vm4, %v1286_v30, 0 }
 0x68c   : > { %1899 = vmatpush3.bf16.xpose.msra.mxu0 %v1180_v28 }
 0x68d   : > { %1910 = vmatprep.subr.bf16.mxu0 %v2428_v8 }
 0x68e   : > { %v1396_v32 = vpop.permute.xlu0 %1395  ;;  %v1284_v33 = vpop.permute.xlu1 %1283 }
 0x68f   : > { %v1401_v34 = vsel %vm1064_vm4, %v1396_v32, 0 }
 0x692   : > { %v1394_v35 = vpop.permute.xlu1 %1393 }
 0x693   : > { %1901 = vmatmul.mubr.msk.bf16.vlgmr.msra.gmra.mrb[16].mxu0 %vm1064_vm4, %v1172_v29 }
 0x694   : > { %1911 = vmatpush3.bf16.xpose.msra.mxu0 %v1291_v31  ;;  %1912 = vmatprep.mubr.msk.bf16.mxu0 %vm2429_vm1, %v2428_v8 }
 0x695   : > { %1922 = vmatprep.subr.bf16.mxu0 %v2428_v8 }
 0x69b   : > { %1913 = vmatmul.mubr.msk.bf16.vlgmr.msra.gmra.mrb[20].mxu0 %vm1064_vm4, %v1284_v33 }
 0x69c   : > { %1923 = vmatpush3.bf16.xpose.msra.mxu0 %v1401_v34  ;;  %1924 = vmatprep.mubr.msk.bf16.mxu0 %vm2429_vm1, %v2428_v8 }
 0x69d   : > { %1934 = vmatprep.subr.bf16.mxu0 %v2428_v8 }
 0x6a3   : > { %1925 = vmatmul.mubr.msk.bf16.vlgmr.msra.gmra.mrb[24].mxu0 %vm1064_vm4, %v1394_v35 }
 0x6a4   : > { %1938 = vmatprep.mubr.msk.bf16.mxu0 %vm2429_vm1, %v2428_v8 }
 0x6f3   : > { %v1105_v36 = vpop.f32.mrb[12].mxu0 }
 0x6f4   : > { %v1890_v37 = vpop.f32.mrb[13].mxu0  ;;  %v1111_v38 = vsel %vm1064_vm4, %v1105_v36, -inf }
 0x6f5   : > { %1112 = vmax.xlane.f32.xlu0 %v1111_v38  ;;  %v1108_v39 = vpop.f32.mrb[14].mxu0 }
 0x6f6   : > { %v1891_v40 = vpop.f32.mrb[15].mxu0 }
 0x6f7   : > { %v2084_v40 = vld [vmem:[#allocation14] sm:$0xff]  }
 0x6f8   : > { %1935 = vmatpush3.bf16.msra.mxu0 %v2084_v40 }
 0x6f9   : > { %1936 = vmatprep.subr.bf16.mxu0 %v2428_v8 }
 0x766   : > { %v1216_v41 = vpop.f32.mrb[16].mxu0 }
 0x767   : > { %v1902_v42 = vpop.f32.mrb[17].mxu0  ;;  %v1222_v43 = vsel %vm1064_vm4, %v1216_v41, -inf }
 0x768   : > { %1223 = vmax.xlane.f32.xlu1 %v1222_v43  ;;  %v1219_v45 = vpop.f32.mrb[18].mxu0 }
 0x769   : > { %v1903_v46 = vpop.f32.mrb[19].mxu0 }
 0x76e   : > { %v1327_v47 = vpop.f32.mrb[20].mxu0 }
 0x76f   : > { %v1914_v48 = vpop.f32.mrb[21].mxu0  ;;  %v1333_v49 = vsel %vm1064_vm4, %v1327_v47, -inf }
 0x770   : > { %1334 = vmax.xlane.f32.xlu0 %v1333_v49  ;;  %v1330_v50 = vpop.f32.mrb[22].mxu0 }
 0x771   : > { %v1915_v51 = vpop.f32.mrb[23].mxu0  ;;  %v2085_v50 = vld [vmem:[#allocation14 + $0x8] sm:$0xff]  }
 0x772   : > { %1937 = vmatpush3.bf16.msra.mxu0 %v2085_v50 }
 0x776   : > { %v1437_v52 = vpop.f32.mrb[24].mxu0 }
 0x777   : > { %v1926_v53 = vpop.f32.mrb[25].mxu0  ;;  %v1443_v54 = vsel %vm1064_vm4, %v1437_v52, -inf }
 0x778   : > { %1444 = vmax.xlane.f32.xlu0 %v1443_v54  ;;  %v1440_v55 = vpop.f32.mrb[26].mxu0 }
 0x779   : > { %v1927_v56 = vpop.f32.mrb[27].mxu0 }
 0x782   : > { %v1113_v57 = vpop.xlane.xlu0 %1112 }
 0x783   : > { %v1114_v58 = vsub.f32 %v1105_v36, %v1113_v57 }
 0x785   : > { %v1115_v59 = vmul.f32 1.442695, %v1114_v58 }
 0x787   : > { %2094 = vpow2.f32 %v1115_v59 }
 0x791   : > { %v2095_v60 = vpop.eup %2094 }
 0x792   : > { %v1117_v61 = vsel %vm1064_vm4, %v2095_v60, 0.0 }
 0x793   : > { %1118 = vadd.xlane.f32.xlu0 %v1117_v61  ;;  %v1798_v61 = vld [vmem:[%s3044_s20] ss:$0 sm:$0xff] }
 0x7f5   : > { %v1224_v62 = vpop.xlane.xlu1 %1223 }
 0x7f6   : > { %v1225_v63 = vsub.f32 %v1216_v41, %v1224_v62 }
 0x7f8   : > { %v1226_v0 = vmul.f32 1.442695, %v1225_v63 }
 0x7fa   : > { %2096 = vpow2.f32 %v1226_v0 }
 0x7fd   : > { %v1335_v1 = vpop.xlane.xlu0 %1334 }
 0x7fe   : > { %v1336_v2 = vsub.f32 %v1327_v47, %v1335_v1 }
 0x800   : > { %v1337_v3 = vmul.f32 1.442695, %v1336_v2 }
 0x802   : > { %2098 = vpow2.f32 %v1337_v3 }
 0x804   : > { %v2097_v4 = vpop.eup %2096 }
 0x805   : > { %v1228_v5 = vsel %vm1064_vm4, %v2097_v4, 0.0  ;;  %v1445_v9 = vpop.xlane.xlu0 %1444 }
 0x806   : > { %1229 = vadd.xlane.f32.xlu1 %v1228_v5  ;;  %v1446_v11 = vsub.f32 %v1437_v52, %v1445_v9 }
 0x808   : > { %v1447_v12 = vmul.f32 1.442695, %v1446_v11 }
 0x80c   : > { %v2099_v6 = vpop.eup %2098 }
 0x80d   : > { %v1339_v7 = vsel %vm1064_vm4, %v2099_v6, 0.0 }
 0x80e   : > { %1340 = vadd.xlane.f32.xlu0 %v1339_v7 }
 0x817   : > { %1345 = vrot.lane.b32.xlu1 %v2868_v15, %s2431_s30  ;;  %s3046_s30 = sld [smem:[#allocation34_spill]] }
 0x820   : > { %v1119_v10 = vpop.xlane.xlu0 %1118 }
 0x821   : > { %2100 = vrcp.f32 %v1119_v10 }
 0x822   : > { %2102 = vpow2.f32 %v1447_v12 }
 0x824   : > { %1235 = vrot.lane.b32.xlu0 %v2868_v15, %s2430_s23 }
 0x82b   : > { %v2101_v13 = vpop.eup %2100 }
 0x82c   : > { %v1121_v14 = vmul.f32 %v2101_v13, %v2095_v60  ;;  %v2103_v17 = vpop.eup %2102 }
 0x82d   : > { %v1449_v18 = vsel %vm1064_vm4, %v2103_v17, 0.0 }
 0x82e   : > { %v1122_v16 = vpack.c.bf16 %v1121_v14, %v1121_v14 }
 0x830   : > { %1895 = vmatmul.mubr.msk.bf16.vlgmr.msra.gmra.mrb[8].mxu1 %vm1064_vm4, %v1122_v16 }
 0x831   : > { %1906 = vmatprep.mubr.msk.bf16.mxu1 %vm2429_vm1, %v2428_v8 }
 0x83b   : > { %1450 = vadd.xlane.f32.xlu1 %v1449_v18 }
 0x84c   : > { %1455 = vrot.lane.b32.xlu1 %v2868_v15, %s2432_s16  ;;  %s2940_s16 = scalar_lea.hbm %s3046_s30, %s1803_s0 }
 0x893   : > { %v1230_v19 = vpop.xlane.xlu1 %1229 }
 0x894   : > { %2104 = vrcp.f32 %v1230_v19 }
 0x897   : > { %v1346_v25 = vpop.permute.xlu1 %1345 }
 0x898   : > { %v1351_v27 = vsel %vm1126_vm3, %v1346_v25, 0 }
 0x89b   : > { %v1341_v20 = vpop.xlane.xlu0 %1340 }
 0x89c   : > { %2106 = vrcp.f32 %v1341_v20 }
 0x89e   : > { %v2105_v21 = vpop.eup %2104 }
 0x89f   : > { %v1232_v22 = vmul.f32 %v2105_v21, %v2097_v4  ;;  %v1236_v23 = vpop.permute.xlu0 %1235 }
 0x8a0   : > { %v1241_v24 = vsel %vm1126_vm3, %v1236_v23, 0 }
 0x8a1   : > { %1905 = vmatpush3.bf16.msra.mxu1 %v1241_v24  ;;  %v1233_v26 = vpack.c.bf16 %v1232_v22, %v1232_v22 }
 0x8a2   : > { %1916 = vmatprep.subr.bf16.mxu1 %v2428_v8 }
 0x8a4   : > { %1907 = vmatmul.mubr.msk.bf16.vlgmr.msra.gmra.mrb[12].mxu1 %vm1064_vm4, %v1233_v26 }
 0x8a5   : > { %1917 = vmatpush3.bf16.msra.mxu1 %v1351_v27  ;;  %1918 = vmatprep.mubr.msk.bf16.mxu1 %vm2429_vm1, %v2428_v8 }
 0x8a6   : > { %v2107_v15 = vpop.eup %2106  ;;  %1928 = vmatprep.subr.bf16.mxu1 %v2428_v8 }
 0x8a7   : > { %v1343_v28 = vmul.f32 %v2107_v15, %v2099_v6 }
 0x8a9   : > { %v1344_v29 = vpack.c.bf16 %v1343_v28, %v1343_v28 }
 0x8ac   : > { %1919 = vmatmul.mubr.msk.bf16.vlgmr.msra.gmra.mrb[16].mxu1 %vm1064_vm4, %v1344_v29 }
 0x8ad   : > { %1930 = vmatprep.mubr.msk.bf16.mxu1 %vm2429_vm1, %v2428_v8 }
 0x8c8   : > { %v1451_v30 = vpop.xlane.xlu1 %1450 }
 0x8c9   : > { %2108 = vrcp.f32 %v1451_v30 }
 0x8cc   : > { %v1456_v31 = vpop.permute.xlu1 %1455 }
 0x8cd   : > { %v1461_v32 = vsel %vm1126_vm3, %v1456_v31, 0 }
 0x8ce   : > { %1929 = vmatpush3.bf16.msra.mxu1 %v1461_v32 }
 0x8d3   : > { %v2109_v33 = vpop.eup %2108 }
 0x8d4   : > { %v1453_v34 = vmul.f32 %v2109_v33, %v2103_v17 }
 0x8d6   : > { %v1454_v35 = vpack.c.bf16 %v1453_v34, %v1453_v34 }
 0x8d8   : > { %1931 = vmatmul.mubr.msk.bf16.vlgmr.msra.gmra.mrb[20].mxu1 %vm1064_vm4, %v1454_v35 }
 0x903   : > { %v1164_v36 = vpop.f32.mrb[8].mxu1 }
 0x904   : > { %v1896_v37 = vpop.f32.mrb[9].mxu1 }
 0x905   : > { %v1167_v38 = vpop.f32.mrb[10].mxu1 }
 0x906   : > { %v1897_v39 = vpop.f32.mrb[11].mxu1 }
 0x977   : > { %v1277_v41 = vpop.f32.mrb[12].mxu1 }
 0x978   : > { %1504 = vrot.lane.b32.xlu1 %v1277_v41, %s2433_s1  ;;  %v1908_v42 = vpop.f32.mrb[13].mxu1  ;;  %s1591_s1 = scalar_lea.sflag [#allocation4], %s640_s27 }
 0x979   : > { %v1280_v43 = vpop.f32.mrb[14].mxu1 }
 0x97a   : > { %v1909_v45 = vpop.f32.mrb[15].mxu1 }
 0x97f   : > { %v1387_v46 = vpop.f32.mrb[16].mxu1 }
 0x980   : > { %1508 = vrot.lane.b32.xlu0 %v1387_v46, %s2434_s26  ;;  %v1920_v47 = vpop.f32.mrb[17].mxu1  ;;  %s2436_s26 = smov [#allocation16]  }
 0x981   : > { %v1390_v48 = vpop.f32.mrb[18].mxu1 }
 0x982   : > { %v1921_v49 = vpop.f32.mrb[19].mxu1 }
 0x9ab   : > { %v1497_v51 = vpop.f32.mrb[20].mxu1 }
 0x9ac   : > { %1512 = vrot.lane.b32.xlu1 %v1497_v51, %s2435_s17  ;;  %v1932_v52 = vpop.f32.mrb[21].mxu1  ;;  %s2338_s17 = sshll.u32 %s2436_s26, 4  ;;  %s2339_s17 = int_to_ptr.vmem [resolvable:$false] %s2338_s17 }
 0x9ad   : > { %v1500_v8 = vpop.f32.mrb[22].mxu1  ;;  %s2340_s19 = scalar_lea.vmem %s2339_s17, 256  ;;  %p2341_p0 = scmp.lt.s32.totalorder %s2942_s18, %s2339_s17 }
 0x9ae   : > { %v1933_v53 = vpop.f32.mrb[23].mxu1  ;;  %p2342_p6 = scmp.lt.s32.totalorder %s2340_s19, %s2334_s28 }
 0x9b0   : > { %p2343_p5 = por %p2342_p6, %p2341_p0 }
 0x9b2   : > { %p2344_p9 = pnand %p2343_p5, %p2337_p1 }
 0x9ea   : > { %v1505_v54 = vpop.permute.xlu1 %1504 }
 0x9eb   : > { %v1515_v56 = vsel %vm1064_vm4, %v1164_v36, %v1505_v54 }
 0x9f2   : > { %v1509_v55 = vpop.permute.xlu0 %1508 }
 0x9f3   : > { %v1517_v57 = vsel %vm1516_vm5, %v1515_v56, %v1509_v55 }
 0xa1e   : > { %v1513_v58 = vpop.permute.xlu1 %1512 }
 0xa1f   : > { %v1519_v59 = vsel %vm1518_vm6, %v1517_v57, %v1513_v58 }
 0xa20   : > { %v1524_v60 = vpack.c.bf16 %v1519_v59, %v1519_v59 }
 0xa22   : > { %1939 = vmatmul.mubr.msk.bf16.vlgmr.msra.gmra.mrb[28].mxu0 %vm665_vm0, %v1524_v60 }
 0xaf5   : > { %v1581_v62 = vpop.f32.mrb[28].mxu0 }
 0xaf6   : > { %v1582_v63 = vadd.f32 %v1798_v61, %v1581_v62  ;;  %v1940_v0 = vpop.f32.mrb[29].mxu0 }
 0xaf7   : > { %v1584_v1 = vpop.f32.mrb[30].mxu0 }
 0xaf8   : > { %v1587_v2 = vmul.f32 0.5, %v1582_v63  ;;  %v1941_v3 = vpop.f32.mrb[31].mxu0 }
 0xafa   : > { %v1588_v4 = vadd.f32 %v1587_v2, %v2826_v44 }
 0xafc   : > { %1589 = vst.msk [vmem:[%s642_s21] sm:$0xff] %vm665_vm0, %v1588_v4 }
 0xafd   : > { %2347 = shalt.err (!%p2344_p9)
}
 0xafe   : > { %s2348_s27 = scalar_lea.hbm %s2940_s16, 128  ;;  %s2352_s20 = scalar_lea.hbm %s3046_s30, 256 }
 0xaff   : > { %p2349_p12 = scmp.ne.s32.totalorder %s2940_s16, %s2348_s27  ;;  %p2353_p3 = scmp.lt.u32.totalorder %s2940_s16, %s3046_s30 }
 0xb00   : > { %p2354_p4 = scmp.lt.u32.totalorder %s2352_s20, %s2348_s27  ;;  %p2356_p8 = scmp.lt.u32.totalorder %s2348_s27, %s2940_s16 }
 0xb01   : > { %p2350_p10 = pnand %p2349_p12, %p3047_p11 }
 0xb02   : > { %p2355_p7 = por %p2354_p4, %p2353_p3 }
 0xb03   : > { %p2351_p2 = pneg %p2350_p10 }
 0xb04   : > { %p2357_p13 = por %p2356_p8, %p2355_p7 }
 0xb06   : > { %p2358_p1 = pnand %p2357_p13, %p2351_p2 }
 0xb08   : > { %2361 = shalt.err (!%p2358_p1)
}
 0xb09   : > { %1974 = dma.vmem_to_hbm [thread:$0]  (%p3047_p11), %s2942_s18, 128, %s2940_s16, %s1591_s1  }
 0xb0a PF: > { %s3048_s29 = sld [smem:[#allocation25_spill]]  ;;  %s3049_s23 = sld [smem:[#allocation23_spill]] }
 0xb0b   : > { %s3050_s28 = sld [smem:[#allocation29_spill]] }
 0xb10   : > { %p2021_p0 = scmp.ge.s32.totalorder %s3048_s29, 2  ;;  %s1616_s26 = sand.u32 1, %s3049_s23  }
 0xb11   : > { %p3051_p6 = scmp.ne.s32.totalorder %s3050_s28, 0  ;;  %s1617_s17 = scalar_lea.sflag [#allocation4], %s1616_s26 }
 0xb13   : > { %p2002_p5 = pnand %p2021_p0, %p3051_p6 }
 0xb15   : > { %2399 = dma.done.wait (!%p2002_p5), %s1617_s17, 128  }
 0xb16   : > { %2401 = vsyncadd (!%p2002_p5), %s1617_s17, 4294967168  ;;  %s3052_s27 = sld [smem:[#allocation26_spill]]  ;;  %s3053_s19 = sld [smem:[#allocation24_spill]] }
 0xb17   : > { %s3054_s26 = sld [smem:[#allocation27_spill]]  ;;  %s3055_s24 = smov %s2408_s25 }
 0xb1c   : > { %p32_p9 = scmp.ge.s32.totalorder %s3052_s27, 4   ;;  %s3056_s25 = smov %s3053_s19 }
 0xb1e   :  { %34 = sbr.rel (!%p32_p9) target bundleno = 14 (0xe), region = 156 }
 0xb25   :  { %1622 = vsyncpa [#allocation3], 1 }
 0xb26   :  { %1624 = vsyncpa [#allocation3 + $0x1], 1 }
 0xb27   :  { %1625 = vsyncpa [#allocation6], 1 }
 0xb28   :  { %1626 = vsyncpa [#allocation9], 1 }
 0xb29   :  { %1627 = vsyncpa [#allocation12], 1 }
 0xb2a   :  { %1628 = vsyncpa [#allocation15], 1 }
 0xb2b   :  { %1629 = vsyncpa [#allocation4], 1 }
 0xb2c   :  { %1631 = vsyncpa [#allocation4 + $0x1], 1 }

</bundles_post_ra>
